<compile_context>
chip_gen: v6e
topology: v6e:2x2x1
jax: 0.10.0
libtpu: 0.0.40
codegen_flags: <defaults>
</compile_context>

<pallas_src>
import functools

import jax
import jax.numpy as jnp
import numpy as np
from jax.experimental import pallas as pl
from jax.experimental.pallas import tpu as pltpu

KERNEL = 3
PAD = KERNEL // 2
BN_EPS = 1e-6
LANE = 128


def _round_up(x, m):
    return (x + m - 1) // m * m


# --------------------------------------------------------------------------------------
# Fused kernel, grid = (phase, sample):
#   phase 0: conv1 (one matmul, K=9*C im2col) + global BN sum / sum-of-squares
#   phase 1: BN normalize + ReLU + conv2 (3 matmuls, K=3*CP) + residual add
# --------------------------------------------------------------------------------------
def fused_residual_block_kernel(xcol_ref, xres_ref, w1_ref, w2_ref,
                                gamma_ref, beta_ref, out_ref,
                                y1_ref, sum_ref, ssq_ref,
                                *, count, H, W, CP):
    # xcol_ref: (HW, K1P)      bf16  full 9-tap im2col of x (true-C taps, lane-padded)
    # xres_ref: (HW, CP)       f32   channel-padded residual input
    # w1_ref:   (K1P, CP)      bf16  conv1 weights, rows = (dy*3+dx)*C + cin
    # w2_ref:   (3, 3*CP, CP)  bf16  conv2 weights, [dx, dy*CP + cin, cout]
    # gamma/beta: (1, CP)      f32
    # out_ref:  (HW, CP)       f32
    # y1_ref:   (N, HW, CP)    f32   VMEM-resident conv1 output (never hits HBM)
    # sum_ref/ssq_ref: (1, CP) f32   global BN statistics accumulators
    p = pl.program_id(0)          # phase
    n = pl.program_id(1)          # sample
    HW = H * W

    @pl.when((p == 0) & (n == 0))
    def _init_stats():
        sum_ref[...] = jnp.zeros_like(sum_ref)
        ssq_ref[...] = jnp.zeros_like(ssq_ref)

    @pl.when(p == 0)
    def _conv1_and_stats():
        # single MXU job per sample: M = H*W, K = 9*C (lane-padded), N = CP
        y1 = jnp.dot(xcol_ref[...], w1_ref[...],
                     preferred_element_type=jnp.float32)          # (HW, CP) f32
        y1_ref[n] = y1
        sum_ref[...] += jnp.sum(y1, axis=0, keepdims=True)
        ssq_ref[...] += jnp.sum(y1 * y1, axis=0, keepdims=True)

    @pl.when(p == 1)
    def _bn_relu_conv2_residual():
        # BatchNorm (train-mode batch stats, biased variance, eps=1e-6) -- f32 math
        inv_n = 1.0 / count
        mean = sum_ref[...] * inv_n                               # (1, CP)
        var = ssq_ref[...] * inv_n - mean * mean
        scale = gamma_ref[...] * jax.lax.rsqrt(var + BN_EPS)
        shift = beta_ref[...] - mean * scale

        h = jnp.maximum(y1_ref[n] * scale + shift, 0.0)           # BN + ReLU in f32
        h3 = h.reshape(H, W, CP).astype(jnp.bfloat16)             # bf16 for the MXU

        # kh(dy)-folded im2col: row shifts are tile-granular major-axis slices (cheap)
        zrow = jnp.zeros((1, W, CP), jnp.bfloat16)
        up = jnp.concatenate([zrow, h3[:H - 1]], axis=0)          # hidden[y-1]  (dy=0 tap)
        down = jnp.concatenate([h3[1:], zrow], axis=0)            # hidden[y+1]  (dy=2 tap)
        hcol = jnp.concatenate([up, h3, down], axis=2)            # (H, W, 3*CP), lane-aligned
        hflat = hcol.reshape(HW, 3 * CP)                          # W % 16 == 0 -> aligned

        # conv2: one K=3*CP matmul per dx tap; residual fused as the accumulator init.
        acc = xres_ref[...] + jnp.dot(hflat, w2_ref[1],
                                      preferred_element_type=jnp.float32)   # dx = 1

        # dx = 0 / dx = 2 taps: shift the f32 results by +-1 column with a zero border.
        zcol = jnp.zeros((H, 1, CP), jnp.float32)
        r0 = jnp.dot(hflat, w2_ref[0],
                     preferred_element_type=jnp.float32).reshape(H, W, CP)
        acc = acc + jnp.concatenate([zcol, r0[:, :W - 1, :]],
                                    axis=1).reshape(HW, CP)       # out[:, x] += r0[:, x-1]
        r2 = jnp.dot(hflat, w2_ref[2],
                     preferred_element_type=jnp.float32).reshape(H, W, CP)
        acc = acc + jnp.concatenate([r2[:, 1:, :], zcol],
                                    axis=1).reshape(HW, CP)       # out[:, x] += r2[:, x+1]

        out_ref[...] = acc


# --------------------------------------------------------------------------------------
# Wrapper: PyTorch-style NCHW / OIHW in, NCHW out
# --------------------------------------------------------------------------------------
@jax.jit
def residual_block_forward(x_nchw, w1_oihw, gamma, beta, w2_oihw):
    N, C, H, W = x_nchw.shape
    # bf16 sublane tile is 16: required for copy-free (H, W, .) <-> (H*W, .) reshapes.
    assert W % 16 == 0, "W must be a multiple of 16 (bf16 sublane tile)"
    CP = _round_up(C, LANE)
    K1 = KERNEL * KERNEL * C
    K1P = _round_up(K1, LANE)
    HW = H * W
    count = float(N * H * W)

    # ---- layout glue (wrapper-side XLA): NCHW -> NHWC, im2col, lane padding ----
    x_nhwc = jnp.transpose(x_nchw, (0, 2, 3, 1)).astype(jnp.float32)       # (N,H,W,C)
    xres = jnp.pad(x_nhwc, ((0, 0), (0, 0), (0, 0), (0, CP - C)))          # f32 residual
    xres = xres.reshape(N, HW, CP)

    # full 9-tap im2col at TRUE channel count: xcol[n, i*W+j, (dy*3+dx)*C + c]
    xpad = jnp.pad(x_nhwc, ((0, 0), (PAD, PAD), (PAD, PAD), (0, 0)))
    taps = [xpad[:, dy:dy + H, dx:dx + W, :]
            for dy in range(KERNEL) for dx in range(KERNEL)]
    xcol = jnp.concatenate(taps, axis=3)                                   # (N,H,W,9C)
    xcol = jnp.pad(xcol, ((0, 0), (0, 0), (0, 0), (0, K1P - K1)))
    xcol = xcol.reshape(N, HW, K1P).astype(jnp.bfloat16)

    # conv1 weights: rows ordered (dy, dx, cin) to match xcol lanes
    w1_r = jnp.transpose(w1_oihw, (2, 3, 1, 0)).reshape(K1, C)             # (dy,dx,cin),cout
    w1f = jnp.pad(w1_r, ((0, K1P - K1), (0, CP - C))).astype(jnp.bfloat16)  # (K1P, CP)

    # conv2 weights: [dx, dy*CP + cin, cout]  (kh folded into the contraction dim)
    w2_r = jnp.transpose(w2_oihw, (2, 3, 1, 0))                            # (dy,dx,cin,cout)
    w2_p = jnp.pad(w2_r, ((0, 0), (0, 0), (0, CP - C), (0, CP - C)))
    w2f = jnp.transpose(w2_p, (1, 0, 2, 3)).reshape(
        KERNEL, KERNEL * CP, CP).astype(jnp.bfloat16)

    gamma_p = jnp.pad(gamma.astype(jnp.float32), (0, CP - C),
                      constant_values=1.0).reshape(1, CP)
    beta_p = jnp.pad(beta.astype(jnp.float32), (0, CP - C)).reshape(1, CP)

    kernel = functools.partial(fused_residual_block_kernel,
                               count=count, H=H, W=W, CP=CP)

    out = pl.pallas_call(
        kernel,
        out_shape=jax.ShapeDtypeStruct((N, HW, CP), jnp.float32),
        grid_spec=pltpu.PrefetchScalarGridSpec(
            num_scalar_prefetch=0,
            grid=(2, N),                        # (phase, sample); phase-major iteration
            in_specs=[
                # xcol: sample n in phase 0; park on the last block in phase 1 (no refetch)
                pl.BlockSpec((None, HW, K1P),
                             lambda p, n: (n * (1 - p) + (N - 1) * p, 0, 0)),
                # xres: block 0 during phase 0 (early prefetch), sample n in phase 1
                pl.BlockSpec((None, HW, CP), lambda p, n: (n * p, 0, 0)),
                pl.BlockSpec((K1P, CP), lambda p, n: (0, 0)),
                pl.BlockSpec((KERNEL, KERNEL * CP, CP), lambda p, n: (0, 0, 0)),
                pl.BlockSpec((1, CP), lambda p, n: (0, 0)),
                pl.BlockSpec((1, CP), lambda p, n: (0, 0)),
            ],
            # out revisits block 0 during phase 0 (never written back before phase 1 fills it)
            out_specs=pl.BlockSpec((None, HW, CP), lambda p, n: (n * p, 0, 0)),
            scratch_shapes=[
                pltpu.VMEM((N, HW, CP), jnp.float32),   # VMEM-resident y1 (no HBM round-trip)
                pltpu.VMEM((1, CP), jnp.float32),       # BN sum
                pltpu.VMEM((1, CP), jnp.float32),       # BN sum of squares
            ]),
        compiler_params=pltpu.CompilerParams(
            # both axes must be sequential: phase 1 reads the globally accumulated BN stats
            dimension_semantics=("arbitrary", "arbitrary")),
    )(xcol, xres, w1f, w2f, gamma_p, beta_p)

    # strip the lane padding and go back to NCHW
    return jnp.transpose(out.reshape(N, H, W, CP)[..., :C], (0, 3, 1, 2))
    # TODO(synk): BatchNorm running_mean/running_var momentum(=0.05) update is training-only
    # state bookkeeping and does not affect the forward output; omitted.


# --------------------------------------------------------------------------------------
# Pure-JAX f32 reference (matches PyTorch ResidualBlock in train() mode)
# --------------------------------------------------------------------------------------
@jax.jit
def residual_block_reference(x_nchw, w1_oihw, gamma, beta, w2_oihw):
    dn = jax.lax.conv_dimension_numbers(x_nchw.shape, w1_oihw.shape,
                                        ('NCHW', 'OIHW', 'NCHW'))
    y = jax.lax.conv_general_dilated(x_nchw, w1_oihw, (1, 1),
                                     [(PAD, PAD), (PAD, PAD)],
                                     dimension_numbers=dn)
    mean = jnp.mean(y, axis=(0, 2, 3), keepdims=True)
    var = jnp.mean((y - mean) ** 2, axis=(0, 2, 3), keepdims=True)
    y = (y - mean) * jax.lax.rsqrt(var + BN_EPS)
    y = y * gamma.reshape(1, -1, 1, 1) + beta.reshape(1, -1, 1, 1)
    y = jnp.maximum(y, 0.0)
    y = jax.lax.conv_general_dilated(y, w2_oihw, (1, 1),
                                     [(PAD, PAD), (PAD, PAD)],
                                     dimension_numbers=dn)
    return y + x_nchw


if __name__ == "__main__":
    # ResidualBlock(dim=32), batch=2, spatial 16x16
    N, dim, H, W = 2, 32, 16, 16

    key = jax.random.PRNGKey(0)
    kx, k1, k2, kg, kb = jax.random.split(key, 5)
    wscale = 1.0 / np.sqrt(9 * dim)
    x = jax.random.normal(kx, (N, dim, H, W), jnp.float32)
    w1 = jax.random.normal(k1, (dim, dim, KERNEL, KERNEL), jnp.float32) * wscale
    w2 = jax.random.normal(k2, (dim, dim, KERNEL, KERNEL), jnp.float32) * wscale
    gamma = 1.0 + 0.1 * jax.random.normal(kg, (dim,), jnp.float32)
    beta = 0.1 * jax.random.normal(kb, (dim,), jnp.float32)

    out = jax.block_until_ready(residual_block_forward(x, w1, gamma, beta, w2))
    ref = jax.block_until_ready(residual_block_reference(x, w1, gamma, beta, w2))

    assert out.shape == (N, dim, H, W), out.shape
    # bf16 matmul operands (f32 accumulation) vs. an all-f32 reference -> loosened tolerance
    np.testing.assert_allclose(np.asarray(out), np.asarray(ref), rtol=5e-2, atol=5e-2)
    print("KERNEL_OK")
</pallas_src>

<mosaic_0001>
module attributes {stable_mosaic.version = 11 : i64} {
  func.func @fused_residual_block_kernel(%arg0: i32, %arg1: i32, %arg2: memref<1x256x384xbf16, #tpu.memory_space<vmem>>, %arg3: memref<1x256x128xf32, #tpu.memory_space<vmem>>, %arg4: memref<384x128xbf16, #tpu.memory_space<vmem>>, %arg5: memref<3x384x128xbf16, #tpu.memory_space<vmem>>, %arg6: memref<1x128xf32, #tpu.memory_space<vmem>>, %arg7: memref<1x128xf32, #tpu.memory_space<vmem>>, %arg8: memref<1x256x128xf32, #tpu.memory_space<vmem>>, %arg9: memref<2x256x128xf32, #tpu.memory_space<vmem>>, %arg10: memref<1x128xf32, #tpu.memory_space<vmem>>, %arg11: memref<1x128xf32, #tpu.memory_space<vmem>>) attributes {dimension_semantics = [#tpu.dimension_semantics<arbitrary>, #tpu.dimension_semantics<arbitrary>], iteration_bounds = array<i64: 2, 2>, scalar_prefetch = 0 : i64, scratch_operands = 3 : i64, tpu.core_type = #tpu.core_type<tc>, window_params = [{transform_indices = @transform_0, window_bounds = array<i64: 1, 256, 384>}, {transform_indices = @transform_1, window_bounds = array<i64: 1, 256, 128>}, {pipeline_mode = #tpu.pipeline_mode<synchronous>, transform_indices = @transform_2, window_bounds = array<i64: 384, 128>}, {pipeline_mode = #tpu.pipeline_mode<synchronous>, transform_indices = @transform_3, window_bounds = array<i64: 3, 384, 128>}, {pipeline_mode = #tpu.pipeline_mode<synchronous>, transform_indices = @transform_4, window_bounds = array<i64: 1, 128>}, {pipeline_mode = #tpu.pipeline_mode<synchronous>, transform_indices = @transform_5, window_bounds = array<i64: 1, 128>}, {transform_indices = @transform_6, window_bounds = array<i64: 1, 256, 128>}]} {
    %c0_i32 = arith.constant 0 : i32
    %0 = arith.cmpi eq, %arg0, %c0_i32 : i32
    %c0_i32_0 = arith.constant 0 : i32
    %1 = arith.cmpi eq, %arg1, %c0_i32_0 : i32
    %2 = arith.andi %0, %1 : i1
    %3 = arith.extui %2 : i1 to i32
    %c0_i32_1 = arith.constant 0 : i32
    %4 = arith.cmpi ne, %3, %c0_i32_1 : i32
    scf.if %4 {
      %cst = arith.constant 0.000000e+00 : f32
      %11 = vector.broadcast %cst : f32 to vector<1x128xf32>
      %c0 = arith.constant 0 : index
      %c0_5 = arith.constant 0 : index
      %12 = vector.load %arg10[%c0, %c0_5] : memref<1x128xf32, #tpu.memory_space<vmem>>, vector<1x128xf32>
      tpu.vector_store %arg10[%c0, %c0_5], %11 {strides = array<i32>} : memref<1x128xf32, #tpu.memory_space<vmem>>, vector<1x128xf32>,
      %cst_6 = arith.constant 0.000000e+00 : f32
      %13 = vector.broadcast %cst_6 : f32 to vector<1x128xf32>
      %c0_7 = arith.constant 0 : index
      %c0_8 = arith.constant 0 : index
      %14 = vector.load %arg11[%c0_7, %c0_8] : memref<1x128xf32, #tpu.memory_space<vmem>>, vector<1x128xf32>
      tpu.vector_store %arg11[%c0_7, %c0_8], %13 {strides = array<i32>} : memref<1x128xf32, #tpu.memory_space<vmem>>, vector<1x128xf32>,
    } else {
    }
    %c0_i32_2 = arith.constant 0 : i32
    %5 = arith.cmpi eq, %arg0, %c0_i32_2 : i32
    %6 = arith.extui %5 : i1 to i32
    %c0_i32_3 = arith.constant 0 : i32
    %7 = arith.cmpi ne, %6, %c0_i32_3 : i32
    scf.if %7 {
      %c0 = arith.constant 0 : index
      %c0_5 = arith.constant 0 : index
      %c0_6 = arith.constant 0 : index
      %11 = vector.load %arg2[%c0, %c0_5, %c0_6] : memref<1x256x384xbf16, #tpu.memory_space<vmem>>, vector<1x256x384xbf16>
      %12 = vector.shape_cast %11 : vector<1x256x384xbf16> to vector<256x384xbf16>
      %c0_7 = arith.constant 0 : index
      %c0_8 = arith.constant 0 : index
      %13 = vector.load %arg4[%c0_7, %c0_8] : memref<384x128xbf16, #tpu.memory_space<vmem>>, vector<384x128xbf16>
      %cst = arith.constant dense<0.000000e+00> : vector<256x128xf32>
      %14 = tpu.matmul %12, %13, %cst {dimension_numbers = #tpu.dot_dimension_numbers<[1], [0], [0], [1], [0, 0, 1, 1], [], []>} : vector<256x384xbf16>, vector<384x128xbf16>, vector<256x128xf32> -> vector<256x128xf32>
      %15 = arith.index_cast %arg1 : i32 to index
      %c0_9 = arith.constant 0 : index
      %c0_10 = arith.constant 0 : index
      %16 = vector.load %arg9[%15, %c0_9, %c0_10] : memref<2x256x128xf32, #tpu.memory_space<vmem>>, vector<1x256x128xf32>
      %17 = vector.shape_cast %16 : vector<1x256x128xf32> to vector<256x128xf32>
      %18 = vector.shape_cast %14 : vector<256x128xf32> to vector<1x256x128xf32>
      tpu.vector_store %arg9[%15, %c0_9, %c0_10], %18 {strides = array<i32>} : memref<2x256x128xf32, #tpu.memory_space<vmem>>, vector<1x256x128xf32>,
      %c0_11 = arith.constant 0 : index
      %c0_12 = arith.constant 0 : index
      %19 = vector.load %arg10[%c0_11, %c0_12] : memref<1x128xf32, #tpu.memory_space<vmem>>, vector<1x128xf32>
      %cst_13 = arith.constant dense<0.000000e+00> : vector<128xf32>
      %20 = vector.multi_reduction <add>, %14, %cst_13 [0] : vector<256x128xf32> to vector<128xf32>
      %21 = vector.shape_cast %20 : vector<128xf32> to vector<1x128xf32>
      %22 = arith.addf %19, %21 : vector<1x128xf32>
      %c0_14 = arith.constant 0 : index
      %c0_15 = arith.constant 0 : index
      %23 = vector.load %arg10[%c0_14, %c0_15] : memref<1x128xf32, #tpu.memory_space<vmem>>, vector<1x128xf32>
      tpu.vector_store %arg10[%c0_14, %c0_15], %22 {strides = array<i32>} : memref<1x128xf32, #tpu.memory_space<vmem>>, vector<1x128xf32>,
      %c0_16 = arith.constant 0 : index
      %c0_17 = arith.constant 0 : index
      %24 = vector.load %arg11[%c0_16, %c0_17] : memref<1x128xf32, #tpu.memory_space<vmem>>, vector<1x128xf32>
      %25 = arith.mulf %14, %14 : vector<256x128xf32>
      %cst_18 = arith.constant dense<0.000000e+00> : vector<128xf32>
      %26 = vector.multi_reduction <add>, %25, %cst_18 [0] : vector<256x128xf32> to vector<128xf32>
      %27 = vector.shape_cast %26 : vector<128xf32> to vector<1x128xf32>
      %28 = arith.addf %24, %27 : vector<1x128xf32>
      %c0_19 = arith.constant 0 : index
      %c0_20 = arith.constant 0 : index
      %29 = vector.load %arg11[%c0_19, %c0_20] : memref<1x128xf32, #tpu.memory_space<vmem>>, vector<1x128xf32>
      tpu.vector_store %arg11[%c0_19, %c0_20], %28 {strides = array<i32>} : memref<1x128xf32, #tpu.memory_space<vmem>>, vector<1x128xf32>,
    } else {
    }
    %c1_i32 = arith.constant 1 : i32
    %8 = arith.cmpi eq, %arg0, %c1_i32 : i32
    %9 = arith.extui %8 : i1 to i32
    %c0_i32_4 = arith.constant 0 : i32
    %10 = arith.cmpi ne, %9, %c0_i32_4 : i32
    scf.if %10 {
      %c0 = arith.constant 0 : index
      %c0_5 = arith.constant 0 : index
      %11 = vector.load %arg10[%c0, %c0_5] : memref<1x128xf32, #tpu.memory_space<vmem>>, vector<1x128xf32>
      %cst = arith.constant 0.001953125 : f32
      %12 = vector.broadcast %cst : f32 to vector<1x128xf32>
      %13 = arith.mulf %11, %12 : vector<1x128xf32>
      %c0_6 = arith.constant 0 : index
      %c0_7 = arith.constant 0 : index
      %14 = vector.load %arg11[%c0_6, %c0_7] : memref<1x128xf32, #tpu.memory_space<vmem>>, vector<1x128xf32>
      %cst_8 = arith.constant 0.001953125 : f32
      %15 = vector.broadcast %cst_8 : f32 to vector<1x128xf32>
      %16 = arith.mulf %14, %15 : vector<1x128xf32>
      %17 = arith.mulf %13, %13 : vector<1x128xf32>
      %18 = arith.subf %16, %17 : vector<1x128xf32>
      %c0_9 = arith.constant 0 : index
      %c0_10 = arith.constant 0 : index
      %19 = vector.load %arg6[%c0_9, %c0_10] : memref<1x128xf32, #tpu.memory_space<vmem>>, vector<1x128xf32>
      %cst_11 = arith.constant 9.99999997E-7 : f32
      %20 = vector.broadcast %cst_11 : f32 to vector<1x128xf32>
      %21 = arith.addf %18, %20 : vector<1x128xf32>
      %22 = math.rsqrt %21 : vector<1x128xf32>
      %23 = arith.mulf %19, %22 : vector<1x128xf32>
      %c0_12 = arith.constant 0 : index
      %c0_13 = arith.constant 0 : index
      %24 = vector.load %arg7[%c0_12, %c0_13] : memref<1x128xf32, #tpu.memory_space<vmem>>, vector<1x128xf32>
      %25 = arith.mulf %13, %23 : vector<1x128xf32>
      %26 = arith.subf %24, %25 : vector<1x128xf32>
      %27 = arith.index_cast %arg1 : i32 to index
      %c0_14 = arith.constant 0 : index
      %c0_15 = arith.constant 0 : index
      %28 = vector.load %arg9[%27, %c0_14, %c0_15] : memref<2x256x128xf32, #tpu.memory_space<vmem>>, vector<1x256x128xf32>
      %29 = vector.shape_cast %28 : vector<1x256x128xf32> to vector<256x128xf32>
      %30 = vector.broadcast %23 : vector<1x128xf32> to vector<256x128xf32>
      %31 = arith.mulf %29, %30 : vector<256x128xf32>
      %32 = vector.broadcast %26 : vector<1x128xf32> to vector<256x128xf32>
      %33 = arith.addf %31, %32 : vector<256x128xf32>
      %cst_16 = arith.constant 0.000000e+00 : f32
      %34 = vector.broadcast %cst_16 : f32 to vector<256x128xf32>
      %35 = arith.maximumf %33, %34 : vector<256x128xf32>
      %36 = vector.shape_cast %35 : vector<256x128xf32> to vector<16x16x128xf32>
      %37 = arith.truncf %36 : vector<16x16x128xf32> to vector<16x16x128xbf16>
      %cst_17 = arith.constant 0.000000e+00 : bf16
      %38 = vector.broadcast %cst_17 : bf16 to vector<1x16x128xbf16>
      %39 = vector.extract_strided_slice %37 {offsets = [0, 0, 0], sizes = [15, 16, 128], strides = [1, 1, 1]} : vector<16x16x128xbf16> to vector<15x16x128xbf16>
      %40 = tpu.concatenate %38, %39 in 0 : vector<1x16x128xbf16>, vector<15x16x128xbf16> -> vector<16x16x128xbf16>
      %41 = vector.extract_strided_slice %37 {offsets = [1, 0, 0], sizes = [15, 16, 128], strides = [1, 1, 1]} : vector<16x16x128xbf16> to vector<15x16x128xbf16>
      %42 = tpu.concatenate %41, %38 in 0 : vector<15x16x128xbf16>, vector<1x16x128xbf16> -> vector<16x16x128xbf16>
      %43 = tpu.concatenate %40, %37, %42 in 2 : vector<16x16x128xbf16>, vector<16x16x128xbf16>, vector<16x16x128xbf16> -> vector<16x16x384xbf16>
      %44 = vector.shape_cast %43 : vector<16x16x384xbf16> to vector<256x384xbf16>
      %c0_18 = arith.constant 0 : index
      %c0_19 = arith.constant 0 : index
      %c0_20 = arith.constant 0 : index
      %45 = vector.load %arg3[%c0_18, %c0_19, %c0_20] : memref<1x256x128xf32, #tpu.memory_space<vmem>>, vector<1x256x128xf32>
      %46 = vector.shape_cast %45 : vector<1x256x128xf32> to vector<256x128xf32>
      %c1 = arith.constant 1 : index
      %c0_21 = arith.constant 0 : index
      %c0_22 = arith.constant 0 : index
      %47 = vector.load %arg5[%c1, %c0_21, %c0_22] : memref<3x384x128xbf16, #tpu.memory_space<vmem>>, vector<1x384x128xbf16>
      %48 = vector.shape_cast %47 : vector<1x384x128xbf16> to vector<384x128xbf16>
      %cst_23 = arith.constant dense<0.000000e+00> : vector<256x128xf32>
      %49 = tpu.matmul %44, %48, %cst_23 {dimension_numbers = #tpu.dot_dimension_numbers<[1], [0], [0], [1], [0, 0, 1, 1], [], []>} : vector<256x384xbf16>, vector<384x128xbf16>, vector<256x128xf32> -> vector<256x128xf32>
      %50 = arith.addf %46, %49 : vector<256x128xf32>
      %cst_24 = arith.constant 0.000000e+00 : f32
      %51 = vector.broadcast %cst_24 : f32 to vector<16x1x128xf32>
      %c0_25 = arith.constant 0 : index
      %c0_26 = arith.constant 0 : index
      %c0_27 = arith.constant 0 : index
      %52 = vector.load %arg5[%c0_25, %c0_26, %c0_27] : memref<3x384x128xbf16, #tpu.memory_space<vmem>>, vector<1x384x128xbf16>
      %53 = vector.shape_cast %52 : vector<1x384x128xbf16> to vector<384x128xbf16>
      %cst_28 = arith.constant dense<0.000000e+00> : vector<256x128xf32>
      %54 = tpu.matmul %44, %53, %cst_28 {dimension_numbers = #tpu.dot_dimension_numbers<[1], [0], [0], [1], [0, 0, 1, 1], [], []>} : vector<256x384xbf16>, vector<384x128xbf16>, vector<256x128xf32> -> vector<256x128xf32>
      %55 = vector.shape_cast %54 : vector<256x128xf32> to vector<16x16x128xf32>
      %56 = vector.extract_strided_slice %55 {offsets = [0, 0, 0], sizes = [16, 15, 128], strides = [1, 1, 1]} : vector<16x16x128xf32> to vector<16x15x128xf32>
      %57 = tpu.concatenate %51, %56 in 1 : vector<16x1x128xf32>, vector<16x15x128xf32> -> vector<16x16x128xf32>
      %58 = vector.shape_cast %57 : vector<16x16x128xf32> to vector<256x128xf32>
      %59 = arith.addf %50, %58 : vector<256x128xf32>
      %c2 = arith.constant 2 : index
      %c0_29 = arith.constant 0 : index
      %c0_30 = arith.constant 0 : index
      %60 = vector.load %arg5[%c2, %c0_29, %c0_30] : memref<3x384x128xbf16, #tpu.memory_space<vmem>>, vector<1x384x128xbf16>
      %61 = vector.shape_cast %60 : vector<1x384x128xbf16> to vector<384x128xbf16>
      %cst_31 = arith.constant dense<0.000000e+00> : vector<256x128xf32>
      %62 = tpu.matmul %44, %61, %cst_31 {dimension_numbers = #tpu.dot_dimension_numbers<[1], [0], [0], [1], [0, 0, 1, 1], [], []>} : vector<256x384xbf16>, vector<384x128xbf16>, vector<256x128xf32> -> vector<256x128xf32>
      %63 = vector.shape_cast %62 : vector<256x128xf32> to vector<16x16x128xf32>
      %64 = vector.extract_strided_slice %63 {offsets = [0, 1, 0], sizes = [16, 15, 128], strides = [1, 1, 1]} : vector<16x16x128xf32> to vector<16x15x128xf32>
      %65 = tpu.concatenate %64, %51 in 1 : vector<16x15x128xf32>, vector<16x1x128xf32> -> vector<16x16x128xf32>
      %66 = vector.shape_cast %65 : vector<16x16x128xf32> to vector<256x128xf32>
      %67 = arith.addf %59, %66 : vector<256x128xf32>
      %c0_32 = arith.constant 0 : index
      %c0_33 = arith.constant 0 : index
      %c0_34 = arith.constant 0 : index
      %68 = vector.load %arg8[%c0_32, %c0_33, %c0_34] : memref<1x256x128xf32, #tpu.memory_space<vmem>>, vector<1x256x128xf32>
      %69 = vector.shape_cast %68 : vector<1x256x128xf32> to vector<256x128xf32>
      %70 = vector.shape_cast %67 : vector<256x128xf32> to vector<1x256x128xf32>
      tpu.vector_store %arg8[%c0_32, %c0_33, %c0_34], %70 {strides = array<i32>} : memref<1x256x128xf32, #tpu.memory_space<vmem>>, vector<1x256x128xf32>,
    } else {
    }
    return
  }
  func.func @transform_0(%arg0: i32, %arg1: i32) -> (i32, i32, i32) {
    %c1_i32 = arith.constant 1 : i32
    %0 = arith.subi %c1_i32, %arg0 : i32
    %1 = arith.muli %arg1, %0 : i32
    %c1_i32_0 = arith.constant 1 : i32
    %2 = arith.muli %c1_i32_0, %arg0 : i32
    %3 = arith.addi %1, %2 : i32
    %c0_i32 = arith.constant 0 : i32
    %c0_i32_1 = arith.constant 0 : i32
    %c0_i32_2 = arith.constant 0 : i32
    return %3, %c0_i32, %c0_i32_1 : i32, i32, i32
  }
  func.func @transform_1(%arg0: i32, %arg1: i32) -> (i32, i32, i32) {
    %0 = arith.muli %arg1, %arg0 : i32
    %c0_i32 = arith.constant 0 : i32
    %c0_i32_0 = arith.constant 0 : i32
    %c0_i32_1 = arith.constant 0 : i32
    return %0, %c0_i32, %c0_i32_0 : i32, i32, i32
  }
  func.func @transform_2(%arg0: i32, %arg1: i32) -> (i32, i32) {
    %c0_i32 = arith.constant 0 : i32
    %c0_i32_0 = arith.constant 0 : i32
    %c0_i32_1 = arith.constant 0 : i32
    return %c0_i32, %c0_i32_0 : i32, i32
  }
  func.func @transform_3(%arg0: i32, %arg1: i32) -> (i32, i32, i32) {
    %c0_i32 = arith.constant 0 : i32
    %c0_i32_0 = arith.constant 0 : i32
    %c0_i32_1 = arith.constant 0 : i32
    %c0_i32_2 = arith.constant 0 : i32
    return %c0_i32, %c0_i32_0, %c0_i32_1 : i32, i32, i32
  }
  func.func @transform_4(%arg0: i32, %arg1: i32) -> (i32, i32) {
    %c0_i32 = arith.constant 0 : i32
    %c0_i32_0 = arith.constant 0 : i32
    %c0_i32_1 = arith.constant 0 : i32
    return %c0_i32, %c0_i32_0 : i32, i32
  }
  func.func @transform_5(%arg0: i32, %arg1: i32) -> (i32, i32) {
    %c0_i32 = arith.constant 0 : i32
    %c0_i32_0 = arith.constant 0 : i32
    %c0_i32_1 = arith.constant 0 : i32
    return %c0_i32, %c0_i32_0 : i32, i32
  }
  func.func @transform_6(%arg0: i32, %arg1: i32) -> (i32, i32, i32) {
    %0 = arith.muli %arg1, %arg0 : i32
    %c0_i32 = arith.constant 0 : i32
    %c0_i32_0 = arith.constant 0 : i32
    %c0_i32_1 = arith.constant 0 : i32
    return %0, %c0_i32, %c0_i32_0 : i32, i32, i32
  }
}

</mosaic_0001>

<bundles_post_ra>
// kernel: residual_block_forward.1
= control target key start
LH: loop header
LB: loop body
LE: loop exit
PB: predicated region body
PF: predicated region fallthrough
CT: control target
= control target key end

     0   :  { %s4840_s21 = smov 0   ;;  %s4842_s22 = smov 0   ;;  %s6179_s0 = inlined_call_operand.vmem [shape: bf16[2,256,384], index: 0, kind: input, shape index: {}]   ;;  %s6180_s1 = inlined_call_operand.vmem [shape: f32[2,256,128], index: 1, kind: input, shape index: {}]   ;;  %s6181_s2 = inlined_call_operand.vmem [shape: bf16[384,128], index: 2, kind: input, shape index: {}]   ;;  %s6182_s3 = inlined_call_operand.vmem [shape: bf16[3,384,128], index: 3, kind: input, shape index: {}]   ;;  %s6183_s4 = inlined_call_operand.vmem [shape: f32[1,128], index: 4, kind: input, shape index: {}]   ;;  %s6184_s5 = inlined_call_operand.vmem [shape: f32[1,128], index: 5, kind: input, shape index: {}]   ;;  %s6185_s6 = inlined_call_operand.vmem [shape: f32[2,256,128], index: 6, kind: output, shape index: {}]  }
   0x1   :  { %s4844_s23 = smov 0   ;;  %s4846_s24 = smov 0  }
   0x2   :  { %s4848_s25 = smov 0  }
   0x3 LB: > { %s25_s26 = sadd.s32 1, %s4793_s23  ;;  %s28_s27 = sadd.s32 1, %s4797_s24  ;;  %s4801_s25 = sphi %s4848_s25, %s16_s25   ;;  %s4797_s24 = sphi %s4846_s24, %s6223_s24   ;;  %s4793_s23 = sphi %s4844_s23, %s6222_s23   ;;  %s4789_s22 = sphi %s4842_s22, %s6221_s22   ;;  %s4785_s21 = sphi %s4840_s21, %s6220_s21  }
   0x4   : > { %p26_p0 = scmp.ge.s32.totalorder %s25_s26, 2  ;;  %p3536_p1 = scmp.ge.s32.totalorder %s4801_s25, 1 }
   0x5   : > { %p252_p2 = scmp.lt.s32.totalorder %s4801_s25, 5 }
   0x6   : > { %s6225_s26 = smov (%p26_p0, %s25_s26), 0  ;;  %s6227_s27 = smov (!%p26_p0, %s28_s27), %s4797_s24 }
   0x7   : > { %p253_p3 = pnand %p3536_p1, %p252_p2  ;;  %p30_p4 = scmp.ge.s32.totalorder %s6227_s27, 2 }
   0x8   : > { %s292_s28 = ssub.s32 (!%p253_p3), 1, %s4789_s22  ;;  %s303_s29 = smul.u32 (!%p253_p3), %s4785_s21, %s4789_s22 }
   0x9   : > { %s6229_s27 = smov (%p30_p4, %s6227_s27), 0  ;;  %256 = sbr.rel (%p253_p3) target bundleno = 929 (0x3a1), region = 44 }
   0xa   : > { %s293_s30 = smul.u32 (!%p253_p3), %s4785_s21, %s292_s28  ;;  %p318_p5 = scmp.eq.s32.totalorder (!%p253_p3), %s4789_s22, 0 }
   0xb   : > { %p304_p6 = scmp.lt.s32.totalorder (!%p253_p3), %s303_s29, 1  ;;  %p319_p7 = scmp.eq.s32.totalorder (!%p253_p3), %s4785_s21, 0 }
   0xc   : > { %s294_s7 = sadd.s32 (!%p253_p3), %s4789_s22, %s293_s30 }
   0xd   : > { %p295_p8 = scmp.lt.s32.totalorder (!%p253_p3), %s294_s7, 1  ;;  %p320_p9 = pnand (!%p253_p3), %p319_p7, %p318_p5 }
   0xe   : > { %s6231_s29 = smov (!%p304_p6, %s303_s29), 1 }
   0xf   : > { %s6233_s7 = smov (!%p295_p8, %s294_s7), 1  ;;  %s3788_s8 = sshll.u32 %s6231_s29, 8 }
  0x10   : > { %s4558_s9 = smul.u32 384, %s6233_s7  ;;  %s4884_s12 = scalar_lea.vmem %s6180_s1, %s3788_s8 }
  0x11   : > { %s4889_s15 = scalar_lea.vmem %s6185_s6, %s3788_s8  ;;  %323 = sbr.rel (%p320_p9) target bundleno = 24 (0x18), region = 48 }
  0x12   : > { %s4894_s18 = scalar_lea.vmem %s6179_s0, %s4558_s9 }
  0x16   : > { %v4803_v0 = vmov 0.0  }
  0x17   : > { %324 = vst [vmem:[#allocation3] sm:$0x1] %v4803_v0  ;;  %325 = vst [vmem:[#allocation4] sm:$0x1] %v4803_v0 }
  0x18 PF: > { %p3542_p10 = scmp.ne.s32.totalorder %s4789_s22, 0 }
  0x1a   : > { %328 = sbr.rel (%p3542_p10) target bundleno = 390 (0x186), region = 52 }
  0x1f   : > { %v4601_v1 = vld [vmem:[%s6181_s2 + $0x78] sm:$0xff]   ;;  %v4603_v3 = vld [vmem:[%s6181_s2 + $0x70] sm:$0xff]   ;;  %v4605_v5 = vld [vmem:[%s6181_s2 + $0x68] sm:$0xff]  }
  0x20   : > { %v4602_v2 = vld [vmem:[%s6181_s2 + $0x38] sm:$0xff]   ;;  %3790 = vmatprep.subr.bf16.mxu0 %v4601_v1  ;;  %4526 = vmatprep.subr.bf16.mxu1 %v4601_v1  ;;  %v4604_v4 = vld [vmem:[%s6181_s2 + $0x30] sm:$0xff]   ;;  %v4606_v6 = vld [vmem:[%s6181_s2 + $0x28] sm:$0xff]  }
  0x21   : > { %3791 = vmatpush3.bf16.msra.mxu0 %v4602_v2  ;;  %4534 = vmatpush3.bf16.msra.mxu1 %v4602_v2  ;;  %v4607_v7 = vld [vmem:[%s6181_s2 + $0x60] sm:$0xff]   ;;  %v4609_v9 = vld [vmem:[%s6181_s2 + $0x58] sm:$0xff]   ;;  %v4611_v11 = vld [vmem:[%s6181_s2 + $0x50] sm:$0xff]  }
  0x22   : > { %3792 = vmatprep.subr.bf16.mxu0 %v4603_v3  ;;  %4527 = vmatprep.subr.bf16.mxu1 %v4603_v3  ;;  %v4608_v8 = vld [vmem:[%s6181_s2 + $0x20] sm:$0xff]   ;;  %v4610_v10 = vld [vmem:[%s6181_s2 + $0x18] sm:$0xff]   ;;  %v4612_v14 = vld [vmem:[%s6181_s2 + $0x10] sm:$0xff]  }
  0x23   : > { %v4619_v12 = vld [vmem:[%s4894_s18 + $0x4] ss:$12 sps:$4 sm:$0xff]   ;;  %v4613_v15 = vld [vmem:[%s6181_s2 + $0x48] sm:$0xff]   ;;  %v4623_v19 = vld [vmem:[%s6181_s2 + $0xb8] sm:$0xff]  }
  0x24   : > { %v4622_v13 = vld [vmem:[%s4894_s18 + $0x124] ss:$12 sps:$4 sm:$0xff]   ;;  %873 = vmatprep.mubr.bf16.mxu0 %v4619_v12  ;;  %v4614_v16 = vld [vmem:[%s6181_s2 + $0x8] sm:$0xff]   ;;  %v4633_v29 = vld [vmem:[%s4894_s18 + $0x34] ss:$12 sps:$4 sm:$0xff]  }
  0x25   : > { %3793 = vmatpush3.bf16.msra.mxu0 %v4604_v4  ;;  %4535 = vmatpush3.bf16.msra.mxu1 %v4604_v4  ;;  %v4615_v17 = vld [vmem:[%s6181_s2 + $0x40] sm:$0xff]   ;;  %v4625_v22 = vld [vmem:[%s4894_s18 + $0x1c] ss:$12 sps:$4 sm:$0xff]   ;;  %v4624_v23 = vld [vmem:[%s6181_s2 + $0xb0] sm:$0xff]  }
  0x26   : > { %3794 = vmatprep.subr.bf16.mxu0 %v4605_v5  ;;  %4528 = vmatprep.subr.bf16.mxu1 %v4605_v5  ;;  %v4616_v18 = vld [vmem:[%s6181_s2] sm:$0xff]   ;;  %v4627_v24 = vld [vmem:[%s4894_s18 + $0x13c] ss:$12 sps:$4 sm:$0xff]   ;;  %v4640_v34 = vld [vmem:[%s6181_s2 + $0x90] sm:$0xff]  }
  0x27   : > { %969 = vmatprep.mubr.bf16.mxu1 %v4622_v13  ;;  %v4617_v20 = vld [vmem:[%s4894_s18] ss:$12 sps:$4 sm:$0xff]   ;;  %v4629_v25 = vld [vmem:[%s4894_s18 + $0x18] ss:$12 sps:$4 sm:$0xff]   ;;  %v4637_v32 = vld [vmem:[%s4894_s18 + $0x30] ss:$12 sps:$4 sm:$0xff]  }
  0x28   : > { %v4620_v21 = vld [vmem:[%s4894_s18 + $0x120] ss:$12 sps:$4 sm:$0xff]   ;;  %v4630_v27 = vld [vmem:[%s4894_s18 + $0x138] ss:$12 sps:$4 sm:$0xff]   ;;  %v4638_v33 = vld [vmem:[%s4894_s18 + $0x150] ss:$12 sps:$4 sm:$0xff]  }
  0x29   : > { %3795 = vmatpush3.bf16.msra.mxu0 %v4606_v6  ;;  %4536 = vmatpush3.bf16.msra.mxu1 %v4606_v6  ;;  %v4631_v26 = vld [vmem:[%s6181_s2 + $0xa8] sm:$0xff]   ;;  %v4632_v28 = vld [vmem:[%s6181_s2 + $0xa0] sm:$0xff]   ;;  %v4639_v31 = vld [vmem:[%s6181_s2 + $0x98] sm:$0xff]  }
  0x2a   : > { %3796 = vmatprep.subr.bf16.mxu0 %v4607_v7  ;;  %4529 = vmatprep.subr.bf16.mxu1 %v4607_v7  ;;  %v4635_v30 = vld [vmem:[%s4894_s18 + $0x154] ss:$12 sps:$4 sm:$0xff]   ;;  %v4641_v35 = vld [vmem:[%s4894_s18 + $0x4c] ss:$12 sps:$4 sm:$0xff]   ;;  %v4649_v40 = vld [vmem:[%s4894_s18 + $0x64] ss:$12 sps:$4 sm:$0xff]  }
  0x2b   : > { %v4643_v36 = vld [vmem:[%s4894_s18 + $0x16c] ss:$12 sps:$4 sm:$0xff]   ;;  %v4645_v38 = vld [vmem:[%s4894_s18 + $0x48] ss:$12 sps:$4 sm:$0xff]   ;;  %v4648_v41 = vld [vmem:[%s6181_s2 + $0x80] sm:$0xff]  }
  0x2c   : > { %v4647_v37 = vld [vmem:[%s6181_s2 + $0x88] sm:$0xff]   ;;  %v4656_v46 = vld [vmem:[%s4894_s18 + $0x38] ss:$12 sps:$4 sm:$0xff]   ;;  %v4658_v48 = vld [vmem:[%s4894_s18 + $0x50] ss:$12 sps:$4 sm:$0xff]  }
  0x2d   : > { %3797 = vmatpush3.bf16.msra.mxu0 %v4608_v8  ;;  %4537 = vmatpush3.bf16.msra.mxu1 %v4608_v8  ;;  %v4646_v39 = vld [vmem:[%s4894_s18 + $0x168] ss:$12 sps:$4 sm:$0xff]   ;;  %v4652_v43 = vld [vmem:[%s4894_s18 + $0x60] ss:$12 sps:$4 sm:$0xff]   ;;  %v4657_v47 = vld [vmem:[%s4894_s18 + $0x78] ss:$12 sps:$4 sm:$0xff]  }
  0x2e   : > { %3798 = vmatprep.subr.bf16.mxu0 %v4609_v9  ;;  %4530 = vmatprep.subr.bf16.mxu1 %v4609_v9  ;;  %v4651_v42 = vld [vmem:[%s4894_s18 + $0x8] ss:$12 sps:$4 sm:$0xff]   ;;  %v4653_v44 = vld [vmem:[%s4894_s18 + $0x20] ss:$12 sps:$4 sm:$0xff]   ;;  %v4662_v51 = vld [vmem:[%s4894_s18 + $0x90] ss:$12 sps:$4 sm:$0xff]  }
  0x2f   : > { %v4654_v45 = vld [vmem:[%s4894_s18 + $0x7c] ss:$12 sps:$4 sm:$0xff]   ;;  %v4659_v49 = vld [vmem:[%s4894_s18 + $0x94] ss:$12 sps:$4 sm:$0xff]   ;;  %v4664_v53 = vld [vmem:[%s4894_s18 + $0xac] ss:$12 sps:$4 sm:$0xff]  }
  0x30   : > { %v4661_v50 = vld [vmem:[%s4894_s18 + $0x68] ss:$12 sps:$4 sm:$0xff]   ;;  %v4663_v52 = vld [vmem:[%s4894_s18 + $0x80] ss:$12 sps:$4 sm:$0xff]   ;;  %v4666_v54 = vld [vmem:[%s4894_s18 + $0x98] ss:$12 sps:$4 sm:$0xff]  }
  0x31   : > { %3799 = vmatpush3.bf16.msra.mxu0 %v4610_v10  ;;  %4538 = vmatpush3.bf16.msra.mxu1 %v4610_v10  ;;  %v4667_v55 = vld [vmem:[%s4894_s18 + $0xa8] ss:$12 sps:$4 sm:$0xff]   ;;  %v4668_v56 = vld [vmem:[%s4894_s18 + $0xb0] ss:$12 sps:$4 sm:$0xff]   ;;  %v4672_v59 = vld [vmem:[%s4894_s18 + $0xc0] ss:$12 sps:$4 sm:$0xff]  }
  0x32   : > { %3800 = vmatprep.subr.bf16.mxu0 %v4611_v11  ;;  %4531 = vmatprep.subr.bf16.mxu1 %v4611_v11  ;;  %v4669_v57 = vld [vmem:[%s4894_s18 + $0xc4] ss:$12 sps:$4 sm:$0xff]   ;;  %v4671_v58 = vld [vmem:[%s4894_s18 + $0xc8] ss:$12 sps:$4 sm:$0xff]   ;;  %v4673_v60 = vld [vmem:[%s4894_s18 + $0xe0] ss:$12 sps:$4 sm:$0xff]  }
  0x33   : > { %v4674_v61 = vld [vmem:[%s4894_s18 + $0xdc] ss:$12 sps:$4 sm:$0xff]   ;;  %v4676_v62 = vld [vmem:[%s4894_s18 + $0xf8] ss:$12 sps:$4 sm:$0xff]   ;;  %v4679_v1 = vld [vmem:[%s4894_s18 + $0xf4] ss:$12 sps:$4 sm:$0xff]  }
  0x34   : > { %v4677_v63 = vld [vmem:[%s4894_s18 + $0xd8] ss:$12 sps:$4 sm:$0xff]   ;;  %v4678_v0 = vld [vmem:[%s4894_s18 + $0x110] ss:$12 sps:$4 sm:$0xff]   ;;  %v4681_v2 = vld [vmem:[%s4894_s18 + $0x128] ss:$12 sps:$4 sm:$0xff]  }
  0x35   : > { %3801 = vmatpush3.bf16.msra.mxu0 %v4612_v14  ;;  %4539 = vmatpush3.bf16.msra.mxu1 %v4612_v14  ;;  %v4682_v3 = vld [vmem:[%s4894_s18 + $0xf0] ss:$12 sps:$4 sm:$0xff]   ;;  %v4683_v4 = vld [vmem:[%s4894_s18 + $0x140] ss:$12 sps:$4 sm:$0xff]   ;;  %v4686_v6 = vld [vmem:[%s4894_s18 + $0x158] ss:$12 sps:$4 sm:$0xff]  }
  0x36   : > { %3802 = vmatprep.subr.bf16.mxu0 %v4613_v15  ;;  %4532 = vmatprep.subr.bf16.mxu1 %v4613_v15  ;;  %v4684_v5 = vld [vmem:[%s4894_s18 + $0x10c] ss:$12 sps:$4 sm:$0xff]   ;;  %v4687_v7 = vld [vmem:[%s4894_s18 + $0x108] ss:$12 sps:$4 sm:$0xff]   ;;  %v4688_v8 = vld [vmem:[%s4894_s18 + $0x170] ss:$12 sps:$4 sm:$0xff]  }
  0x37   : > { %s3615_s18 = sshll.u32 %s4785_s21, 8 }
  0x38   : > { %s5038_s8 = scalar_lea.vmem [#allocation2], %s3615_s18 }
  0x39   : > { %3803 = vmatpush3.bf16.msra.mxu0 %v4614_v16  ;;  %4540 = vmatpush3.bf16.msra.mxu1 %v4614_v16 }
  0x3a   : > { %3804 = vmatprep.subr.bf16.mxu0 %v4615_v17  ;;  %4533 = vmatprep.subr.bf16.mxu1 %v4615_v17 }
  0x3d   : > { %3805 = vmatpush3.bf16.msra.mxu0 %v4616_v18  ;;  %4541 = vmatpush3.bf16.msra.mxu1 %v4616_v18 }
  0x3e   : > { %4334 = vmatprep.subr.bf16.mxu1 %v4623_v19 }
  0x40   : > { %874 = vmatmul.mubr.bf16.vlgmr.msra.gmra.mxu0 %v4617_v20  ;;  %970 = vmatmul.mubr.bf16.vlgmr.msra.gmra.mxu1 %v4620_v21 }
  0x41   : > { %4335 = vmatpush3.bf16.msra.mxu1 %v4623_v19  ;;  %881 = vmatprep.mubr.bf16.mxu0 %v4625_v22 }
  0x42   : > { %4336 = vmatprep.subr.bf16.mxu1 %v4624_v23  ;;  %977 = vmatprep.mubr.bf16.mxu1 %v4627_v24 }
  0x45   : > { %4337 = vmatpush3.bf16.msra.mxu1 %v4624_v23 }
  0x46   : > { %4338 = vmatprep.subr.bf16.mxu1 %v4631_v26 }
  0x48   : > { %882 = vmatmul.mubr.bf16.gmra.mxu0 %v4629_v25  ;;  %978 = vmatmul.mubr.bf16.gmra.mxu1 %v4630_v27 }
  0x49   : > { %4339 = vmatpush3.bf16.msra.mxu1 %v4631_v26  ;;  %889 = vmatprep.mubr.bf16.mxu0 %v4633_v29 }
  0x4a   : > { %4340 = vmatprep.subr.bf16.mxu1 %v4632_v28  ;;  %985 = vmatprep.mubr.bf16.mxu1 %v4635_v30 }
  0x4d   : > { %4341 = vmatpush3.bf16.msra.mxu1 %v4632_v28 }
  0x4e   : > { %4342 = vmatprep.subr.bf16.mxu1 %v4639_v31 }
  0x50   : > { %890 = vmatmul.mubr.bf16.gmra.mxu0 %v4637_v32  ;;  %986 = vmatmul.mubr.bf16.gmra.mxu1 %v4638_v33 }
  0x51   : > { %4343 = vmatpush3.bf16.msra.mxu1 %v4639_v31  ;;  %897 = vmatprep.mubr.bf16.mxu0 %v4641_v35 }
  0x52   : > { %4344 = vmatprep.subr.bf16.mxu1 %v4640_v34  ;;  %993 = vmatprep.mubr.bf16.mxu1 %v4643_v36 }
  0x55   : > { %4345 = vmatpush3.bf16.msra.mxu1 %v4640_v34 }
  0x56   : > { %4346 = vmatprep.subr.bf16.mxu1 %v4647_v37 }
  0x58   : > { %898 = vmatmul.mubr.bf16.gmra.mxu0 %v4645_v38  ;;  %994 = vmatmul.mubr.bf16.gmra.mxu1 %v4646_v39 }
  0x59   : > { %4347 = vmatpush3.bf16.msra.mxu1 %v4647_v37  ;;  %905 = vmatprep.mubr.bf16.mxu0 %v4649_v40 }
  0x5a   : > { %4348 = vmatprep.subr.bf16.mxu1 %v4648_v41  ;;  %4350 = vmatprep.mubr.bf16.mxu1 %v4651_v42 }
  0x5d   : > { %4349 = vmatpush3.bf16.msra.mxu1 %v4648_v41 }
  0x60   : > { %906 = vmatmul.mubr.bf16.gmra.mxu0 %v4652_v43  ;;  %4351 = vmatmul.mubr.bf16.vlgmr.msra.gmra.mxu1 %v4653_v44 }
  0x61   : > { %913 = vmatprep.mubr.bf16.mxu0 %v4654_v45  ;;  %4354 = vmatprep.mubr.bf16.mxu1 %v4656_v46 }
  0x68   : > { %914 = vmatmul.mubr.bf16.gmra.mxu0 %v4657_v47  ;;  %4355 = vmatmul.mubr.bf16.gmra.mxu1 %v4658_v48 }
  0x69   : > { %921 = vmatprep.mubr.bf16.mxu0 %v4659_v49  ;;  %4358 = vmatprep.mubr.bf16.mxu1 %v4661_v50 }
  0x70   : > { %922 = vmatmul.mubr.bf16.gmra.mxu0 %v4662_v51  ;;  %4359 = vmatmul.mubr.bf16.gmra.mxu1 %v4663_v52 }
  0x71   : > { %929 = vmatprep.mubr.bf16.mxu0 %v4664_v53  ;;  %4362 = vmatprep.mubr.bf16.mxu1 %v4666_v54 }
  0x78   : > { %930 = vmatmul.mubr.bf16.gmra.mxu0 %v4667_v55  ;;  %4363 = vmatmul.mubr.bf16.gmra.mxu1 %v4668_v56 }
  0x79   : > { %937 = vmatprep.mubr.bf16.mxu0 %v4669_v57  ;;  %4366 = vmatprep.mubr.bf16.mxu1 %v4671_v58 }
  0x80   : > { %938 = vmatmul.mubr.bf16.gmra.mxu0 %v4672_v59  ;;  %4367 = vmatmul.mubr.bf16.gmra.mxu1 %v4673_v60 }
  0x81   : > { %945 = vmatprep.mubr.bf16.mxu0 %v4674_v61  ;;  %4370 = vmatprep.mubr.bf16.mxu1 %v4676_v62 }
  0x88   : > { %946 = vmatmul.mubr.bf16.gmra.mxu0 %v4677_v63  ;;  %4371 = vmatmul.mubr.bf16.gmra.mxu1 %v4678_v0 }
  0x89   : > { %953 = vmatprep.mubr.bf16.mxu0 %v4679_v1  ;;  %4374 = vmatprep.mubr.bf16.mxu1 %v4681_v2 }
  0x90   : > { %954 = vmatmul.mubr.bf16.gmra.mxu0 %v4682_v3  ;;  %4375 = vmatmul.mubr.bf16.gmra.mxu1 %v4683_v4 }
  0x91   : > { %961 = vmatprep.mubr.bf16.mxu0 %v4684_v5  ;;  %4378 = vmatprep.mubr.bf16.mxu1 %v4686_v6 }
  0x98   : > { %962 = vmatmul.mubr.bf16.gmra.mxu0 %v4687_v7  ;;  %4379 = vmatmul.mubr.bf16.gmra.mxu1 %v4688_v8 }
 0x100   : > { %v3806_v9 = vpop.f32.mrf.mxu0  ;;  %v3878_v10 = vpop.f32.mrf.mxu1 }
 0x102   : > { %v3807_v11 = vpop.f32.mrf.mxu0  ;;  %v3879_v12 = vpop.f32.mrf.mxu1 }
 0x103   : > { %v5017_v13 = vadd.f32 %v3879_v12, %v3878_v10  ;;  %v3808_v50 = vadd.f32 %v3807_v11, %v3806_v9 }
 0x104   : > { %v3809_v14 = vpop.f32.mrf.mxu0  ;;  %v3881_v15 = vpop.f32.mrf.mxu1 }
 0x106   : > { %v3810_v16 = vpop.f32.mrf.mxu0  ;;  %v3882_v17 = vpop.f32.mrf.mxu1 }
 0x107   : > { %v5019_v18 = vadd.f32 %v3882_v17, %v3881_v15  ;;  %v3811_v58 = vadd.f32 %v3810_v16, %v3809_v14 }
 0x108   : > { %v3812_v19 = vpop.f32.mrf.mxu0  ;;  %v3884_v20 = vpop.f32.mrf.mxu1 }
 0x10a   : > { %v3813_v21 = vpop.f32.mrf.mxu0  ;;  %v3885_v22 = vpop.f32.mrf.mxu1 }
 0x10b   : > { %v5021_v23 = vadd.f32 %v3885_v22, %v3884_v20  ;;  %v3814_v47 = vadd.f32 %v3813_v21, %v3812_v19 }
 0x10c   : > { %v3815_v24 = vpop.f32.mrf.mxu0  ;;  %v3887_v25 = vpop.f32.mrf.mxu1 }
 0x10e   : > { %v3816_v26 = vpop.f32.mrf.mxu0  ;;  %v3888_v27 = vpop.f32.mrf.mxu1 }
 0x10f   : > { %v5023_v28 = vadd.f32 %v3888_v27, %v3887_v25  ;;  %v3817_v54 = vadd.f32 %v3816_v26, %v3815_v24 }
 0x110   : > { %v3818_v29 = vpop.f32.mrf.mxu0  ;;  %v3890_v30 = vpop.f32.mrf.mxu1 }
 0x112   : > { %v3819_v31 = vpop.f32.mrf.mxu0  ;;  %v3891_v32 = vpop.f32.mrf.mxu1 }
 0x113   : > { %v5025_v33 = vadd.f32 %v3891_v32, %v3890_v30  ;;  %v3820_v6 = vadd.f32 %v3819_v31, %v3818_v29 }
 0x114   : > { %v3821_v34 = vpop.f32.mrf.mxu0  ;;  %v3893_v35 = vpop.f32.mrf.mxu1 }
 0x116   : > { %v3822_v36 = vpop.f32.mrf.mxu0  ;;  %v3894_v37 = vpop.f32.mrf.mxu1 }
 0x117   : > { %v5027_v38 = vadd.f32 %v3894_v37, %v3893_v35  ;;  %v3823_v22 = vadd.f32 %v3822_v36, %v3821_v34 }
 0x118   : > { %v3824_v39 = vpop.f32.mrf.mxu0  ;;  %v5029_v40 = vpop.f32.mrf.mxu1 }
 0x11a   : > { %v3825_v41 = vpop.f32.mrf.mxu0  ;;  %v5031_v42 = vpop.f32.mrf.mxu1 }
 0x11b   : > { %v3826_v62 = vadd.f32 %v3825_v41, %v3824_v39 }
 0x11c   : > { %v3827_v43 = vpop.f32.mrf.mxu0  ;;  %v5033_v44 = vpop.f32.mrf.mxu1 }
 0x11e   : > { %v3828_v45 = vpop.f32.mrf.mxu0  ;;  %v5036_v46 = vpop.f32.mrf.mxu1 }
 0x11f   : > { %v3829_v9 = vadd.f32 %v3828_v45, %v3827_v43 }
 0x120   : > { %v3830_v48 = vpop.f32.mrf.mxu0  ;;  %v4352_v49 = vpop.f32.mrf.mxu1 }
 0x121   : > { %v1045_v51 = vadd.f32 %v4352_v49, %v3814_v47 }
 0x122   : > { %v3831_v52 = vpop.f32.mrf.mxu0  ;;  %v1036_v53 = vpop.f32.mrf.mxu1 }
 0x123   : > { %1167 = vst [vmem:[%s5038_s8 + $0x10] sm:$0xff] %v1045_v51  ;;  %v1037_v55 = vadd.f32 %v3808_v50, %v1036_v53  ;;  %v1240_v10 = vmul.f32 %v1045_v51, %v1045_v51  ;;  %v3832_v37 = vadd.f32 %v3831_v52, %v3830_v48 }
 0x124   : > { %v3833_v56 = vpop.f32.mrf.mxu0  ;;  %v4353_v57 = vpop.f32.mrf.mxu1 }
 0x125   : > { %1165 = vst [vmem:[%s5038_s8] sm:$0xff] %v1037_v55  ;;  %v1048_v59 = vadd.f32 %v4353_v57, %v3817_v54  ;;  %v1238_v2 = vmul.f32 %v1037_v55, %v1037_v55 }
 0x126   : > { %v3834_v60 = vpop.f32.mrf.mxu0  ;;  %v1039_v61 = vpop.f32.mrf.mxu1 }
 0x127   : > { %1168 = vst [vmem:[%s5038_s8 + $0x18] sm:$0xff] %v1048_v59  ;;  %v1040_v63 = vadd.f32 %v3811_v58, %v1039_v61  ;;  %v1241_v17 = vmul.f32 %v1048_v59, %v1048_v59  ;;  %v3835_v57 = vadd.f32 %v3834_v60, %v3833_v56 }
 0x128   : > { %v3836_v0 = vpop.f32.mrf.mxu0  ;;  %v4356_v1 = vpop.f32.mrf.mxu1 }
 0x129   : > { %1166 = vst [vmem:[%s5038_s8 + $0x8] sm:$0xff] %v1040_v63  ;;  %v1198_v3 = vadd.f32 %v1040_v63, %v1037_v55  ;;  %v1239_v4 = vmul.f32 %v1040_v63, %v1040_v63  ;;  %v1061_v5 = vadd.f32 %v4356_v1, %v3826_v62 }
 0x12a   : > { %v3837_v7 = vpop.f32.mrf.mxu0  ;;  %v1052_v8 = vpop.f32.mrf.mxu1 }
 0x12b   : > { %v1199_v11 = vadd.f32 %v1198_v3, %v1045_v51  ;;  %v1270_v12 = vadd.f32 %v1239_v4, %v1238_v2  ;;  %1171 = vst [vmem:[%s5038_s8 + $0x30] sm:$0xff] %v1061_v5  ;;  %v1053_v14 = vadd.f32 %v3820_v6, %v1052_v8  ;;  %v3838_v26 = vadd.f32 %v3837_v7, %v3836_v0 }
 0x12c   : > { %v3839_v15 = vpop.f32.mrf.mxu0  ;;  %v4357_v16 = vpop.f32.mrf.mxu1  ;;  %v1244_v50 = vmul.f32 %v1061_v5, %v1061_v5 }
 0x12d   : > { %v1271_v19 = vadd.f32 %v1270_v12, %v1240_v10  ;;  %v1200_v20 = vadd.f32 %v1199_v11, %v1048_v59  ;;  %v1064_v21 = vadd.f32 %v4357_v16, %v3829_v9  ;;  %1169 = vst [vmem:[%s5038_s8 + $0x20] sm:$0xff] %v1053_v14  ;;  %v1242_v29 = vmul.f32 %v1053_v14, %v1053_v14 }
 0x12e   : > { %v3840_v24 = vpop.f32.mrf.mxu0  ;;  %v1055_v25 = vpop.f32.mrf.mxu1 }
 0x12f   : > { %v1201_v27 = vadd.f32 %v1200_v20, %v1053_v14  ;;  %v1272_v30 = vadd.f32 %v1271_v19, %v1241_v17  ;;  %1172 = vst [vmem:[%s5038_s8 + $0x38] sm:$0xff] %v1064_v21  ;;  %v1056_v31 = vadd.f32 %v3823_v22, %v1055_v25  ;;  %v3841_v47 = vadd.f32 %v3840_v24, %v3839_v15 }
 0x130   : > { %v3842_v32 = vpop.f32.mrf.mxu0  ;;  %v4360_v35 = vpop.f32.mrf.mxu1  ;;  %v1245_v52 = vmul.f32 %v1064_v21, %v1064_v21 }
 0x131   : > { %v1273_v39 = vadd.f32 %v1272_v30, %v1242_v29  ;;  %v1077_v41 = vadd.f32 %v4360_v35, %v3838_v26  ;;  %1170 = vst [vmem:[%s5038_s8 + $0x28] sm:$0xff] %v1056_v31  ;;  %v1202_v43 = vadd.f32 %v1201_v27, %v1056_v31  ;;  %v1243_v45 = vmul.f32 %v1056_v31, %v1056_v31 }
 0x132   : > { %v3843_v34 = vpop.f32.mrf.mxu0  ;;  %v1068_v36 = vpop.f32.mrf.mxu1 }
 0x133   : > { %1175 = vst [vmem:[%s5038_s8 + $0x50] sm:$0xff] %v1077_v41  ;;  %v1069_v49 = vadd.f32 %v3832_v37, %v1068_v36  ;;  %v1203_v51 = vadd.f32 %v1202_v43, %v1061_v5  ;;  %v1274_v53 = vadd.f32 %v1273_v39, %v1243_v45  ;;  %v3844_v5 = vadd.f32 %v3843_v34, %v3842_v32 }
 0x134   : > { %v3845_v54 = vpop.f32.mrf.mxu0  ;;  %v4361_v55 = vpop.f32.mrf.mxu1  ;;  %v1248_v11 = vmul.f32 %v1077_v41, %v1077_v41 }
 0x135   : > { %1173 = vst [vmem:[%s5038_s8 + $0x40] sm:$0xff] %v1069_v49  ;;  %v1080_v48 = vadd.f32 %v4361_v55, %v3841_v47  ;;  %v1275_v58 = vadd.f32 %v1274_v53, %v1244_v50  ;;  %v1204_v59 = vadd.f32 %v1203_v51, %v1064_v21  ;;  %v1246_v1 = vmul.f32 %v1069_v49, %v1069_v49 }
 0x136   : > { %v3846_v61 = vpop.f32.mrf.mxu0  ;;  %v1071_v62 = vpop.f32.mrf.mxu1 }
 0x137   : > { %1176 = vst [vmem:[%s5038_s8 + $0x58] sm:$0xff] %v1080_v48  ;;  %v1072_v63 = vadd.f32 %v3835_v57, %v1071_v62  ;;  %v1205_v0 = vadd.f32 %v1204_v59, %v1069_v49  ;;  %v1276_v2 = vadd.f32 %v1275_v58, %v1245_v52  ;;  %v3847_v16 = vadd.f32 %v3846_v61, %v3845_v54 }
 0x138   : > { %v3848_v3 = vpop.f32.mrf.mxu0  ;;  %v4364_v4 = vpop.f32.mrf.mxu1  ;;  %v1249_v26 = vmul.f32 %v1080_v48, %v1080_v48 }
 0x139   : > { %1174 = vst [vmem:[%s5038_s8 + $0x48] sm:$0xff] %v1072_v63  ;;  %v1247_v6 = vmul.f32 %v1072_v63, %v1072_v63  ;;  %v1277_v56 = vadd.f32 %v1276_v2, %v1246_v1  ;;  %v1206_v60 = vadd.f32 %v1205_v0, %v1072_v63 }
 0x13a   : > { %v3849_v7 = vpop.f32.mrf.mxu0  ;;  %v1084_v8 = vpop.f32.mrf.mxu1 }
 0x13b   : > { %v3850_v9 = vadd.f32 %v3849_v7, %v3848_v3  ;;  %v1085_v10 = vadd.f32 %v3844_v5, %v1084_v8  ;;  %v1278_v12 = vadd.f32 %v1277_v56, %v1247_v6  ;;  %v1207_v17 = vadd.f32 %v1206_v60, %v1077_v41 }
 0x13c   : > { %v3851_v14 = vpop.f32.mrf.mxu0  ;;  %v4365_v15 = vpop.f32.mrf.mxu1 }
 0x13d   : > { %v1093_v19 = vadd.f32 %v4364_v4, %v3850_v9  ;;  %1177 = vst [vmem:[%s5038_s8 + $0x60] sm:$0xff] %v1085_v10  ;;  %v1279_v20 = vadd.f32 %v1278_v12, %v1248_v11  ;;  %v1208_v30 = vadd.f32 %v1207_v17, %v1080_v48  ;;  %v1250_v41 = vmul.f32 %v1085_v10, %v1085_v10 }
 0x13e   : > { %v3852_v21 = vpop.f32.mrf.mxu0  ;;  %v1087_v22 = vpop.f32.mrf.mxu1 }
 0x13f   : > { %1179 = vst [vmem:[%s5038_s8 + $0x70] sm:$0xff] %v1093_v19  ;;  %v3853_v24 = vadd.f32 %v3852_v21, %v3851_v14  ;;  %v1088_v25 = vadd.f32 %v3847_v16, %v1087_v22  ;;  %v1280_v32 = vadd.f32 %v1279_v20, %v1249_v26  ;;  %v1209_v34 = vadd.f32 %v1208_v30, %v1085_v10 }
 0x140   : > { %v3854_v27 = vpop.f32.mrf.mxu0  ;;  %v4368_v29 = vpop.f32.mrf.mxu1  ;;  %v1252_v62 = vmul.f32 %v1093_v19, %v1093_v19  ;;  %v3898_v30 = vadd.f32 %v5031_v42, %v5029_v40  ;;  %v3901_v42 = vadd.f32 %v5036_v46, %v5033_v44 }
 0x141   : > { %v1096_v31 = vadd.f32 %v4365_v15, %v3853_v24  ;;  %1178 = vst [vmem:[%s5038_s8 + $0x68] sm:$0xff] %v1088_v25  ;;  %v1281_v47 = vadd.f32 %v1280_v32, %v1250_v41  ;;  %v1251_v49 = vmul.f32 %v1088_v25, %v1088_v25  ;;  %v1210_v57 = vadd.f32 %v1209_v34, %v1088_v25 }
 0x142   : > { %v3855_v35 = vpop.f32.mrf.mxu0  ;;  %v1100_v37 = vpop.f32.mrf.mxu1 }
 0x143   : > { %1180 = vst [vmem:[%s5038_s8 + $0x78] sm:$0xff] %v1096_v31  ;;  %v3856_v39 = vadd.f32 %v3855_v35, %v3854_v27  ;;  %v1282_v52 = vadd.f32 %v1281_v47, %v1251_v49  ;;  %v1211_v1 = vadd.f32 %v1210_v57, %v1093_v19  ;;  %v1253_v56 = vmul.f32 %v1096_v31, %v1096_v31 }
 0x144   : > { %v3857_v43 = vpop.f32.mrf.mxu0  ;;  %v4369_v45 = vpop.f32.mrf.mxu1 }
 0x145   : > { %v1101_v36 = vadd.f32 %v3856_v39, %v1100_v37  ;;  %v1283_v3 = vadd.f32 %v1282_v52, %v1252_v62  ;;  %v1212_v8 = vadd.f32 %v1211_v1, %v1096_v31 }
 0x146   : > { %v3858_v50 = vpop.f32.mrf.mxu0  ;;  %v1103_v51 = vpop.f32.mrf.mxu1 }
 0x147   : > { %1181 = vst [vmem:[%s5038_s8 + $0x80] sm:$0xff] %v1101_v36  ;;  %v3859_v53 = vadd.f32 %v3858_v50, %v3857_v43  ;;  %v1254_v11 = vmul.f32 %v1101_v36, %v1101_v36  ;;  %v1284_v12 = vadd.f32 %v1283_v3, %v1253_v56  ;;  %v1213_v22 = vadd.f32 %v1212_v8, %v1101_v36 }
 0x148   : > { %v3860_v54 = vpop.f32.mrf.mxu0  ;;  %v5057_v55 = vpop.f32.mrf.mxu1 }
 0x149   : > { %v1104_v48 = vadd.f32 %v3859_v53, %v1103_v51  ;;  %v1285_v25 = vadd.f32 %v1284_v12, %v1254_v11 }
 0x14a   : > { %v3861_v58 = vpop.f32.mrf.mxu0  ;;  %v1116_v59 = vpop.f32.mrf.mxu1 }
 0x14b   : > { %1182 = vst [vmem:[%s5038_s8 + $0x88] sm:$0xff] %v1104_v48  ;;  %v3862_v61 = vadd.f32 %v3861_v58, %v3860_v54  ;;  %v1255_v17 = vmul.f32 %v1104_v48, %v1104_v48  ;;  %v1214_v31 = vadd.f32 %v1213_v22, %v1104_v48 }
 0x14c   : > { %v3863_v63 = vpop.f32.mrf.mxu0  ;;  %v5060_v0 = vpop.f32.mrf.mxu1 }
 0x14d   : > { %v1109_v2 = vadd.f32 %v4368_v29, %v3862_v61  ;;  %v1286_v32 = vadd.f32 %v1285_v25, %v1255_v17 }
 0x14e   : > { %v3864_v4 = vpop.f32.mrf.mxu0  ;;  %v1119_v5 = vpop.f32.mrf.mxu1 }
 0x14f   : > { %1183 = vst [vmem:[%s5038_s8 + $0x90] sm:$0xff] %v1109_v2  ;;  %v3865_v6 = vadd.f32 %v3864_v4, %v3863_v63  ;;  %v1256_v26 = vmul.f32 %v1109_v2, %v1109_v2  ;;  %v1215_v41 = vadd.f32 %v1214_v31, %v1109_v2 }
 0x150   : > { %v3866_v60 = vpop.f32.mrf.mxu0  ;;  %v4376_v7 = vpop.f32.mrf.mxu1 }
 0x151   : > { %v1112_v9 = vadd.f32 %v4369_v45, %v3865_v6  ;;  %v5064_v10 = vadd.f32 %v4376_v7, %v5021_v23  ;;  %v1287_v34 = vadd.f32 %v1286_v32, %v1256_v26 }
 0x152   : > { %v3867_v14 = vpop.f32.mrf.mxu0  ;;  %v1132_v15 = vpop.f32.mrf.mxu1 }
 0x153   : > { %1184 = vst [vmem:[%s5038_s8 + $0x98] sm:$0xff] %v1112_v9  ;;  %1191 = vst [vmem:[%s5038_s8 + $0xd0] sm:$0xff] %v5064_v10  ;;  %v3868_v16 = vadd.f32 %v3867_v14, %v3866_v60  ;;  %v1133_v19 = vadd.f32 %v5017_v13, %v1132_v15  ;;  %v1257_v35 = vmul.f32 %v1112_v9, %v1112_v9 }
 0x154   : > { %v3869_v20 = vpop.f32.mrf.mxu0  ;;  %v4377_v21 = vpop.f32.mrf.mxu1  ;;  %v1216_v47 = vadd.f32 %v1215_v41, %v1112_v9  ;;  %v1264_v11 = vmul.f32 %v5064_v10, %v5064_v10 }
 0x155   : > { %v1117_v24 = vadd.f32 %v3868_v16, %v1116_v59  ;;  %v5071_v23 = vadd.f32 %v4377_v21, %v5023_v28  ;;  %1189 = vst [vmem:[%s5038_s8 + $0xc0] sm:$0xff] %v1133_v19  ;;  %v1262_v6 = vmul.f32 %v1133_v19, %v1133_v19 }
 0x156   : > { %v3870_v27 = vpop.f32.mrf.mxu0  ;;  %v1135_v29 = vpop.f32.mrf.mxu1 }
 0x157   : > { %1185 = vst [vmem:[%s5038_s8 + $0xa0] sm:$0xff] %v1117_v24  ;;  %1192 = vst [vmem:[%s5038_s8 + $0xd8] sm:$0xff] %v5071_v23  ;;  %v3871_v13 = vadd.f32 %v3870_v27, %v3869_v20  ;;  %v1136_v28 = vadd.f32 %v5019_v18, %v1135_v29  ;;  %v1258_v49 = vmul.f32 %v1117_v24, %v1117_v24 }
 0x158   : > { %v3872_v37 = vpop.f32.mrf.mxu0  ;;  %v4380_v39 = vpop.f32.mrf.mxu1  ;;  %v1288_v18 = vadd.f32 %v1287_v34, %v1257_v35  ;;  %v1217_v57 = vadd.f32 %v1216_v47, %v1117_v24 }
 0x159   : > { %v1120_v43 = vadd.f32 %v3871_v13, %v1119_v5  ;;  %v1157_v45 = vadd.f32 %v4380_v39, %v3898_v30  ;;  %1190 = vst [vmem:[%s5038_s8 + $0xc8] sm:$0xff] %v1136_v28  ;;  %v1263_v7 = vmul.f32 %v1136_v28, %v1136_v28 }
 0x15a   : > { %v3873_v36 = vpop.f32.mrf.mxu0  ;;  %v1148_v40 = vpop.f32.mrf.mxu1  ;;  %v1289_v59 = vadd.f32 %v1288_v18, %v1258_v49 }
 0x15b   : > { %1186 = vst [vmem:[%s5038_s8 + $0xa8] sm:$0xff] %v1120_v43  ;;  %1195 = vst [vmem:[%s5038_s8 + $0xf0] sm:$0xff] %v1157_v45  ;;  %v3874_v50 = vadd.f32 %v3873_v36, %v3872_v37  ;;  %v1149_v51 = vadd.f32 %v5025_v33, %v1148_v40  ;;  %v1259_v48 = vmul.f32 %v1120_v43, %v1120_v43  ;;  %v1237_v40 = vld [vmem:[#allocation4] sm:$0x1] }
 0x15c   : > { %v3875_v53 = vpop.f32.mrf.mxu0  ;;  %v4381_v54 = vpop.f32.mrf.mxu1  ;;  %v1218_v61 = vadd.f32 %v1217_v57, %v1120_v43  ;;  %v1268_v24 = vmul.f32 %v1157_v45, %v1157_v45  ;;  %v1197_v43 = vld [vmem:[#allocation3] sm:$0x1] }
 0x15d   : > { %v1125_v52 = vadd.f32 %v5057_v55, %v3874_v50  ;;  %v1160_v58 = vadd.f32 %v4381_v54, %v3901_v42  ;;  %1193 = vst [vmem:[%s5038_s8 + $0xe0] sm:$0xff] %v1149_v51  ;;  %v1290_v1 = vadd.f32 %v1289_v59, %v1259_v48  ;;  %v1266_v16 = vmul.f32 %v1149_v51, %v1149_v51 }
 0x15e   : > { %v3876_v44 = vpop.f32.mrf.mxu0  ;;  %v1151_v46 = vpop.f32.mrf.mxu1 }
 0x15f   : > { %1187 = vst [vmem:[%s5038_s8 + $0xb0] sm:$0xff] %v1125_v52  ;;  %v1260_v62 = vmul.f32 %v1125_v52, %v1125_v52  ;;  %1196 = vst [vmem:[%s5038_s8 + $0xf8] sm:$0xff] %v1160_v58  ;;  %v3877_v63 = vadd.f32 %v3876_v44, %v3875_v53  ;;  %v1152_v33 = vadd.f32 %v5027_v38, %v1151_v46 }
 0x160   : > { %v1219_v2 = vadd.f32 %v1218_v61, %v1125_v52  ;;  %v1269_v27 = vmul.f32 %v1160_v58, %v1160_v58 }
 0x161   : > { %v1128_v3 = vadd.f32 %v5060_v0, %v3877_v63  ;;  %1194 = vst [vmem:[%s5038_s8 + $0xe8] sm:$0xff] %v1152_v33  ;;  %v1291_v4 = vadd.f32 %v1290_v1, %v1260_v62  ;;  %v1265_v0 = vmul.f32 %v5071_v23, %v5071_v23  ;;  %v1267_v21 = vmul.f32 %v1152_v33, %v1152_v33 }
 0x163   : > { %1188 = vst [vmem:[%s5038_s8 + $0xb8] sm:$0xff] %v1128_v3  ;;  %v1220_v55 = vadd.f32 %v1219_v2, %v1128_v3  ;;  %v1261_v5 = vmul.f32 %v1128_v3, %v1128_v3 }
 0x165   : > { %v1221_v56 = vadd.f32 %v1220_v55, %v1133_v19  ;;  %v1292_v60 = vadd.f32 %v1291_v4, %v1261_v5 }
 0x167   : > { %v1222_v8 = vadd.f32 %v1221_v56, %v1136_v28  ;;  %v1293_v9 = vadd.f32 %v1292_v60, %v1262_v6 }
 0x169   : > { %v1294_v12 = vadd.f32 %v1293_v9, %v1263_v7  ;;  %v1223_v38 = vadd.f32 %v1222_v8, %v5064_v10 }
 0x16b   : > { %v1224_v14 = vadd.f32 %v1223_v38, %v5071_v23  ;;  %v1295_v15 = vadd.f32 %v1294_v12, %v1264_v11 }
 0x16d   : > { %v1225_v17 = vadd.f32 %v1224_v14, %v1149_v51  ;;  %v1296_v20 = vadd.f32 %v1295_v15, %v1265_v0 }
 0x16f   : > { %v1226_v19 = vadd.f32 %v1225_v17, %v1152_v33  ;;  %v1297_v22 = vadd.f32 %v1296_v20, %v1266_v16 }
 0x171   : > { %v1227_v25 = vadd.f32 %v1226_v19, %v1157_v45  ;;  %v1298_v26 = vadd.f32 %v1297_v22, %v1267_v21 }
 0x173   : > { %v1228_v29 = vadd.f32 %v1227_v25, %v1160_v58  ;;  %v1299_v30 = vadd.f32 %v1298_v26, %v1268_v24 }
 0x175   : > { %v1229_v31 = vrot.slane %v1228_v29, 4  ;;  %v1300_v10 = vadd.f32 %v1299_v30, %v1269_v27 }
 0x177   : > { %v1230_v13 = vadd.f32 %v1229_v31, %v1228_v29  ;;  %v1301_v32 = vrot.slane %v1300_v10, 4 }
 0x179   : > { %v1231_v35 = vrot.slane %v1230_v13, 2  ;;  %v1302_v28 = vadd.f32 %v1301_v32, %v1300_v10 }
 0x17b   : > { %v1232_v23 = vadd.f32 %v1231_v35, %v1230_v13  ;;  %v1303_v37 = vrot.slane %v1302_v28, 2 }
 0x17d   : > { %v1233_v39 = vrot.slane %v1232_v23, 1  ;;  %v1304_v41 = vadd.f32 %v1303_v37, %v1302_v28 }
 0x17f   : > { %v1234_v34 = vadd.f32 %v1233_v39, %v1232_v23  ;;  %v1305_v36 = vrot.slane %v1304_v41, 1 }
 0x181   : > { %v1235_v42 = vadd.f32 %v1234_v34, %v1197_v43  ;;  %v1306_v45 = vadd.f32 %v1305_v36, %v1304_v41 }
 0x183   : > { %1236 = vst [vmem:[#allocation3] sm:$0x1] %v1235_v42  ;;  %v1307_v47 = vadd.f32 %v1306_v45, %v1237_v40 }
 0x185   : > { %1308 = vst [vmem:[#allocation4] sm:$0x1] %v1307_v47 }
 0x186 PF: > { %p3616_p11 = scmp.ne.s32.totalorder %s4789_s22, 1 }
 0x188   : > { %1312 = sbr.rel (%p3616_p11) target bundleno = 929 (0x3a1), region = 56 }
 0x18d   : > { %v4689_v49 = vld [vmem:[%s6182_s3 + $0x138] sm:$0xff]   ;;  %v4691_v18 = vld [vmem:[%s6182_s3 + $0x130] sm:$0xff]   ;;  %v4693_v53 = vld [vmem:[%s6182_s3 + $0x128] sm:$0xff]   ;;  %v1361_v60 = vlaneseq  ;;  %s3617_s14 = sshll.u32 %s4785_s21, 8  ;;  %vm2609_vm0 = vcmask 1040384   ;;  %vm3285_vm1 = vcmask 1046528  }
 0x18e   : > { %v4690_v50 = vld [vmem:[%s6182_s3 + $0xf8] sm:$0xff]   ;;  %3926 = vmatprep.subr.bf16.mxu0 %v4689_v49  ;;  %4542 = vmatprep.subr.bf16.mxu1 %v4689_v49  ;;  %v4692_v51 = vld [vmem:[%s6182_s3 + $0xf0] sm:$0xff]   ;;  %v4694_v54 = vld [vmem:[%s6182_s3 + $0xe8] sm:$0xff]   ;;  %s5168_s20 = scalar_lea.vmem [#allocation2], %s3617_s14 }
 0x18f   : > { %3927 = vmatpush3.bf16.msra.mxu0 %v4690_v50  ;;  %4550 = vmatpush3.bf16.msra.mxu1 %v4690_v50  ;;  %v4695_v57 = vld [vmem:[%s6182_s3 + $0x120] sm:$0xff]   ;;  %v4697_v52 = vld [vmem:[%s6182_s3 + $0x118] sm:$0xff]   ;;  %v4699_v44 = vld [vmem:[%s6182_s3 + $0x110] sm:$0xff]   ;;  %v1362_v7 = vshrl.u32 %v1361_v60, 7 }
 0x190   : > { %3928 = vmatprep.subr.bf16.mxu0 %v4691_v18  ;;  %4543 = vmatprep.subr.bf16.mxu1 %v4691_v18  ;;  %v4696_v48 = vld [vmem:[%s6182_s3 + $0xe0] sm:$0xff]   ;;  %v4698_v58 = vld [vmem:[%s6182_s3 + $0xd8] sm:$0xff]   ;;  %v4700_v63 = vld [vmem:[%s6182_s3 + $0xd0] sm:$0xff]  }
 0x191   : > { %v1313_v46 = vld [vmem:[#allocation3] sm:$0x1]  ;;  %v1315_v59 = vld [vmem:[#allocation4] sm:$0x1]  ;;  %v4701_v1 = vld [vmem:[%s6182_s3 + $0x108] sm:$0xff]   ;;  %v1363_v9 = vsub.s32 0, %v1362_v7 }
 0x192   : > { %v1314_v61 = vmul.f32 0.001953125, %v1313_v46  ;;  %v1316_v62 = vmul.f32 0.001953125, %v1315_v59  ;;  %v4702_v3 = vld [vmem:[%s6182_s3 + $0xc8] sm:$0xff]   ;;  %v4703_v55 = vld [vmem:[%s6182_s3 + $0x100] sm:$0xff]   ;;  %v5152_v6 = vld [vmem:[%s6182_s3 + $0xb8] sm:$0xff]  }
 0x193   : > { %3929 = vmatpush3.bf16.msra.mxu0 %v4692_v51  ;;  %4551 = vmatpush3.bf16.msra.mxu1 %v4692_v51  ;;  %v4704_v5 = vld [vmem:[%s6182_s3 + $0xc0] sm:$0xff]   ;;  %v5157_v56 = vld [vmem:[%s6182_s3 + $0x178] sm:$0xff]   ;;  %v1329_v0 = vld [vmem:[%s5168_s20 + $0x8] sm:$0xff] }
 0x194   : > { %3930 = vmatprep.subr.bf16.mxu0 %v4693_v53  ;;  %4544 = vmatprep.subr.bf16.mxu1 %v4693_v53  ;;  %v1317_v33 = vmul.f32 %v1314_v61, %v1314_v61  ;;  %v1319_v8 = vld [vmem:[%s6183_s4] sm:$0x1]  ;;  %v1353_v16 = vld [vmem:[%s5168_s20 + $0xc8] sm:$0xff]  ;;  %v1350_v17 = vld [vmem:[%s5168_s20 + $0xb0] sm:$0xff] }
 0x195   : > { %v1323_v12 = vld [vmem:[%s6184_s5] sm:$0x1]  ;;  %v1351_v20 = vld [vmem:[%s5168_s20 + $0xb8] sm:$0xff]  ;;  %v1330_v19 = vld [vmem:[%s5168_s20 + $0x10] sm:$0xff] }
 0x196   : > { %v1318_v2 = vsub.f32 %v1316_v62, %v1317_v33  ;;  %v1328_v38 = vld [vmem:[%s5168_s20] sm:$0xff]  ;;  %v1331_v21 = vld [vmem:[%s5168_s20 + $0x18] sm:$0xff]  ;;  %v1354_v22 = vld [vmem:[%s5168_s20 + $0xd0] sm:$0xff] }
 0x197   : > { %3931 = vmatpush3.bf16.msra.mxu0 %v4694_v54  ;;  %4552 = vmatpush3.bf16.msra.mxu1 %v4694_v54  ;;  %v1352_v14 = vld [vmem:[%s5168_s20 + $0xc0] sm:$0xff]  ;;  %v1355_v24 = vld [vmem:[%s5168_s20 + $0xd8] sm:$0xff]  ;;  %v1333_v29 = vld [vmem:[%s5168_s20 + $0x28] sm:$0xff] }
 0x198   : > { %3932 = vmatprep.subr.bf16.mxu0 %v4695_v57  ;;  %4545 = vmatprep.subr.bf16.mxu1 %v4695_v57  ;;  %v1320_v4 = vadd.f32 1e-06, %v1318_v2  ;;  %v1332_v27 = vld [vmem:[%s5168_s20 + $0x20] sm:$0xff]  ;;  %v1357_v35 = vld [vmem:[%s5168_s20 + $0xe8] sm:$0xff]  ;;  %v4707_v62 = vld [vmem:[%s6182_s3 + $0x170] sm:$0xff]  }
 0x199   : > { %v1356_v30 = vld [vmem:[%s5168_s20 + $0xe0] sm:$0xff] }
 0x19a   : > { %4761 = vrsqrt.f32 %v1320_v4 }
 0x19b   : > { %3933 = vmatpush3.bf16.msra.mxu0 %v4696_v48  ;;  %4553 = vmatpush3.bf16.msra.mxu1 %v4696_v48 }
 0x19c   : > { %3934 = vmatprep.subr.bf16.mxu0 %v4697_v52  ;;  %4546 = vmatprep.subr.bf16.mxu1 %v4697_v52 }
 0x19f   : > { %3935 = vmatpush3.bf16.msra.mxu0 %v4698_v58  ;;  %4554 = vmatpush3.bf16.msra.mxu1 %v4698_v58 }
 0x1a0   : > { %3936 = vmatprep.subr.bf16.mxu0 %v4699_v44  ;;  %4547 = vmatprep.subr.bf16.mxu1 %v4699_v44 }
 0x1a3   : > { %3937 = vmatpush3.bf16.msra.mxu0 %v4700_v63  ;;  %4555 = vmatpush3.bf16.msra.mxu1 %v4700_v63 }
 0x1a4   : > { %3938 = vmatprep.subr.bf16.mxu0 %v4701_v1  ;;  %4548 = vmatprep.subr.bf16.mxu1 %v4701_v1  ;;  %v1334_v1 = vld [vmem:[%s5168_s20 + $0x30] sm:$0xff] }
 0x1a7   : > { %3939 = vmatpush3.bf16.msra.mxu0 %v4702_v3  ;;  %4556 = vmatpush3.bf16.msra.mxu1 %v4702_v3  ;;  %v4762_v11 = vpop.eup %4761 }
 0x1a8   : > { %3940 = vmatprep.subr.bf16.mxu0 %v4703_v55  ;;  %4549 = vmatprep.subr.bf16.mxu1 %v4703_v55  ;;  %v1322_v15 = vmul.f32 %v4762_v11, %v1319_v8 }
 0x1aa   : > { %v1324_v25 = vmul.f32 %v1322_v15, %v1314_v61  ;;  %v5180_v26 = vrot.slane %v1322_v15, %v1363_v9  ;;  %v1358_v15 = vld [vmem:[%s5168_s20 + $0xf0] sm:$0xff] }
 0x1ab   : > { %3941 = vmatpush3.bf16.msra.mxu0 %v4704_v5  ;;  %4557 = vmatpush3.bf16.msra.mxu1 %v4704_v5 }
 0x1ac   : > { %4430 = vmatprep.subr.bf16.mxu0 %v5152_v6  ;;  %4382 = vmatprep.subr.bf16.mxu1 %v5157_v56  ;;  %v1325_v31 = vsub.f32 %v1323_v12, %v1324_v25  ;;  %v1366_v10 = vmul.f32 %v5180_v26, %v1328_v38  ;;  %v1367_v13 = vmul.f32 %v5180_v26, %v1329_v0  ;;  %v4709_v38 = vld [vmem:[%s6182_s3 + $0xb0] sm:$0xff]  }
 0x1ad   : > { %v1390_v32 = vmul.f32 %v5180_v26, %v1352_v14  ;;  %v1391_v28 = vmul.f32 %v5180_v26, %v1353_v16  ;;  %v1388_v23 = vmul.f32 %v5180_v26, %v1350_v17  ;;  %v1389_v37 = vmul.f32 %v5180_v26, %v1351_v20  ;;  %v4708_v17 = vld [vmem:[%s6182_s3 + $0x168] sm:$0xff]  }
 0x1ae   : > { %v1368_v39 = vmul.f32 %v5180_v26, %v1330_v19  ;;  %v5193_v41 = vrot.slane %v1325_v31, %v1363_v9  ;;  %v1369_v43 = vmul.f32 %v5180_v26, %v1331_v21  ;;  %v1392_v34 = vmul.f32 %v5180_v26, %v1354_v22  ;;  %v1335_v9 = vld [vmem:[%s5168_s20 + $0x38] sm:$0xff]  ;;  %v4710_v31 = vld [vmem:[%s6182_s3 + $0x160] sm:$0xff]  }
 0x1af   : > { %v1393_v36 = vmul.f32 %v5180_v26, %v1355_v24  ;;  %v1370_v40 = vmul.f32 %v5180_v26, %v1332_v27  ;;  %v1371_v42 = vmul.f32 %v5180_v26, %v1333_v29  ;;  %v1394_v45 = vmul.f32 %v5180_v26, %v1356_v30  ;;  %v1359_v19 = vld [vmem:[%s5168_s20 + $0xf8] sm:$0xff]  ;;  %v4713_v27 = vld [vmem:[%s6182_s3 + $0xa8] sm:$0xff]  }
 0x1b0   : > { %v1395_v47 = vmul.f32 %v5180_v26, %v1357_v35  ;;  %v1404_v49 = vadd.f32 %v5193_v41, %v1366_v10  ;;  %v1405_v50 = vadd.f32 %v5193_v41, %v1367_v13  ;;  %v1428_v18 = vadd.f32 %v5193_v41, %v1390_v32  ;;  %v1336_v10 = vld [vmem:[%s5168_s20 + $0x40] sm:$0xff] }
 0x1b1   : > { %v1429_v51 = vadd.f32 %v5193_v41, %v1391_v28  ;;  %v1426_v53 = vadd.f32 %v5193_v41, %v1388_v23  ;;  %v1427_v54 = vadd.f32 %v5193_v41, %v1389_v37  ;;  %v1406_v57 = vadd.f32 %v5193_v41, %v1368_v39  ;;  %v1337_v28 = vld [vmem:[%s5168_s20 + $0x48] sm:$0xff] }
 0x1b2   : > { %v1407_v48 = vadd.f32 %v5193_v41, %v1369_v43  ;;  %v1436_v52 = vmax.f32 %v1404_v49, 0.0  ;;  %v1437_v58 = vmax.f32 %v1405_v50, 0.0  ;;  %v1460_v44 = vmax.f32 %v1428_v18, 0.0  ;;  %v4711_v43 = vld [vmem:[%s6182_s3 + $0x158] sm:$0xff]   ;;  %v4712_v18 = vld [vmem:[%s6182_s3 + $0x150] sm:$0xff]  }
 0x1b3   : > { %v1461_v46 = vmax.f32 %v1429_v51, 0.0  ;;  %v1458_v59 = vmax.f32 %v1426_v53, 0.0  ;;  %v1459_v61 = vmax.f32 %v1427_v54, 0.0  ;;  %v1438_v63 = vmax.f32 %v1406_v57, 0.0  ;;  %v1349_v53 = vld [vmem:[%s5168_s20 + $0xa8] sm:$0xff] }
 0x1b4   : > { %v1439_v33 = vmax.f32 %v1407_v48, 0.0  ;;  %v5214_v2 = vpack.c.bf16 %v1437_v58, %v1436_v52  ;;  %v1430_v4 = vadd.f32 %v5193_v41, %v1392_v34  ;;  %v1431_v55 = vadd.f32 %v5193_v41, %v1393_v36  ;;  %v4718_v36 = vld [vmem:[%s6182_s3 + $0xa0] sm:$0xff]   ;;  %v1338_v48 = vld [vmem:[%s5168_s20 + $0x50] sm:$0xff] }
 0x1b5   : > { %v5216_v3 = vpack.c.bf16 %v1461_v46, %v1460_v44  ;;  %v5220_v5 = vpack.c.bf16 %v1459_v61, %v1458_v59  ;;  %v1408_v7 = vadd.f32 %v5193_v41, %v1370_v40  ;;  %v1409_v8 = vadd.f32 %v5193_v41, %v1371_v42  ;;  %v1348_v40 = vld [vmem:[%s5168_s20 + $0xa0] sm:$0xff]  ;;  %v1339_v44 = vld [vmem:[%s5168_s20 + $0x58] sm:$0xff] }
 0x1b6   : > { %v5222_v60 = vpack.c.bf16 %v1439_v33, %v1438_v63  ;;  %1741 = vmatprep.mubr.bf16.mxu0 %v5214_v2  ;;  %v1462_v11 = vmax.f32 %v1430_v4, 0.0  ;;  %v1463_v12 = vmax.f32 %v1431_v55, 0.0  ;;  %v1432_v0 = vadd.f32 %v5193_v41, %v1394_v45  ;;  %v4721_v46 = vld [vmem:[%s6182_s3 + $0x98] sm:$0xff]   ;;  %v4726_v33 = vld [vmem:[%s6182_s3 + $0x90] sm:$0xff]  }
 0x1b7   : > { %1837 = vmatprep.mubr.bf16.mxu1 %v5216_v3  ;;  %v1433_v14 = vadd.f32 %v5193_v41, %v1395_v47  ;;  %v4804_v16 = vmov 0   ;;  %v1440_v20 = vmax.f32 %v1408_v7, 0.0  ;;  %v1441_v22 = vmax.f32 %v1409_v8, 0.0  ;;  %v4714_v8 = vld [vmem:[%s6182_s3 + $0x148] sm:$0xff]  }
 0x1b8   : > { %1742 = vmatmul.mubr.bf16.vlgmr.msra.gmra.mxu0 %v4804_v16  ;;  %1838 = vmatmul.mubr.bf16.vlgmr.msra.gmra.mxu1 %v5220_v5  ;;  %v5243_v21 = vpack.c.bf16 %v1463_v12, %v1462_v11  ;;  %v1372_v24 = vmul.f32 %v5180_v26, %v1334_v1  ;;  %v1373_v25 = vmul.f32 %v5180_v26, %v1335_v9  ;;  %v1464_v29 = vmax.f32 %v1432_v0, 0.0  ;;  %v4715_v11 = vld [vmem:[%s6182_s3 + $0x140] sm:$0xff]  }
 0x1b9   : > { %4431 = vmatpush3.bf16.msra.mxu0 %v5152_v6  ;;  %4383 = vmatpush3.bf16.msra.mxu1 %v5157_v56  ;;  %v1465_v6 = vmax.f32 %v1433_v14, 0.0  ;;  %v1396_v30 = vmul.f32 %v5180_v26, %v1358_v15  ;;  %v1397_v56 = vmul.f32 %v5180_v26, %v1359_v19  ;;  %v5258_v13 = vpack.c.bf16 %v1441_v22, %v1440_v20  ;;  %v1340_v14 = vld [vmem:[%s5168_s20 + $0x60] sm:$0xff]  ;;  %v4729_v20 = vld [vmem:[%s6182_s3 + $0x88] sm:$0xff]  }
 0x1ba   : > { %4384 = vmatprep.subr.bf16.mxu1 %v4707_v62  ;;  %1749 = vmatprep.mubr.bf16.mxu0 %v5222_v60  ;;  %v1410_v32 = vadd.f32 %v5193_v41, %v1372_v24  ;;  %v1411_v35 = vadd.f32 %v5193_v41, %v1373_v25  ;;  %v1374_v34 = vmul.f32 %v5180_v26, %v1336_v10 }
 0x1bb   : > { %1845 = vmatprep.mubr.bf16.mxu1 %v5243_v21  ;;  %4432 = vmatprep.subr.bf16.mxu0 %v4709_v38  ;;  %v5263_v23 = vpack.c.bf16 %v1465_v6, %v1464_v29  ;;  %v1434_v37 = vadd.f32 %v5193_v41, %v1396_v30  ;;  %v1435_v39 = vadd.f32 %v5193_v41, %v1397_v56  ;;  %v4717_v29 = vld [vmem:[%s6182_s3 + $0x38] sm:$0xff]   ;;  %v4719_v6 = vld [vmem:[%s6182_s3 + $0x70] sm:$0xff]  }
 0x1bc   : > { %v1442_v42 = vmax.f32 %v1410_v32, 0.0  ;;  %v1443_v45 = vmax.f32 %v1411_v35, 0.0  ;;  %v1375_v47 = vmul.f32 %v5180_v26, %v1337_v28  ;;  %v1412_v51 = vadd.f32 %v5193_v41, %v1374_v34  ;;  %v1342_v30 = vld [vmem:[%s5168_s20 + $0x70] sm:$0xff]  ;;  %v1343_v32 = vld [vmem:[%s5168_s20 + $0x78] sm:$0xff]  ;;  %v4734_v35 = vld [vmem:[%s6182_s3 + $0x80] sm:$0xff]  }
 0x1bd   : > { %4385 = vmatpush3.bf16.msra.mxu1 %v4707_v62  ;;  %4433 = vmatpush3.bf16.msra.mxu0 %v4709_v38  ;;  %v1466_v49 = vmax.f32 %v1434_v37, 0.0  ;;  %v1467_v50 = vmax.f32 %v1435_v39, 0.0  ;;  %v1386_v52 = vmul.f32 %v5180_v26, %v1348_v40  ;;  %v1387_v59 = vmul.f32 %v5180_v26, %v1349_v53  ;;  %v4720_v28 = vld [vmem:[%s6182_s3 + $0x30] sm:$0xff]   ;;  %v4722_v40 = vld [vmem:[%s6182_s3 + $0x68] sm:$0xff]   ;;  %v1347_v53 = vld [vmem:[%s5168_s20 + $0x98] sm:$0xff] }
 0x1be   : > { %4386 = vmatprep.subr.bf16.mxu1 %v4708_v17  ;;  %4434 = vmatprep.subr.bf16.mxu0 %v4713_v27  ;;  %v5285_v54 = vpack.c.bf16 %v1443_v45, %v1442_v42  ;;  %v1413_v57 = vadd.f32 %v5193_v41, %v1375_v47  ;;  %v1444_v62 = vmax.f32 %v1412_v51, 0.0  ;;  %v1376_v63 = vmul.f32 %v5180_v26, %v1338_v48  ;;  %v1346_v51 = vld [vmem:[%s5168_s20 + $0x90] sm:$0xff] }
 0x1bf   : > { %v5290_v58 = vpack.c.bf16 %v1467_v50, %v1466_v49  ;;  %v1424_v61 = vadd.f32 %v5193_v41, %v1386_v52  ;;  %v1377_v4 = vmul.f32 %v5180_v26, %v1339_v44  ;;  %v1425_v55 = vadd.f32 %v5193_v41, %v1387_v59  ;;  %v1344_v49 = vld [vmem:[%s5168_s20 + $0x80] sm:$0xff]  ;;  %v1345_v50 = vld [vmem:[%s5168_s20 + $0x88] sm:$0xff] }
 0x1c0   : > { %1750 = vmatmul.mubr.bf16.gmra.mxu0 %v5214_v2  ;;  %1846 = vmatmul.mubr.bf16.gmra.mxu1 %v5216_v3  ;;  %v1445_v1 = vmax.f32 %v1413_v57, 0.0  ;;  %v1414_v12 = vadd.f32 %v5193_v41, %v1376_v63  ;;  %v1378_v24 = vmul.f32 %v5180_v26, %v1340_v14  ;;  %v1381_v34 = vmul.f32 %v5180_v26, %v1343_v32  ;;  %v4724_v57 = vld [vmem:[%s6182_s3 + $0x60] sm:$0xff]   ;;  %v4727_v63 = vld [vmem:[%s6182_s3 + $0x58] sm:$0xff]   ;;  %v4732_v14 = vld [vmem:[%s6182_s3 + $0x48] sm:$0xff]  }
 0x1c1   : > { %4387 = vmatpush3.bf16.msra.mxu1 %v4708_v17  ;;  %1757 = vmatprep.mubr.bf16.mxu0 %v5258_v13  ;;  %v1456_v7 = vmax.f32 %v1424_v61, 0.0  ;;  %v1457_v9 = vmax.f32 %v1425_v55, 0.0  ;;  %v1415_v0 = vadd.f32 %v5193_v41, %v1377_v4  ;;  %v1341_v17 = vld [vmem:[%s5168_s20 + $0x68] sm:$0xff]  ;;  %v1382_v48 = vmul.f32 %v5180_v26, %v1344_v49 }
 0x1c2   : > { %4388 = vmatprep.subr.bf16.mxu1 %v4710_v31  ;;  %1853 = vmatprep.mubr.bf16.mxu1 %v5263_v23  ;;  %v5315_v38 = vpack.c.bf16 %v1445_v1, %v1444_v62  ;;  %v1446_v19 = vmax.f32 %v1414_v12, 0.0  ;;  %v1379_v25 = vmul.f32 %v5180_v26, %v1341_v17  ;;  %v1419_v47 = vadd.f32 %v5193_v41, %v1381_v34  ;;  %v4725_v62 = vld [vmem:[%s6182_s3 + $0x20] sm:$0xff]   ;;  %v4743_v32 = vld [vmem:[%s6182_s3 + $0x1a8] sm:$0xff]   ;;  %v4748_v34 = vld [vmem:[%s6182_s3 + $0x198] sm:$0xff]  }
 0x1c3   : > { %4435 = vmatpush3.bf16.msra.mxu0 %v4713_v27  ;;  %v5319_v15 = vpack.c.bf16 %v1457_v9, %v1456_v7  ;;  %v1447_v22 = vmax.f32 %v1415_v0, 0.0  ;;  %v4716_v27 = vld [vmem:[%s6182_s3 + $0x78] sm:$0xff]   ;;  %v1383_v52 = vmul.f32 %v5180_v26, %v1345_v50  ;;  %v1384_v59 = vmul.f32 %v5180_v26, %v1346_v51  ;;  %v4731_v0 = vld [vmem:[%s6182_s3 + $0x10] sm:$0xff]   ;;  %v4759_v49 = vld [vmem:[%s6182_s3 + $0x208] sm:$0xff]  }
 0x1c4   : > { %4436 = vmatprep.subr.bf16.mxu0 %v4718_v36  ;;  %v1417_v10 = vadd.f32 %v5193_v41, %v1379_v25  ;;  %v1385_v61 = vmul.f32 %v5180_v26, %v1347_v53  ;;  %v4728_v7 = vld [vmem:[%s6182_s3 + $0x18] sm:$0xff]   ;;  %v4753_v50 = vld [vmem:[%s6182_s3 + $0x188] sm:$0xff]   ;;  %v4760_v51 = vld [vmem:[%s6182_s3 + $0x200] sm:$0xff]  }
 0x1c5   : > { %4389 = vmatpush3.bf16.msra.mxu1 %v4710_v31  ;;  %v5341_v56 = vpack.c.bf16 %v1447_v22, %v1446_v19  ;;  %v1416_v31 = vadd.f32 %v5193_v41, %v1378_v24  ;;  %v1421_v1 = vadd.f32 %v5193_v41, %v1383_v52  ;;  %v1422_v55 = vadd.f32 %v5193_v41, %v1384_v59  ;;  %v4733_v19 = vld [vmem:[%s6182_s3 + $0x8] sm:$0xff]   ;;  %v4735_v22 = vld [vmem:[%s6182_s3 + $0x40] sm:$0xff]   ;;  %v4739_v25 = vld [vmem:[%s6182_s3 + $0x238] sm:$0xff]  }
 0x1c6   : > { %4390 = vmatprep.subr.bf16.mxu1 %v4711_v43  ;;  %v1449_v39 = vmax.f32 %v1417_v10, 0.0  ;;  %v4736_v24 = vld [vmem:[%s6182_s3] sm:$0xff]   ;;  %v4749_v10 = vld [vmem:[%s6182_s3 + $0x228] sm:$0xff]  }
 0x1c7   : > { %4437 = vmatpush3.bf16.msra.mxu0 %v4718_v36  ;;  %v1448_v37 = vmax.f32 %v1416_v31, 0.0  ;;  %v4737_v36 = vld [vmem:[%s6182_s3 + $0x1f8] sm:$0xff]   ;;  %v4742_v31 = vld [vmem:[%s6182_s3 + $0x1e8] sm:$0xff]   ;;  %v4756_v53 = vld [vmem:[%s6182_s3 + $0x180] sm:$0xff]  }
 0x1c8   : > { %1758 = vmatmul.mubr.bf16.gmra.mxu0 %v5222_v60  ;;  %1854 = vmatmul.mubr.bf16.gmra.mxu1 %v5243_v21 }
 0x1c9   : > { %4391 = vmatpush3.bf16.msra.mxu1 %v4711_v43  ;;  %1765 = vmatprep.mubr.bf16.mxu0 %v5285_v54  ;;  %v1380_v43 = vmul.f32 %v5180_v26, %v1342_v30  ;;  %v5364_v42 = vpack.c.bf16 %v1449_v39, %v1448_v37  ;;  %v1423_v26 = vadd.f32 %v5193_v41, %v1385_v61  ;;  %v4741_v30 = vld [vmem:[%s6182_s3 + $0x1b0] sm:$0xff]   ;;  %v4746_v37 = vld [vmem:[%s6182_s3 + $0x1a0] sm:$0xff]   ;;  %v4747_v39 = vld [vmem:[%s6182_s3 + $0x1d8] sm:$0xff]  }
 0x1ca   : > { %4392 = vmatprep.subr.bf16.mxu1 %v4712_v18  ;;  %1861 = vmatprep.mubr.bf16.mxu1 %v5290_v58 }
 0x1cb   : > { %4438 = vmatprep.subr.bf16.mxu0 %v4721_v46  ;;  %v1418_v45 = vadd.f32 %v5193_v41, %v1380_v43  ;;  %v1455_v12 = vmax.f32 %v1423_v26, 0.0  ;;  %v4757_v43 = vld [vmem:[%s6182_s3 + $0x218] sm:$0xff]  }
 0x1cc   : > { %4439 = vmatpush3.bf16.msra.mxu0 %v4721_v46  ;;  %v1451_v46 = vmax.f32 %v1419_v47, 0.0  ;;  %v4752_v47 = vld [vmem:[%s6182_s3 + $0x1c8] sm:$0xff]  }
 0x1cd   : > { %4393 = vmatpush3.bf16.msra.mxu1 %v4712_v18  ;;  %4440 = vmatprep.subr.bf16.mxu0 %v4726_v33  ;;  %v4723_v18 = vld [vmem:[%s6182_s3 + $0x28] sm:$0xff]   ;;  %v1450_v44 = vmax.f32 %v1418_v45, 0.0  ;;  %v4751_v45 = vld [vmem:[%s6182_s3 + $0x190] sm:$0xff]  }
 0x1ce   : > { %4394 = vmatprep.subr.bf16.mxu1 %v4714_v8 }
 0x1cf   : > { %v5394_v4 = vpack.c.bf16 %v1451_v46, %v1450_v44 }
 0x1d0   : > { %1766 = vmatmul.mubr.bf16.gmra.mxu0 %v5258_v13  ;;  %1862 = vmatmul.mubr.bf16.gmra.mxu1 %v5263_v23 }
 0x1d1   : > { %4395 = vmatpush3.bf16.msra.mxu1 %v4714_v8  ;;  %1773 = vmatprep.mubr.bf16.mxu0 %v5315_v38  ;;  %v4730_v8 = vld [vmem:[%s6182_s3 + $0x50] sm:$0xff]  }
 0x1d2   : > { %4396 = vmatprep.subr.bf16.mxu1 %v4715_v11  ;;  %4398 = vmatprep.mubr.bf16.mxu1 %v5222_v60 }
 0x1d3   : > { %4441 = vmatpush3.bf16.msra.mxu0 %v4726_v33  ;;  %v1420_v33 = vadd.f32 %v5193_v41, %v1382_v48  ;;  %v1454_v41 = vmax.f32 %v1422_v55, 0.0 }
 0x1d4   : > { %4442 = vmatprep.subr.bf16.mxu0 %v4729_v20 }
 0x1d5   : > { %4397 = vmatpush3.bf16.msra.mxu1 %v4715_v11  ;;  %v1452_v9 = vmax.f32 %v1420_v33, 0.0  ;;  %v1453_v11 = vmax.f32 %v1421_v1, 0.0 }
 0x1d6   : > { %4062 = vmatprep.subr.bf16.mxu1 %v4716_v27  ;;  %v4738_v27 = vld [vmem:[%s6182_s3 + $0x1b8] sm:$0xff]  }
 0x1d7   : > { %4443 = vmatpush3.bf16.msra.mxu0 %v4729_v20  ;;  %v5414_v17 = vpack.c.bf16 %v1453_v11, %v1452_v9  ;;  %v5416_v20 = vpack.c.bf16 %v1455_v12, %v1454_v41 }
 0x1d8   : > { %1774 = vmatmul.mubr.bf16.gmra.mxu0 %v5285_v54  ;;  %4399 = vmatmul.mubr.bf16.vlgmr.msra.gmra.mxu1 %v5258_v13 }
 0x1d9   : > { %4063 = vmatpush3.bf16.msra.mxu1 %v4717_v29  ;;  %1781 = vmatprep.mubr.bf16.mxu0 %v5341_v56  ;;  %v4740_v29 = vld [vmem:[%s6182_s3 + $0x1f0] sm:$0xff]  }
 0x1da   : > { %4402 = vmatprep.mubr.bf16.mxu1 %v5285_v54  ;;  %4064 = vmatprep.subr.bf16.mxu1 %v4719_v6  ;;  %v4744_v6 = vld [vmem:[%s6182_s3 + $0x230] sm:$0xff]  }
 0x1db   : > { %4444 = vmatprep.subr.bf16.mxu0 %v4734_v35 }
 0x1dc   : > { %4445 = vmatpush3.bf16.msra.mxu0 %v4734_v35  ;;  %v4745_v35 = vld [vmem:[%s6182_s3 + $0x1e0] sm:$0xff]  }
 0x1dd   : > { %4065 = vmatpush3.bf16.msra.mxu1 %v4720_v28  ;;  %4198 = vmatprep.subr.bf16.mxu0 %v4737_v36  ;;  %v4754_v28 = vld [vmem:[%s6182_s3 + $0x220] sm:$0xff]   ;;  %v4750_v36 = vld [vmem:[%s6182_s3 + $0x1d0] sm:$0xff]  }
 0x1de   : > { %4066 = vmatprep.subr.bf16.mxu1 %v4722_v40  ;;  %v4758_v40 = vld [vmem:[%s6182_s3 + $0x210] sm:$0xff]  }
 0x1e0   : > { %1782 = vmatmul.mubr.bf16.gmra.mxu0 %v5315_v38  ;;  %4403 = vmatmul.mubr.bf16.gmra.mxu1 %v5315_v38 }
 0x1e1   : > { %1789 = vmatprep.mubr.bf16.mxu0 %v5364_v42  ;;  %4406 = vmatprep.mubr.bf16.mxu1 %v5341_v56 }
 0x1e2   : > { %4067 = vmatpush3.bf16.msra.mxu1 %v4723_v18  ;;  %v4755_v18 = vld [vmem:[%s6182_s3 + $0x1c0] sm:$0xff]  }
 0x1e3   : > { %4068 = vmatprep.subr.bf16.mxu1 %v4724_v57 }
 0x1e6   : > { %4069 = vmatpush3.bf16.msra.mxu1 %v4725_v62 }
 0x1e7   : > { %4070 = vmatprep.subr.bf16.mxu1 %v4727_v63 }
 0x1e8   : > { %1790 = vmatmul.mubr.bf16.gmra.mxu0 %v5341_v56  ;;  %4407 = vmatmul.mubr.bf16.gmra.mxu1 %v5364_v42 }
 0x1e9   : > { %1797 = vmatprep.mubr.bf16.mxu0 %v5394_v4  ;;  %4410 = vmatprep.mubr.bf16.mxu1 %v5394_v4 }
 0x1ea   : > { %4071 = vmatpush3.bf16.msra.mxu1 %v4728_v7 }
 0x1eb   : > { %4072 = vmatprep.subr.bf16.mxu1 %v4730_v8 }
 0x1ee   : > { %4073 = vmatpush3.bf16.msra.mxu1 %v4731_v0 }
 0x1ef   : > { %4074 = vmatprep.subr.bf16.mxu1 %v4732_v14 }
 0x1f0   : > { %1798 = vmatmul.mubr.bf16.gmra.mxu0 %v5364_v42  ;;  %4411 = vmatmul.mubr.bf16.gmra.mxu1 %v5414_v17 }
 0x1f1   : > { %1805 = vmatprep.mubr.bf16.mxu0 %v5414_v17  ;;  %4414 = vmatprep.mubr.bf16.mxu1 %v5416_v20 }
 0x1f2   : > { %4075 = vmatpush3.bf16.msra.mxu1 %v4733_v19 }
 0x1f3   : > { %4076 = vmatprep.subr.bf16.mxu1 %v4735_v22 }
 0x1f6   : > { %4077 = vmatpush3.bf16.msra.mxu1 %v4736_v24 }
 0x1f7   : > { %4478 = vmatprep.subr.bf16.mxu1 %v4739_v25 }
 0x1f8   : > { %1806 = vmatmul.mubr.bf16.gmra.mxu0 %v5394_v4  ;;  %4415 = vmatmul.mubr.bf16.gmra.mxu1 %v5319_v15 }
 0x1f9   : > { %1813 = vmatprep.mubr.bf16.mxu0 %v5416_v20  ;;  %4418 = vmatprep.mubr.bf16.mxu1 %v5220_v5 }
 0x200   : > { %1814 = vmatmul.mubr.bf16.gmra.mxu0 %v5414_v17  ;;  %4419 = vmatmul.mubr.bf16.gmra.mxu1 %v5216_v3 }
 0x201   : > { %1821 = vmatprep.mubr.bf16.mxu0 %v5319_v15  ;;  %4422 = vmatprep.mubr.bf16.mxu1 %v5243_v21 }
 0x208   : > { %1822 = vmatmul.mubr.bf16.gmra.mxu0 %v5416_v20  ;;  %4423 = vmatmul.mubr.bf16.gmra.mxu1 %v5263_v23 }
 0x209   : > { %1829 = vmatprep.mubr.bf16.mxu0 %v5220_v5  ;;  %4426 = vmatprep.mubr.bf16.mxu1 %v5290_v58 }
 0x210   : > { %1830 = vmatmul.mubr.bf16.gmra.mxu0 %v5319_v15  ;;  %4427 = vmatmul.mubr.bf16.gmra.mxu1 %v4804_v16 }
 0x211   : > { %2287 = vmatprep.mubr.bf16.mxu1 %v5214_v2  ;;  %4446 = vmatprep.mubr.bf16.mxu0 %v5222_v60 }
 0x218   : > { %2288 = vmatmul.mubr.bf16.vlgmr.msra.gmra.mxu1 %v4804_v16  ;;  %4447 = vmatmul.mubr.bf16.vlgmr.msra.gmra.mxu0 %v5258_v13 }
 0x219   : > { %4199 = vmatpush3.bf16.msra.mxu0 %v4738_v27  ;;  %4479 = vmatpush3.bf16.msra.mxu1 %v4739_v25 }
 0x21a   : > { %2295 = vmatprep.mubr.bf16.mxu1 %v5222_v60  ;;  %4450 = vmatprep.mubr.bf16.mxu0 %v5285_v54 }
 0x21b   : > { %4200 = vmatprep.subr.bf16.mxu0 %v4740_v29  ;;  %4480 = vmatprep.subr.bf16.mxu1 %v4744_v6 }
 0x21d   : > { %4201 = vmatpush3.bf16.msra.mxu0 %v4741_v30  ;;  %4481 = vmatpush3.bf16.msra.mxu1 %v4744_v6 }
 0x21e   : > { %4202 = vmatprep.subr.bf16.mxu0 %v4742_v31  ;;  %4482 = vmatprep.subr.bf16.mxu1 %v4749_v10 }
 0x220   : > { %2296 = vmatmul.mubr.bf16.gmra.mxu1 %v5214_v2  ;;  %4451 = vmatmul.mubr.bf16.gmra.mxu0 %v5315_v38 }
 0x221   : > { %2303 = vmatprep.mubr.bf16.mxu1 %v5258_v13  ;;  %4454 = vmatprep.mubr.bf16.mxu0 %v5341_v56 }
 0x222   : > { %4203 = vmatpush3.bf16.msra.mxu0 %v4743_v32  ;;  %4483 = vmatpush3.bf16.msra.mxu1 %v4749_v10 }
 0x223   : > { %4204 = vmatprep.subr.bf16.mxu0 %v4745_v35  ;;  %4484 = vmatprep.subr.bf16.mxu1 %v4754_v28 }
 0x226   : > { %4205 = vmatpush3.bf16.msra.mxu0 %v4746_v37  ;;  %4485 = vmatpush3.bf16.msra.mxu1 %v4754_v28 }
 0x227   : > { %4206 = vmatprep.subr.bf16.mxu0 %v4747_v39  ;;  %4486 = vmatprep.subr.bf16.mxu1 %v4757_v43 }
 0x228   : > { %2304 = vmatmul.mubr.bf16.gmra.mxu1 %v5222_v60  ;;  %4455 = vmatmul.mubr.bf16.gmra.mxu0 %v5364_v42 }
 0x229   : > { %2311 = vmatprep.mubr.bf16.mxu1 %v5285_v54  ;;  %4458 = vmatprep.mubr.bf16.mxu0 %v5394_v4 }
 0x22a   : > { %4207 = vmatpush3.bf16.msra.mxu0 %v4748_v34  ;;  %4487 = vmatpush3.bf16.msra.mxu1 %v4757_v43 }
 0x22b   : > { %4208 = vmatprep.subr.bf16.mxu0 %v4750_v36  ;;  %4488 = vmatprep.subr.bf16.mxu1 %v4758_v40 }
 0x22e   : > { %4209 = vmatpush3.bf16.msra.mxu0 %v4751_v45  ;;  %4489 = vmatpush3.bf16.msra.mxu1 %v4758_v40 }
 0x22f   : > { %4210 = vmatprep.subr.bf16.mxu0 %v4752_v47  ;;  %4490 = vmatprep.subr.bf16.mxu1 %v4759_v49 }
 0x230   : > { %2312 = vmatmul.mubr.bf16.gmra.mxu1 %v5258_v13  ;;  %4459 = vmatmul.mubr.bf16.gmra.mxu0 %v5414_v17 }
 0x231   : > { %2319 = vmatprep.mubr.bf16.mxu1 %v5315_v38  ;;  %4462 = vmatprep.mubr.bf16.mxu0 %v5416_v20 }
 0x232   : > { %4211 = vmatpush3.bf16.msra.mxu0 %v4753_v50  ;;  %4491 = vmatpush3.bf16.msra.mxu1 %v4759_v49 }
 0x233   : > { %4212 = vmatprep.subr.bf16.mxu0 %v4755_v18  ;;  %4492 = vmatprep.subr.bf16.mxu1 %v4760_v51 }
 0x236   : > { %4213 = vmatpush3.bf16.msra.mxu0 %v4756_v53  ;;  %4493 = vmatpush3.bf16.msra.mxu1 %v4760_v51 }
 0x238   : > { %2320 = vmatmul.mubr.bf16.gmra.mxu1 %v5285_v54  ;;  %4463 = vmatmul.mubr.bf16.gmra.mxu0 %v5319_v15 }
 0x239   : > { %2327 = vmatprep.mubr.bf16.mxu1 %v5341_v56  ;;  %4466 = vmatprep.mubr.bf16.mxu0 %v5220_v5 }
 0x240   : > { %2328 = vmatmul.mubr.bf16.gmra.mxu1 %v5315_v38  ;;  %4467 = vmatmul.mubr.bf16.gmra.mxu0 %v5216_v3 }
 0x241   : > { %2335 = vmatprep.mubr.bf16.mxu1 %v5364_v42  ;;  %4470 = vmatprep.mubr.bf16.mxu0 %v5243_v21 }
 0x248   : > { %2336 = vmatmul.mubr.bf16.gmra.mxu1 %v5341_v56  ;;  %4471 = vmatmul.mubr.bf16.gmra.mxu0 %v5263_v23 }
 0x249   : > { %2343 = vmatprep.mubr.bf16.mxu1 %v5394_v4  ;;  %4474 = vmatprep.mubr.bf16.mxu0 %v5290_v58 }
 0x250   : > { %2344 = vmatmul.mubr.bf16.gmra.mxu1 %v5364_v42  ;;  %4475 = vmatmul.mubr.bf16.gmra.mxu0 %v4804_v16 }
 0x251   : > { %2351 = vmatprep.mubr.bf16.mxu1 %v5414_v17  ;;  %2963 = vmatprep.mubr.bf16.mxu0 %v5214_v2 }
 0x258   : > { %2352 = vmatmul.mubr.bf16.gmra.mxu1 %v5394_v4  ;;  %2964 = vmatmul.mubr.bf16.vlgmr.msra.gmra.mxu0 %v4804_v16 }
 0x259   : > { %2359 = vmatprep.mubr.bf16.mxu1 %v5416_v20  ;;  %2971 = vmatprep.mubr.bf16.mxu0 %v5222_v60 }
 0x260   : > { %2360 = vmatmul.mubr.bf16.gmra.mxu1 %v5414_v17  ;;  %2972 = vmatmul.mubr.bf16.gmra.mxu0 %v5214_v2 }
 0x261   : > { %2367 = vmatprep.mubr.bf16.mxu1 %v5319_v15  ;;  %2979 = vmatprep.mubr.bf16.mxu0 %v5258_v13 }
 0x268   : > { %2368 = vmatmul.mubr.bf16.gmra.mxu1 %v5416_v20  ;;  %2980 = vmatmul.mubr.bf16.gmra.mxu0 %v5222_v60 }
 0x269   : > { %2375 = vmatprep.mubr.bf16.mxu1 %v5220_v5  ;;  %2987 = vmatprep.mubr.bf16.mxu0 %v5285_v54 }
 0x270   : > { %2376 = vmatmul.mubr.bf16.gmra.mxu1 %v5319_v15  ;;  %2988 = vmatmul.mubr.bf16.gmra.mxu0 %v5258_v13 }
 0x271   : > { %2383 = vmatprep.mubr.bf16.mxu1 %v5216_v3  ;;  %2995 = vmatprep.mubr.bf16.mxu0 %v5315_v38 }
 0x278   : > { %v3942_v2 = vpop.f32.mrf.mxu0  ;;  %v4014_v57 = vpop.f32.mrf.mxu1  ;;  %2384 = vmatmul.mubr.bf16.gmra.mxu1 %v5220_v5  ;;  %2996 = vmatmul.mubr.bf16.gmra.mxu0 %v5285_v54 }
 0x279   : > { %2391 = vmatprep.mubr.bf16.mxu1 %v5243_v21  ;;  %3003 = vmatprep.mubr.bf16.mxu0 %v5341_v56 }
 0x27a   : > { %v3943_v48 = vpop.f32.mrf.mxu0  ;;  %v4015_v52 = vpop.f32.mrf.mxu1 }
 0x27b   : > { %v5568_v44 = vadd.f32 %v3943_v48, %v3942_v2  ;;  %v5570_v46 = vadd.f32 %v4015_v52, %v4014_v57 }
 0x27c   : > { %v3945_v59 = vpop.f32.mrf.mxu0  ;;  %v4017_v61 = vpop.f32.mrf.mxu1 }
 0x27e   : > { %v3946_v62 = vpop.f32.mrf.mxu0  ;;  %v4018_v63 = vpop.f32.mrf.mxu1 }
 0x27f   : > { %v5572_v33 = vadd.f32 %v3946_v62, %v3945_v59  ;;  %v5574_v1 = vadd.f32 %v4018_v63, %v4017_v61 }
 0x280   : > { %v3948_v55 = vpop.f32.mrf.mxu0  ;;  %v4020_v26 = vpop.f32.mrf.mxu1  ;;  %2392 = vmatmul.mubr.bf16.gmra.mxu1 %v5216_v3  ;;  %3004 = vmatmul.mubr.bf16.gmra.mxu0 %v5315_v38 }
 0x281   : > { %2399 = vmatprep.mubr.bf16.mxu1 %v5263_v23  ;;  %3011 = vmatprep.mubr.bf16.mxu0 %v5364_v42 }
 0x282   : > { %v3949_v7 = vpop.f32.mrf.mxu0  ;;  %v4021_v8 = vpop.f32.mrf.mxu1 }
 0x283   : > { %v3950_v9 = vadd.f32 %v3949_v7, %v3948_v55  ;;  %v5580_v11 = vadd.f32 %v4021_v8, %v4020_v26 }
 0x284   : > { %v3951_v41 = vpop.f32.mrf.mxu0  ;;  %v4023_v12 = vpop.f32.mrf.mxu1 }
 0x286   : > { %v3952_v0 = vpop.f32.mrf.mxu0  ;;  %v4024_v14 = vpop.f32.mrf.mxu1 }
 0x287   : > { %v3953_v19 = vadd.f32 %v3952_v0, %v3951_v41  ;;  %v5582_v22 = vadd.f32 %v4024_v14, %v4023_v12 }
 0x288   : > { %v3954_v24 = vpop.f32.mrf.mxu0  ;;  %v4026_v25 = vpop.f32.mrf.mxu1  ;;  %2400 = vmatmul.mubr.bf16.gmra.mxu1 %v5243_v21  ;;  %3012 = vmatmul.mubr.bf16.gmra.mxu0 %v5341_v56 }
 0x289   : > { %2407 = vmatprep.mubr.bf16.mxu1 %v5290_v58  ;;  %3019 = vmatprep.mubr.bf16.mxu0 %v5394_v4 }
 0x28a   : > { %v3955_v27 = vpop.f32.mrf.mxu0  ;;  %v4027_v29 = vpop.f32.mrf.mxu1 }
 0x28b   : > { %v3956_v6 = vadd.f32 %v3955_v27, %v3954_v24  ;;  %v5588_v30 = vadd.f32 %v4027_v29, %v4026_v25 }
 0x28c   : > { %v3957_v31 = vpop.f32.mrf.mxu0  ;;  %v4029_v10 = vpop.f32.mrf.mxu1 }
 0x28e   : > { %v3958_v32 = vpop.f32.mrf.mxu0  ;;  %v4030_v35 = vpop.f32.mrf.mxu1 }
 0x28f   : > { %v3959_v28 = vadd.f32 %v3958_v32, %v3957_v31  ;;  %v5590_v37 = vadd.f32 %v4030_v35, %v4029_v10 }
 0x290   : > { %v3960_v39 = vpop.f32.mrf.mxu0  ;;  %v4032_v43 = vpop.f32.mrf.mxu1  ;;  %2408 = vmatmul.mubr.bf16.gmra.mxu1 %v5263_v23  ;;  %3020 = vmatmul.mubr.bf16.gmra.mxu0 %v5364_v42 }
 0x291   : > { %3027 = vmatprep.mubr.bf16.mxu0 %v5414_v17  ;;  %4494 = vmatprep.mubr.bf16.mxu1 %v5222_v60 }
 0x292   : > { %v3961_v34 = vpop.f32.mrf.mxu0  ;;  %v4033_v36 = vpop.f32.mrf.mxu1 }
 0x293   : > { %v3962_v40 = vadd.f32 %v3961_v34, %v3960_v39  ;;  %v5596_v45 = vadd.f32 %v4033_v36, %v4032_v43 }
 0x294   : > { %v3963_v47 = vpop.f32.mrf.mxu0  ;;  %v4035_v49 = vpop.f32.mrf.mxu1 }
 0x296   : > { %v3964_v50 = vpop.f32.mrf.mxu0  ;;  %v4036_v18 = vpop.f32.mrf.mxu1 }
 0x297   : > { %v3965_v51 = vadd.f32 %v3964_v50, %v3963_v47  ;;  %v5598_v53 = vadd.f32 %v4036_v18, %v4035_v49 }
 0x298   : > { %v3966_v2 = vpop.f32.mrf.mxu0  ;;  %v4400_v57 = vpop.f32.mrf.mxu1  ;;  %3028 = vmatmul.mubr.bf16.gmra.mxu0 %v5394_v4  ;;  %4495 = vmatmul.mubr.bf16.vlgmr.msra.gmra.mxu1 %v5258_v13 }
 0x299   : > { %v5602_v48 = vadd.f32 %v4400_v57, %v3950_v9  ;;  %3035 = vmatprep.mubr.bf16.mxu0 %v5416_v20  ;;  %4498 = vmatprep.mubr.bf16.mxu1 %v5285_v54 }
 0x29a   : > { %v3967_v60 = vpop.f32.mrf.mxu0  ;;  %v1904_v52 = vpop.f32.mrf.mxu1 }
 0x29b   : > { %v3968_v59 = vadd.f32 %v3967_v60, %v3966_v2  ;;  %v5607_v61 = vadd.f32 %v5568_v44, %v1904_v52 }
 0x29c   : > { %v3969_v62 = vpop.f32.mrf.mxu0  ;;  %v4401_v63 = vpop.f32.mrf.mxu1 }
 0x29d   : > { %v5609_v55 = vadd.f32 %v4401_v63, %v3953_v19 }
 0x29e   : > { %v3970_v26 = vpop.f32.mrf.mxu0  ;;  %v1907_v7 = vpop.f32.mrf.mxu1 }
 0x29f   : > { %v3971_v8 = vadd.f32 %v3970_v26, %v3969_v62  ;;  %v5612_v13 = vadd.f32 %v5572_v33, %v1907_v7 }
 0x2a0   : > { %v3972_v9 = vpop.f32.mrf.mxu0  ;;  %v4404_v41 = vpop.f32.mrf.mxu1  ;;  %3036 = vmatmul.mubr.bf16.gmra.mxu0 %v5414_v17  ;;  %4499 = vmatmul.mubr.bf16.gmra.mxu1 %v5315_v38 }
 0x2a1   : > { %v5616_v54 = vadd.f32 %v4404_v41, %v3962_v40  ;;  %3043 = vmatprep.mubr.bf16.mxu0 %v5319_v15  ;;  %4502 = vmatprep.mubr.bf16.mxu1 %v5341_v56 }
 0x2a2   : > { %v3973_v44 = vpop.f32.mrf.mxu0  ;;  %v1920_v12 = vpop.f32.mrf.mxu1 }
 0x2a3   : > { %v3974_v0 = vadd.f32 %v3973_v44, %v3972_v9  ;;  %v5620_v14 = vadd.f32 %v3956_v6, %v1920_v12 }
 0x2a4   : > { %v3975_v19 = vpop.f32.mrf.mxu0  ;;  %v4405_v33 = vpop.f32.mrf.mxu1 }
 0x2a5   : > { %v5622_v24 = vadd.f32 %v4405_v33, %v3965_v51 }
 0x2a6   : > { %v3976_v25 = vpop.f32.mrf.mxu0  ;;  %v1923_v27 = vpop.f32.mrf.mxu1 }
 0x2a7   : > { %v3977_v29 = vadd.f32 %v3976_v25, %v3975_v19  ;;  %v5624_v31 = vadd.f32 %v3959_v28, %v1923_v27 }
 0x2a8   : > { %v3978_v38 = vpop.f32.mrf.mxu0  ;;  %v4408_v10 = vpop.f32.mrf.mxu1  ;;  %3044 = vmatmul.mubr.bf16.gmra.mxu0 %v5416_v20  ;;  %4503 = vmatmul.mubr.bf16.gmra.mxu1 %v5364_v42 }
 0x2a9   : > { %v5628_v56 = vadd.f32 %v4408_v10, %v3974_v0  ;;  %3051 = vmatprep.mubr.bf16.mxu0 %v5220_v5  ;;  %4506 = vmatprep.mubr.bf16.mxu1 %v5394_v4 }
 0x2aa   : > { %v3979_v6 = vpop.f32.mrf.mxu0  ;;  %v1936_v32 = vpop.f32.mrf.mxu1 }
 0x2ab   : > { %v3980_v35 = vadd.f32 %v3979_v6, %v3978_v38  ;;  %v5632_v39 = vadd.f32 %v3968_v59, %v1936_v32 }
 0x2ac   : > { %v3981_v43 = vpop.f32.mrf.mxu0  ;;  %v4409_v28 = vpop.f32.mrf.mxu1 }
 0x2ad   : > { %v5634_v34 = vadd.f32 %v4409_v28, %v3977_v29 }
 0x2ae   : > { %v3982_v36 = vpop.f32.mrf.mxu0  ;;  %v1939_v40 = vpop.f32.mrf.mxu1 }
 0x2af   : > { %v3983_v47 = vadd.f32 %v3982_v36, %v3981_v43  ;;  %v5636_v49 = vadd.f32 %v3971_v8, %v1939_v40 }
 0x2b0   : > { %v3984_v42 = vpop.f32.mrf.mxu0  ;;  %v4412_v50 = vpop.f32.mrf.mxu1  ;;  %3052 = vmatmul.mubr.bf16.gmra.mxu0 %v5319_v15  ;;  %4507 = vmatmul.mubr.bf16.gmra.mxu1 %v5414_v17 }
 0x2b1   : > { %3059 = vmatprep.mubr.bf16.mxu0 %v5216_v3  ;;  %4510 = vmatprep.mubr.bf16.mxu1 %v5416_v20 }
 0x2b2   : > { %v3985_v4 = vpop.f32.mrf.mxu0  ;;  %v1952_v18 = vpop.f32.mrf.mxu1 }
 0x2b3   : > { %v3986_v51 = vadd.f32 %v3985_v4, %v3984_v42  ;;  %v5642_v2 = vadd.f32 %v3980_v35, %v1952_v18 }
 0x2b4   : > { %v3987_v57 = vpop.f32.mrf.mxu0  ;;  %v4413_v60 = vpop.f32.mrf.mxu1 }
 0x2b5   : > { %v5644_v52 = vadd.f32 %v4412_v50, %v3986_v51 }
 0x2b6   : > { %v3988_v59 = vpop.f32.mrf.mxu0  ;;  %v1955_v62 = vpop.f32.mrf.mxu1 }
 0x2b7   : > { %v3989_v63 = vadd.f32 %v3988_v59, %v3987_v57  ;;  %v5646_v26 = vadd.f32 %v3983_v47, %v1955_v62 }
 0x2b8   : > { %v3990_v7 = vpop.f32.mrf.mxu0  ;;  %v4416_v17 = vpop.f32.mrf.mxu1  ;;  %3060 = vmatmul.mubr.bf16.gmra.mxu0 %v5220_v5  ;;  %4511 = vmatmul.mubr.bf16.gmra.mxu1 %v5319_v15 }
 0x2b9   : > { %v5650_v20 = vadd.f32 %v4413_v60, %v3989_v63  ;;  %3067 = vmatprep.mubr.bf16.mxu0 %v5243_v21  ;;  %4514 = vmatprep.mubr.bf16.mxu1 %v5220_v5 }
 0x2ba   : > { %v3991_v8 = vpop.f32.mrf.mxu0  ;;  %v1968_v9 = vpop.f32.mrf.mxu1 }
 0x2bb   : > { %v3992_v41 = vadd.f32 %v3991_v8, %v3990_v7 }
 0x2bc   : > { %v3993_v44 = vpop.f32.mrf.mxu0  ;;  %v4417_v12 = vpop.f32.mrf.mxu1 }
 0x2bd   : > { %v5654_v0 = vadd.f32 %v3992_v41, %v1968_v9 }
 0x2be   : > { %v3994_v19 = vpop.f32.mrf.mxu0  ;;  %v1971_v33 = vpop.f32.mrf.mxu1 }
 0x2bf   : > { %v3995_v25 = vadd.f32 %v3994_v19, %v3993_v44 }
 0x2c0   : > { %v3996_v27 = vpop.f32.mrf.mxu0  ;;  %v4420_v29 = vpop.f32.mrf.mxu1  ;;  %3068 = vmatmul.mubr.bf16.gmra.mxu0 %v5216_v3  ;;  %4515 = vmatmul.mubr.bf16.gmra.mxu1 %v5216_v3 }
 0x2c1   : > { %v5658_v15 = vadd.f32 %v3995_v25, %v1971_v33  ;;  %3075 = vmatprep.mubr.bf16.mxu0 %v5263_v23  ;;  %4518 = vmatprep.mubr.bf16.mxu1 %v5243_v21 }
 0x2c2   : > { %v3997_v5 = vpop.f32.mrf.mxu0  ;;  %v1984_v38 = vpop.f32.mrf.mxu1 }
 0x2c3   : > { %v3998_v10 = vadd.f32 %v3997_v5, %v3996_v27 }
 0x2c4   : > { %v3999_v6 = vpop.f32.mrf.mxu0  ;;  %v4421_v32 = vpop.f32.mrf.mxu1 }
 0x2c5   : > { %v5662_v35 = vadd.f32 %v4416_v17, %v3998_v10 }
 0x2c6   : > { %v4000_v43 = vpop.f32.mrf.mxu0  ;;  %v1987_v28 = vpop.f32.mrf.mxu1 }
 0x2c7   : > { %v4001_v36 = vadd.f32 %v4000_v43, %v3999_v6 }
 0x2c8   : > { %v4002_v40 = vpop.f32.mrf.mxu0  ;;  %v4424_v47 = vpop.f32.mrf.mxu1  ;;  %3076 = vmatmul.mubr.bf16.gmra.mxu0 %v5243_v21  ;;  %4519 = vmatmul.mubr.bf16.gmra.mxu1 %v5263_v23 }
 0x2c9   : > { %v5666_v3 = vadd.f32 %v4417_v12, %v4001_v36  ;;  %v5669_v42 = vadd.f32 %v4424_v47, %v5580_v11  ;;  %3083 = vmatprep.mubr.bf16.mxu0 %v5290_v58  ;;  %4522 = vmatprep.mubr.bf16.mxu1 %v5290_v58 }
 0x2ca   : > { %v4003_v50 = vpop.f32.mrf.mxu0  ;;  %v2000_v4 = vpop.f32.mrf.mxu1 }
 0x2cb   : > { %v4004_v18 = vadd.f32 %v4003_v50, %v4002_v40  ;;  %v5674_v51 = vadd.f32 %v5570_v46, %v2000_v4 }
 0x2cc   : > { %v4005_v57 = vpop.f32.mrf.mxu0  ;;  %v4425_v60 = vpop.f32.mrf.mxu1 }
 0x2cd   : > { %v5676_v21 = vadd.f32 %v4004_v18, %v1984_v38  ;;  %v5679_v59 = vadd.f32 %v4425_v60, %v5582_v22 }
 0x2ce   : > { %v4006_v62 = vpop.f32.mrf.mxu0  ;;  %v2003_v11 = vpop.f32.mrf.mxu1 }
 0x2cf   : > { %v4007_v63 = vadd.f32 %v4006_v62, %v4005_v57  ;;  %v5682_v7 = vadd.f32 %v5574_v1, %v2003_v11 }
 0x2d0   : > { %v4008_v58 = vpop.f32.mrf.mxu0  ;;  %v4428_v17 = vpop.f32.mrf.mxu1  ;;  %3084 = vmatmul.mubr.bf16.gmra.mxu0 %v5263_v23  ;;  %4523 = vmatmul.mubr.bf16.gmra.mxu1 %v4804_v16 }
 0x2d1   : > { %v5686_v46 = vadd.f32 %v4007_v63, %v1987_v28  ;;  %v5689_v8 = vadd.f32 %v4428_v17, %v5596_v45  ;;  %v1484_v28 = vld [vmem:[%s4884_s12] sm:$0xff] }
 0x2d2   : > { %v4009_v9 = vpop.f32.mrf.mxu0  ;;  %v2016_v22 = vpop.f32.mrf.mxu1 }
 0x2d3   : > { %v4010_v41 = vadd.f32 %v4009_v9, %v4008_v58  ;;  %v5692_v44 = vadd.f32 %v5588_v30, %v2016_v22 }
 0x2d4   : > { %v4011_v12 = vpop.f32.mrf.mxu0  ;;  %v4429_v1 = vpop.f32.mrf.mxu1 }
 0x2d5   : > { %v5694_v19 = vadd.f32 %v4420_v29, %v4010_v41  ;;  %v5697_v23 = vadd.f32 %v4429_v1, %v5598_v53 }
 0x2d6   : > { %v4012_v16 = vpop.f32.mrf.mxu0  ;;  %v2019_v33 = vpop.f32.mrf.mxu1 }
 0x2d7   : > { %v4013_v25 = vadd.f32 %v4012_v16, %v4011_v12  ;;  %v5700_v45 = vadd.f32 %v5590_v37, %v2019_v33  ;;  %v2031_v37 = vadd.f32 %v5607_v61, %v1484_v28  ;;  %v1486_v12 = vld [vmem:[%s4884_s12 + $0x10] sm:$0xff]  ;;  %v1487_v28 = vld [vmem:[%s4884_s12 + $0x18] sm:$0xff] }
 0x2d8   : > { %v4078_v27 = vpop.f32.mrf.mxu1  ;;  %v4448_v5 = vpop.f32.mrf.mxu0 }
 0x2d9   : > { %v5702_v38 = vadd.f32 %v4421_v32, %v4013_v25  ;;  %v1485_v32 = vld [vmem:[%s4884_s12 + $0x8] sm:$0xff] }
 0x2da   : > { %v4079_v30 = vpop.f32.mrf.mxu1  ;;  %v2450_v10 = vpop.f32.mrf.mxu0  ;;  %v2032_v9 = vadd.f32 %v5612_v13, %v1485_v32 }
 0x2db   : > { %v4080_v6 = vadd.f32 %v4079_v30, %v4078_v27 }
 0x2dc   : > { %v4081_v43 = vpop.f32.mrf.mxu1  ;;  %v4449_v29 = vpop.f32.mrf.mxu0 }
 0x2dd   : > { %v2451_v36 = vadd.f32 %v4080_v6, %v2450_v10  ;;  %v2033_v10 = vadd.f32 %v5602_v48, %v1486_v12  ;;  %v1488_v48 = vld [vmem:[%s4884_s12 + $0x20] sm:$0xff] }
 0x2de   : > { %v4082_v53 = vpop.f32.mrf.mxu1  ;;  %v2453_v40 = vpop.f32.mrf.mxu0 }
 0x2df   : > { %v2610_v47 = vrot.slane %v2451_v36, 7  ;;  %v4083_v50 = vadd.f32 %v4082_v53, %v4081_v43 }
 0x2e0   : > { %v4084_v4 = vpop.f32.mrf.mxu1  ;;  %v4452_v18 = vpop.f32.mrf.mxu0 }
 0x2e1   : > { %v2690_v57 = vsel %vm2609_vm0, 0.0, %v2610_v47  ;;  %v2454_v60 = vadd.f32 %v4083_v50, %v2453_v40 }
 0x2e2   : > { %v5708_v62 = vadd.f32 %v2690_v57, %v2031_v37  ;;  %v4085_v11 = vpop.f32.mrf.mxu1  ;;  %v2466_v63 = vpop.f32.mrf.mxu0  ;;  %v2034_v37 = vadd.f32 %v5609_v55, %v1487_v28  ;;  %v1489_v55 = vld [vmem:[%s4884_s12 + $0x28] sm:$0xff] }
 0x2e3   : > { %v2611_v58 = vrot.slane %v2454_v60, 7  ;;  %v4086_v17 = vadd.f32 %v4085_v11, %v4084_v4  ;;  %v2036_v28 = vadd.f32 %v5624_v31, %v1489_v55  ;;  %v1491_v31 = vld [vmem:[%s4884_s12 + $0x38] sm:$0xff] }
 0x2e4   : > { %v4087_v22 = vpop.f32.mrf.mxu1  ;;  %v4453_v41 = vpop.f32.mrf.mxu0 }
 0x2e5   : > { %v2612_v61 = vsel %vm2609_vm0, %v2610_v47, %v2611_v58  ;;  %v2459_v1 = vadd.f32 %v4448_v5, %v4086_v17 }
 0x2e6   : > { %v4088_v16 = vpop.f32.mrf.mxu1  ;;  %v2469_v33 = vpop.f32.mrf.mxu0  ;;  %v5713_v25 = vadd.f32 %v2612_v61, %v2032_v9 }
 0x2e7   : > { %v2613_v27 = vrot.slane %v2459_v1, 7  ;;  %v4089_v30 = vadd.f32 %v4088_v16, %v4087_v22  ;;  %v2035_v22 = vadd.f32 %v5620_v14, %v1488_v48  ;;  %v1490_v14 = vld [vmem:[%s4884_s12 + $0x30] sm:$0xff] }
 0x2e8   : > { %v4090_v6 = vpop.f32.mrf.mxu1  ;;  %v5716_v43 = vpop.f32.mrf.mxu0 }
 0x2e9   : > { %v2691_v13 = vsel %vm2609_vm0, 0.0, %v2613_v27  ;;  %v2462_v36 = vadd.f32 %v4449_v29, %v4089_v30 }
 0x2ea   : > { %v5720_v53 = vadd.f32 %v2691_v13, %v2033_v10  ;;  %v4091_v40 = vpop.f32.mrf.mxu1  ;;  %v2482_v5 = vpop.f32.mrf.mxu0 }
 0x2eb   : > { %v2614_v47 = vrot.slane %v2462_v36, 7  ;;  %v4092_v50 = vadd.f32 %v4091_v40, %v4090_v6 }
 0x2ec   : > { %v4093_v4 = vpop.f32.mrf.mxu1  ;;  %v5723_v32 = vpop.f32.mrf.mxu0 }
 0x2ed   : > { %v2467_v57 = vadd.f32 %v4092_v50, %v2466_v63  ;;  %v2615_v60 = vsel %vm2609_vm0, %v2613_v27, %v2614_v47 }
 0x2ee   : > { %v4094_v11 = vpop.f32.mrf.mxu1  ;;  %v2485_v58 = vpop.f32.mrf.mxu0  ;;  %v5727_v17 = vadd.f32 %v2615_v60, %v2034_v37 }
 0x2ef   : > { %v2616_v29 = vrot.slane %v2467_v57, 7  ;;  %v4095_v9 = vadd.f32 %v4094_v11, %v4093_v4  ;;  %v2037_v57 = vadd.f32 %v5616_v54, %v1490_v14  ;;  %v1492_v54 = vld [vmem:[%s4884_s12 + $0x40] sm:$0xff] }
 0x2f0   : > { %v4096_v12 = vpop.f32.mrf.mxu1  ;;  %v5730_v61 = vpop.f32.mrf.mxu0 }
 0x2f1   : > { %v2692_v1 = vsel %vm2609_vm0, 0.0, %v2616_v29  ;;  %v2470_v16 = vadd.f32 %v4095_v9, %v2469_v33 }
 0x2f2   : > { %v5734_v30 = vadd.f32 %v2692_v1, %v2035_v22  ;;  %v4097_v63 = vpop.f32.mrf.mxu1  ;;  %v5736_v27 = vpop.f32.mrf.mxu0 }
 0x2f3   : > { %v2617_v10 = vrot.slane %v2470_v16, 7  ;;  %v4098_v6 = vadd.f32 %v4097_v63, %v4096_v12  ;;  %v2038_v16 = vadd.f32 %v5622_v24, %v1491_v31  ;;  %v1493_v24 = vld [vmem:[%s4884_s12 + $0x48] sm:$0xff] }
 0x2f4   : > { %v4099_v13 = vpop.f32.mrf.mxu1  ;;  %v5739_v36 = vpop.f32.mrf.mxu0 }
 0x2f5   : > { %v2475_v40 = vadd.f32 %v4452_v18, %v4098_v6  ;;  %v2618_v47 = vsel %vm2609_vm0, %v2616_v29, %v2617_v10 }
 0x2f6   : > { %v4100_v50 = vpop.f32.mrf.mxu1  ;;  %v5743_v37 = vpop.f32.mrf.mxu0  ;;  %v5745_v33 = vadd.f32 %v2618_v47, %v2036_v28 }
 0x2f7   : > { %v2619_v4 = vrot.slane %v2475_v40, 7  ;;  %v4101_v48 = vadd.f32 %v4100_v50, %v4099_v13  ;;  %v2039_v50 = vadd.f32 %v5632_v39, %v1492_v54  ;;  %v1494_v39 = vld [vmem:[%s4884_s12 + $0x50] sm:$0xff] }
 0x2f8   : > { %v4102_v60 = vpop.f32.mrf.mxu1  ;;  %v5748_v11 = vpop.f32.mrf.mxu0 }
 0x2f9   : > { %v2693_v9 = vsel %vm2609_vm0, 0.0, %v2619_v4  ;;  %v2478_v22 = vadd.f32 %v4453_v41, %v4101_v48 }
 0x2fa   : > { %v5752_v18 = vadd.f32 %v2693_v9, %v2037_v57  ;;  %v4103_v29 = vpop.f32.mrf.mxu1  ;;  %v5754_v12 = vpop.f32.mrf.mxu0 }
 0x2fb   : > { %v2620_v55 = vrot.slane %v2478_v22, 7  ;;  %v4104_v1 = vadd.f32 %v4103_v29, %v4102_v60 }
 0x2fc   : > { %v4105_v63 = vpop.f32.mrf.mxu1  ;;  %v5757_v10 = vpop.f32.mrf.mxu0 }
 0x2fd   : > { %v2483_v6 = vadd.f32 %v4104_v1, %v2482_v5  ;;  %v2621_v28 = vsel %vm2609_vm0, %v2619_v4, %v2620_v55  ;;  %v2040_v55 = vadd.f32 %v5636_v49, %v1493_v24  ;;  %v1495_v24 = vld [vmem:[%s4884_s12 + $0x58] sm:$0xff] }
 0x2fe   : > { %v4106_v13 = vpop.f32.mrf.mxu1  ;;  %v5761_v14 = vpop.f32.mrf.mxu0  ;;  %v5763_v41 = vadd.f32 %v2621_v28, %v2038_v16 }
 0x2ff   : > { %v2622_v40 = vrot.slane %v2483_v6, 7  ;;  %v4107_v47 = vadd.f32 %v4106_v13, %v4105_v63 }
 0x300   : > { %v4108_v48 = vpop.f32.mrf.mxu1  ;;  %v5766_v57 = vpop.f32.mrf.mxu0 }
 0x301   : > { %v2694_v60 = vsel %vm2609_vm0, 0.0, %v2622_v40  ;;  %v2486_v31 = vadd.f32 %v4107_v47, %v2485_v58 }
 0x302   : > { %v5770_v5 = vadd.f32 %v2694_v60, %v2039_v50  ;;  %v4109_v4 = vpop.f32.mrf.mxu1  ;;  %v5772_v9 = vpop.f32.mrf.mxu0  ;;  %v2041_v50 = vadd.f32 %v5628_v56, %v1494_v39  ;;  %v1496_v39 = vld [vmem:[%s4884_s12 + $0x60] sm:$0xff] }
 0x303   : > { %v2623_v22 = vrot.slane %v2486_v31, 7  ;;  %v4110_v29 = vadd.f32 %v4109_v4, %v4108_v48 }
 0x304   : > { %6186 = vst [vmem:[#allocation5_spill] sm:$0xff] %v5770_v5  ;;  %v4111_v1 = vpop.f32.mrf.mxu1  ;;  %v5775_v16 = vpop.f32.mrf.mxu0 }
 0x305   : > { %v2491_v63 = vadd.f32 %v5716_v43, %v4110_v29  ;;  %v2624_v54 = vsel %vm2609_vm0, %v2622_v40, %v2623_v22 }
 0x306   : > { %v4112_v6 = vpop.f32.mrf.mxu1  ;;  %v5780_v58 = vpop.f32.mrf.mxu0  ;;  %v5782_v28 = vadd.f32 %v2624_v54, %v2040_v55  ;;  %v2042_v55 = vadd.f32 %v5634_v34, %v1495_v24  ;;  %v1497_v24 = vld [vmem:[%s4884_s12 + $0x68] sm:$0xff] }
 0x307   : > { %v2625_v13 = vrot.slane %v2491_v63, 7  ;;  %v4113_v47 = vadd.f32 %v4112_v6, %v4111_v1 }
 0x308   : > { %6187 = vst [vmem:[#allocation6_spill] sm:$0xff] %v5782_v28  ;;  %v4114_v48 = vpop.f32.mrf.mxu1  ;;  %v5785_v49 = vpop.f32.mrf.mxu0 }
 0x309   : > { %v2695_v60 = vsel %vm2609_vm0, 0.0, %v2625_v13  ;;  %v2494_v43 = vadd.f32 %v5723_v32, %v4113_v47 }
 0x30a   : > { %v5790_v31 = vadd.f32 %v2695_v60, %v2041_v50  ;;  %v4115_v40 = vpop.f32.mrf.mxu1  ;;  %v5792_v4 = vpop.f32.mrf.mxu0 }
 0x30b   : > { %v2626_v22 = vrot.slane %v2494_v43, 7  ;;  %v4116_v29 = vadd.f32 %v4115_v40, %v4114_v48  ;;  %v2043_v48 = vadd.f32 %v5642_v2, %v1496_v39  ;;  %v1498_v39 = vld [vmem:[%s4884_s12 + $0x70] sm:$0xff] }
 0x30c   : > { %v4117_v1 = vpop.f32.mrf.mxu1  ;;  %v5795_v56 = vpop.f32.mrf.mxu0 }
 0x30d   : > { %v2499_v63 = vadd.f32 %v4116_v29, %v5736_v27  ;;  %v2627_v54 = vsel %vm2609_vm0, %v2625_v13, %v2626_v22 }
 0x30e   : > { %v4118_v6 = vpop.f32.mrf.mxu1  ;;  %v5800_v32 = vpop.f32.mrf.mxu0  ;;  %v5802_v47 = vadd.f32 %v2627_v54, %v2042_v55 }
 0x30f   : > { %v2628_v50 = vrot.slane %v2499_v63, 7  ;;  %v4119_v60 = vadd.f32 %v4118_v6, %v4117_v1  ;;  %v2044_v1 = vadd.f32 %v5646_v26, %v1497_v24  ;;  %v1499_v24 = vld [vmem:[%s4884_s12 + $0x78] sm:$0xff] }
 0x310   : > { %6188 = vst [vmem:[#allocation7_spill] sm:$0xff] %v5802_v47  ;;  %v4120_v43 = vpop.f32.mrf.mxu1  ;;  %v5805_v34 = vpop.f32.mrf.mxu0 }
 0x311   : > { %v2696_v40 = vsel %vm2609_vm0, 0.0, %v2628_v50  ;;  %v2502_v27 = vadd.f32 %v4119_v60, %v5743_v37 }
 0x312   : > { %v5810_v29 = vadd.f32 %v2696_v40, %v2043_v48  ;;  %v4121_v13 = vpop.f32.mrf.mxu1  ;;  %v5812_v22 = vpop.f32.mrf.mxu0 }
 0x313   : > { %v2629_v55 = vrot.slane %v2502_v27, 7  ;;  %v4122_v63 = vadd.f32 %v4121_v13, %v4120_v43  ;;  %v2045_v43 = vadd.f32 %v5644_v52, %v1498_v39 }
 0x314   : > { %6189 = vst [vmem:[#allocation8_spill] sm:$0xff] %v5810_v29  ;;  %v4123_v54 = vpop.f32.mrf.mxu1  ;;  %v5815_v2 = vpop.f32.mrf.mxu0 }
 0x315   : > { %v2507_v6 = vadd.f32 %v5730_v61, %v4122_v63  ;;  %v2630_v28 = vsel %vm2609_vm0, %v2628_v50, %v2629_v55 }
 0x316   : > { %v4124_v5 = vpop.f32.mrf.mxu1  ;;  %v5820_v37 = vpop.f32.mrf.mxu0  ;;  %v5822_v60 = vadd.f32 %v2630_v28, %v2044_v1 }
 0x317   : > { %v2631_v48 = vrot.slane %v2507_v6, 7  ;;  %v4125_v40 = vadd.f32 %v4124_v5, %v4123_v54  ;;  %v2046_v5 = vadd.f32 %v5650_v20, %v1499_v24  ;;  %v1500_v54 = vld [vmem:[%s4884_s12 + $0x80] sm:$0xff]  ;;  %v1501_v24 = vld [vmem:[%s4884_s12 + $0x88] sm:$0xff] }
 0x318   : > { %6190 = vst [vmem:[#allocation9_spill] sm:$0xff] %v5822_v60  ;;  %v4126_v27 = vpop.f32.mrf.mxu1  ;;  %v4214_v26 = vpop.f32.mrf.mxu0 }
 0x319   : > { %v2697_v13 = vsel %vm2609_vm0, 0.0, %v2631_v48  ;;  %v2510_v29 = vadd.f32 %v5739_v36, %v4125_v40 }
 0x31a   : > { %v5828_v61 = vadd.f32 %v2697_v13, %v2045_v43  ;;  %v4127_v50 = vpop.f32.mrf.mxu1  ;;  %v4215_v55 = vpop.f32.mrf.mxu0 }
 0x31b   : > { %v2632_v63 = vrot.slane %v2510_v29, 7  ;;  %v4128_v47 = vadd.f32 %v4127_v50, %v4126_v27  ;;  %v5830_v28 = vadd.f32 %v4215_v55, %v4214_v26  ;;  %v2047_v26 = vadd.f32 %v5654_v0, %v1500_v54  ;;  %v1502_v54 = vld [vmem:[%s4884_s12 + $0x90] sm:$0xff] }
 0x31c   : > { %v4129_v1 = vpop.f32.mrf.mxu1  ;;  %v5833_v52 = vpop.f32.mrf.mxu0 }
 0x31d   : > { %v2515_v39 = vadd.f32 %v4128_v47, %v5754_v12  ;;  %v2633_v6 = vsel %vm2609_vm0, %v2631_v48, %v2632_v63 }
 0x31e   : > { %v4130_v36 = vpop.f32.mrf.mxu1  ;;  %v5838_v40 = vpop.f32.mrf.mxu0  ;;  %v5840_v43 = vadd.f32 %v2633_v6, %v2046_v5 }
 0x31f   : > { %v2634_v29 = vrot.slane %v2515_v39, 7  ;;  %v4131_v27 = vadd.f32 %v4130_v36, %v4129_v1  ;;  %v2048_v1 = vadd.f32 %v5658_v15, %v1501_v24  ;;  %v1503_v24 = vld [vmem:[%s4884_s12 + $0x98] sm:$0xff] }
 0x320   : > { %v4132_v13 = vpop.f32.mrf.mxu1  ;;  %v5843_v20 = vpop.f32.mrf.mxu0 }
 0x321   : > { %v2698_v50 = vsel %vm2609_vm0, 0.0, %v2634_v29  ;;  %v2518_v12 = vadd.f32 %v4131_v27, %v5761_v14 }
 0x322   : > { %v5848_v47 = vadd.f32 %v2698_v50, %v2047_v26  ;;  %v4133_v48 = vpop.f32.mrf.mxu1  ;;  %v5850_v55 = vpop.f32.mrf.mxu0 }
 0x323   : > { %v2635_v63 = vrot.slane %v2518_v12, 7  ;;  %v4134_v5 = vadd.f32 %v4133_v48, %v4132_v13  ;;  %v2049_v13 = vadd.f32 %v5662_v35, %v1502_v54  ;;  %v1504_v54 = vld [vmem:[%s4884_s12 + $0xa0] sm:$0xff] }
 0x324   : > { %6191 = vst [vmem:[#allocation10_spill] sm:$0xff] %v5848_v47  ;;  %v4135_v39 = vpop.f32.mrf.mxu1  ;;  %v5853_v0 = vpop.f32.mrf.mxu0 }
 0x325   : > { %v2523_v6 = vadd.f32 %v5748_v11, %v4134_v5  ;;  %v2636_v36 = vsel %vm2609_vm0, %v2634_v29, %v2635_v63 }
 0x326   : > { %v4136_v60 = vpop.f32.mrf.mxu1  ;;  %v5858_v14 = vpop.f32.mrf.mxu0  ;;  %v5860_v27 = vadd.f32 %v2636_v36, %v2048_v1 }
 0x327   : > { %v2637_v26 = vrot.slane %v2523_v6, 7  ;;  %v4137_v50 = vadd.f32 %v4136_v60, %v4135_v39  ;;  %v2050_v60 = vadd.f32 %v5666_v3, %v1503_v24  ;;  %v1505_v24 = vld [vmem:[%s4884_s12 + $0xa8] sm:$0xff] }
 0x328   : > { %6192 = vst [vmem:[#allocation11_spill] sm:$0xff] %v5860_v27  ;;  %v4138_v12 = vpop.f32.mrf.mxu1  ;;  %v5863_v15 = vpop.f32.mrf.mxu0 }
 0x329   : > { %v2699_v48 = vsel %vm2609_vm0, 0.0, %v2637_v26  ;;  %v2526_v11 = vadd.f32 %v5757_v10, %v4137_v50 }
 0x32a   : > { %v5868_v5 = vadd.f32 %v2699_v48, %v2049_v13  ;;  %v4139_v29 = vpop.f32.mrf.mxu1  ;;  %v5870_v63 = vpop.f32.mrf.mxu0 }
 0x32b   : > { %v2638_v1 = vrot.slane %v2526_v11, 7  ;;  %v4140_v6 = vadd.f32 %v4139_v29, %v4138_v12  ;;  %v2051_v12 = vadd.f32 %v5676_v21, %v1504_v54  ;;  %v1506_v54 = vld [vmem:[%s4884_s12 + $0xb0] sm:$0xff] }
 0x32c   : > { %6193 = vst [vmem:[#allocation12_spill] sm:$0xff] %v5868_v5  ;;  %v4141_v39 = vpop.f32.mrf.mxu1  ;;  %v5873_v35 = vpop.f32.mrf.mxu0 }
 0x32d   : > { %v2531_v36 = vadd.f32 %v4140_v6, %v5772_v9  ;;  %v2639_v27 = vsel %vm2609_vm0, %v2637_v26, %v2638_v1 }
 0x32e   : > { %v4142_v47 = vpop.f32.mrf.mxu1  ;;  %v5878_v10 = vpop.f32.mrf.mxu0  ;;  %v5880_v50 = vadd.f32 %v2639_v27, %v2050_v60 }
 0x32f   : > { %v2640_v13 = vrot.slane %v2531_v36, 7  ;;  %v4143_v48 = vadd.f32 %v4142_v47, %v4141_v39  ;;  %v2052_v47 = vadd.f32 %v5686_v46, %v1505_v24  ;;  %v1507_v24 = vld [vmem:[%s4884_s12 + $0xb8] sm:$0xff] }
 0x330   : > { %6194 = vst [vmem:[#allocation13_spill] sm:$0xff] %v5880_v50  ;;  %v4144_v11 = vpop.f32.mrf.mxu1  ;;  %v5883_v3 = vpop.f32.mrf.mxu0 }
 0x331   : > { %v2700_v29 = vsel %vm2609_vm0, 0.0, %v2640_v13  ;;  %v2534_v9 = vadd.f32 %v4143_v48, %v5780_v58 }
 0x332   : > { %v5888_v6 = vadd.f32 %v2700_v29, %v2051_v12  ;;  %v4145_v26 = vpop.f32.mrf.mxu1  ;;  %v5890_v1 = vpop.f32.mrf.mxu0 }
 0x333   : > { %v2641_v27 = vrot.slane %v2534_v9, 7  ;;  %v4146_v60 = vadd.f32 %v4145_v26, %v4144_v11  ;;  %v2053_v11 = vadd.f32 %v5694_v19, %v1506_v54  ;;  %v1508_v54 = vld [vmem:[%s4884_s12 + $0xc0] sm:$0xff] }
 0x334   : > { %6195 = vst [vmem:[#allocation14_spill] sm:$0xff] %v5888_v6  ;;  %v4147_v39 = vpop.f32.mrf.mxu1  ;;  %v5893_v21 = vpop.f32.mrf.mxu0 }
 0x335   : > { %v2539_v36 = vadd.f32 %v5766_v57, %v4146_v60  ;;  %v2642_v50 = vsel %vm2609_vm0, %v2640_v13, %v2641_v27 }
 0x336   : > { %v4148_v5 = vpop.f32.mrf.mxu1  ;;  %v5898_v58 = vpop.f32.mrf.mxu0  ;;  %v5900_v48 = vadd.f32 %v2642_v50, %v2052_v47 }
 0x337   : > { %v2643_v12 = vrot.slane %v2539_v36, 7  ;;  %v4149_v29 = vadd.f32 %v4148_v5, %v4147_v39  ;;  %v2054_v5 = vadd.f32 %v5702_v38, %v1507_v24  ;;  %v1509_v24 = vld [vmem:[%s4884_s12 + $0xc8] sm:$0xff] }
 0x338   : > { %6196 = vst [vmem:[#allocation15_spill] sm:$0xff] %v5900_v48  ;;  %v4150_v9 = vpop.f32.mrf.mxu1  ;;  %v5903_v46 = vpop.f32.mrf.mxu0 }
 0x339   : > { %v2701_v26 = vsel %vm2609_vm0, 0.0, %v2643_v12  ;;  %v2542_v57 = vadd.f32 %v5775_v16, %v4149_v29 }
 0x33a   : > { %v5908_v60 = vadd.f32 %v2701_v26, %v2053_v11  ;;  %v4151_v13 = vpop.f32.mrf.mxu1  ;;  %v5910_v27 = vpop.f32.mrf.mxu0 }
 0x33b   : > { %v2644_v50 = vrot.slane %v2542_v57, 7  ;;  %v4152_v47 = vadd.f32 %v4151_v13, %v4150_v9  ;;  %v2055_v9 = vadd.f32 %v5674_v51, %v1508_v54  ;;  %v1510_v54 = vld [vmem:[%s4884_s12 + $0xd0] sm:$0xff] }
 0x33c   : > { %6197 = vst [vmem:[#allocation16_spill] sm:$0xff] %v5908_v60  ;;  %v4153_v39 = vpop.f32.mrf.mxu1  ;;  %v5913_v19 = vpop.f32.mrf.mxu0 }
 0x33d   : > { %v2547_v36 = vadd.f32 %v4152_v47, %v5792_v4  ;;  %v2645_v48 = vsel %vm2609_vm0, %v2643_v12, %v2644_v50 }
 0x33e   : > { %v4154_v6 = vpop.f32.mrf.mxu1  ;;  %v5918_v16 = vpop.f32.mrf.mxu0  ;;  %v5920_v29 = vadd.f32 %v2645_v48, %v2054_v5 }
 0x33f   : > { %v2646_v11 = vrot.slane %v2547_v36, 7  ;;  %v4155_v26 = vadd.f32 %v4154_v6, %v4153_v39  ;;  %v2056_v6 = vadd.f32 %v5682_v7, %v1509_v24  ;;  %v1511_v24 = vld [vmem:[%s4884_s12 + $0xd8] sm:$0xff] }
 0x340   : > { %6198 = vst [vmem:[#allocation17_spill] sm:$0xff] %v5920_v29  ;;  %v4156_v57 = vpop.f32.mrf.mxu1  ;;  %v5923_v38 = vpop.f32.mrf.mxu0 }
 0x341   : > { %v2702_v13 = vsel %vm2609_vm0, 0.0, %v2646_v11  ;;  %v2550_v4 = vadd.f32 %v4155_v26, %v5800_v32 }
 0x342   : > { %v5928_v47 = vadd.f32 %v2702_v13, %v2055_v9  ;;  %v4157_v12 = vpop.f32.mrf.mxu1  ;;  %v5930_v50 = vpop.f32.mrf.mxu0 }
 0x343   : > { %v2647_v48 = vrot.slane %v2550_v4, 7  ;;  %v4158_v5 = vadd.f32 %v4157_v12, %v4156_v57  ;;  %v2057_v57 = vadd.f32 %v5669_v42, %v1510_v54  ;;  %v1512_v54 = vld [vmem:[%s4884_s12 + $0xe0] sm:$0xff] }
 0x344   : > { %6199 = vst [vmem:[#allocation18_spill] sm:$0xff] %v5928_v47  ;;  %v4159_v39 = vpop.f32.mrf.mxu1  ;;  %v5933_v51 = vpop.f32.mrf.mxu0 }
 0x345   : > { %v2555_v36 = vadd.f32 %v5785_v49, %v4158_v5  ;;  %v2648_v29 = vsel %vm2609_vm0, %v2646_v11, %v2647_v48 }
 0x346   : > { %v4160_v60 = vpop.f32.mrf.mxu1  ;;  %v5938_v32 = vpop.f32.mrf.mxu0  ;;  %v5940_v26 = vadd.f32 %v2648_v29, %v2056_v6 }
 0x347   : > { %v2649_v9 = vrot.slane %v2555_v36, 7  ;;  %v4161_v13 = vadd.f32 %v4160_v60, %v4159_v39  ;;  %v2058_v60 = vadd.f32 %v5679_v59, %v1511_v24  ;;  %v1513_v24 = vld [vmem:[%s4884_s12 + $0xe8] sm:$0xff] }
 0x348   : > { %6200 = vst [vmem:[#allocation19_spill] sm:$0xff] %v5940_v26  ;;  %v4162_v4 = vpop.f32.mrf.mxu1  ;;  %v5943_v7 = vpop.f32.mrf.mxu0 }
 0x349   : > { %v2703_v12 = vsel %vm2609_vm0, 0.0, %v2649_v9  ;;  %v2558_v49 = vadd.f32 %v5795_v56, %v4161_v13 }
 0x34a   : > { %v5948_v5 = vadd.f32 %v2703_v12, %v2057_v57  ;;  %v4163_v11 = vpop.f32.mrf.mxu1  ;;  %v5950_v48 = vpop.f32.mrf.mxu0 }
 0x34b   : > { %v2650_v29 = vrot.slane %v2558_v49, 7  ;;  %v4164_v6 = vadd.f32 %v4163_v11, %v4162_v4  ;;  %v2059_v4 = vadd.f32 %v5692_v44, %v1512_v54  ;;  %v1514_v54 = vld [vmem:[%s4884_s12 + $0xf0] sm:$0xff] }
 0x34c   : > { %6201 = vst [vmem:[#allocation20_spill] sm:$0xff] %v5948_v5  ;;  %v4165_v39 = vpop.f32.mrf.mxu1  ;;  %v5953_v42 = vpop.f32.mrf.mxu0 }
 0x34d   : > { %v2563_v36 = vadd.f32 %v4164_v6, %v5812_v22  ;;  %v2651_v26 = vsel %vm2609_vm0, %v2649_v9, %v2650_v29 }
 0x34e   : > { %v4166_v47 = vpop.f32.mrf.mxu1  ;;  %v5958_v56 = vpop.f32.mrf.mxu0  ;;  %v5960_v13 = vadd.f32 %v2651_v26, %v2058_v60 }
 0x34f   : > { %v2652_v57 = vrot.slane %v2563_v36, 7  ;;  %v4167_v12 = vadd.f32 %v4166_v47, %v4165_v39  ;;  %v2060_v47 = vadd.f32 %v5700_v45, %v1513_v24  ;;  %v1515_v24 = vld [vmem:[%s4884_s12 + $0xf8] sm:$0xff] }
 0x350   : > { %6202 = vst [vmem:[#allocation21_spill] sm:$0xff] %v5960_v13  ;;  %v4168_v49 = vpop.f32.mrf.mxu1  ;;  %v5963_v59 = vpop.f32.mrf.mxu0 }
 0x351   : > { %v2704_v11 = vsel %vm2609_vm0, 0.0, %v2652_v57  ;;  %v2566_v22 = vadd.f32 %v4167_v12, %v5820_v37 }
 0x352   : > { %v5968_v6 = vadd.f32 %v2704_v11, %v2059_v4  ;;  %v4169_v9 = vpop.f32.mrf.mxu1  ;;  %v5970_v29 = vpop.f32.mrf.mxu0 }
 0x353   : > { %v2653_v26 = vrot.slane %v2566_v22, 7  ;;  %v4170_v60 = vadd.f32 %v4169_v9, %v4168_v49  ;;  %v2061_v22 = vadd.f32 %v5689_v8, %v1514_v54  ;;  %v4222_v9 = vadd.f32 %v5850_v55, %v5843_v20 }
 0x354   : > { %v4171_v39 = vpop.f32.mrf.mxu1  ;;  %v5973_v44 = vpop.f32.mrf.mxu0  ;;  %v4219_v20 = vadd.f32 %v5838_v40, %v5833_v52 }
 0x355   : > { %v2571_v36 = vadd.f32 %v5805_v34, %v4170_v60  ;;  %v2654_v13 = vsel %vm2609_vm0, %v2652_v57, %v2653_v26 }
 0x356   : > { %v4172_v5 = vpop.f32.mrf.mxu1  ;;  %v5978_v37 = vpop.f32.mrf.mxu0  ;;  %v5980_v12 = vadd.f32 %v2654_v13, %v2060_v47 }
 0x357   : > { %v2655_v4 = vrot.slane %v2571_v36, 7  ;;  %v4173_v11 = vadd.f32 %v4172_v5, %v4171_v39  ;;  %v4225_v5 = vadd.f32 %v5858_v14, %v5853_v0  ;;  %v2062_v39 = vadd.f32 %v5697_v23, %v1515_v24 }
 0x358   : > { %v5983_v49 = vpop.f32.mrf.mxu0  ;;  %v4496_v45 = vpop.f32.mrf.mxu1  ;;  %v4234_v24 = vadd.f32 %v5890_v1, %v5883_v3 }
 0x359   : > { %v2705_v34 = vsel %vm2609_vm0, 0.0, %v2655_v4  ;;  %v2574_v57 = vadd.f32 %v5815_v2, %v4173_v11  ;;  %v3135_v47 = vadd.f32 %v4496_v45, %v4222_v9 }
 0x35a   : > { %v5990_v26 = vadd.f32 %v2705_v34, %v2061_v22  ;;  %v5992_v60 = vpop.f32.mrf.mxu0  ;;  %v3126_v13 = vpop.f32.mrf.mxu1 }
 0x35b   : > { %v2656_v8 = vrot.slane %v2574_v57, 7  ;;  %v3127_v55 = vadd.f32 %v5830_v28, %v3126_v13  ;;  %v3289_v14 = vrot.slane %v3135_v47, 1  ;;  %v4228_v13 = vadd.f32 %v5870_v63, %v5863_v15 }
 0x35c   : > { %v5997_v54 = vpop.f32.mrf.mxu0  ;;  %v4497_v36 = vpop.f32.mrf.mxu1  ;;  %v4237_v47 = vadd.f32 %v5898_v58, %v5893_v21 }
 0x35d   : > { %v2657_v2 = vsel %vm2609_vm0, %v2655_v4, %v2656_v8  ;;  %v3138_v11 = vadd.f32 %v4497_v36, %v4225_v5  ;;  %v3286_v40 = vrot.slane %v3127_v55, 1 }
 0x35e   : > { %v6003_v22 = vpop.f32.mrf.mxu0  ;;  %v3129_v34 = vpop.f32.mrf.mxu1  ;;  %v6005_v0 = vadd.f32 %v2657_v2, %v2062_v39  ;;  %v4231_v2 = vadd.f32 %v5878_v10, %v5873_v35 }
 0x35f   : > { %v3290_v45 = vrot.slane %v3138_v11, 1  ;;  %v3130_v23 = vadd.f32 %v4219_v20, %v3129_v34 }
 0x360   : > { %v6009_v9 = vpop.f32.mrf.mxu0  ;;  %v4500_v52 = vpop.f32.mrf.mxu1 }
 0x361   : > { %v3291_v28 = vsel %vm3285_vm1, %v3289_v14, %v3290_v45  ;;  %v3367_v4 = vsel %vm3285_vm1, %v3290_v45, 0.0  ;;  %v3287_v57 = vrot.slane %v3130_v23, 1  ;;  %v3151_v20 = vadd.f32 %v4500_v52, %v4234_v24 }
 0x362   : > { %v3384_v5 = vadd.f32 %v3291_v28, %v5720_v53  ;;  %v3385_v8 = vadd.f32 %v3367_v4, %v5727_v17  ;;  %v6017_v3 = vpop.f32.mrf.mxu0  ;;  %v3142_v1 = vpop.f32.mrf.mxu1 }
 0x363   : > { %v3288_v39 = vsel %vm3285_vm1, %v3286_v40, %v3287_v57  ;;  %v3366_v36 = vsel %vm3285_vm1, %v3287_v57, 0.0  ;;  %v3143_v55 = vadd.f32 %v4228_v13, %v3142_v1  ;;  %v3295_v34 = vrot.slane %v3151_v20, 1 }
 0x364   : > { %3416 = vst [vmem:[%s4889_s15 + $0x10] sm:$0xff] %v3384_v5  ;;  %3417 = vst [vmem:[%s4889_s15 + $0x18] sm:$0xff] %v3385_v8  ;;  %v3382_v15 = vadd.f32 %v3288_v39, %v5708_v62  ;;  %v3383_v53 = vadd.f32 %v3366_v36, %v5713_v25  ;;  %v6027_v17 = vpop.f32.mrf.mxu0  ;;  %v4501_v63 = vpop.f32.mrf.mxu1  ;;  %v4246_v62 = vadd.f32 %v5930_v50, %v5923_v38 }
 0x365   : > { %v3154_v11 = vadd.f32 %v4501_v63, %v4237_v47  ;;  %v3292_v24 = vrot.slane %v3143_v55, 1  ;;  %v4240_v40 = vadd.f32 %v5910_v27, %v5903_v46  ;;  %v4249_v57 = vadd.f32 %v5938_v32, %v5933_v51 }
 0x366   : > { %3414 = vst [vmem:[%s4889_s15] sm:$0xff] %v3382_v15  ;;  %3415 = vst [vmem:[%s4889_s15 + $0x8] sm:$0xff] %v3383_v53  ;;  %v6033_v21 = vpop.f32.mrf.mxu0  ;;  %v3145_v58 = vpop.f32.mrf.mxu1  ;;  %v4243_v1 = vadd.f32 %v5918_v16, %v5913_v19  ;;  %v4252_v55 = vadd.f32 %v5950_v48, %v5943_v7  ;;  %v6205_v48 = vld [vmem:[#allocation6_spill] sm:$0xff] }
 0x367   : > { %v3296_v14 = vrot.slane %v3154_v11, 1  ;;  %v3146_v45 = vadd.f32 %v4231_v2, %v3145_v58  ;;  %v6203_v58 = vld [vmem:[#allocation7_spill] sm:$0xff] }
 0x368   : > { %v6037_v25 = vpop.f32.mrf.mxu0  ;;  %v4504_v23 = vpop.f32.mrf.mxu1 }
 0x369   : > { %v3297_v35 = vsel %vm3285_vm1, %v3295_v34, %v3296_v14  ;;  %v3369_v10 = vsel %vm3285_vm1, %v3296_v14, 0.0  ;;  %v3293_v52 = vrot.slane %v3146_v45, 1  ;;  %v3167_v8 = vadd.f32 %v4504_v23, %v4246_v62 }
 0x36a   : > { %v3388_v28 = vadd.f32 %v3297_v35, %v5752_v18  ;;  %v3389_v4 = vadd.f32 %v3369_v10, %v5763_v41  ;;  %v6045_v38 = vpop.f32.mrf.mxu0  ;;  %v3158_v50 = vpop.f32.mrf.mxu1  ;;  %v4261_v14 = vadd.f32 %v5978_v37, %v5973_v44 }
 0x36b   : > { %v3294_v13 = vsel %vm3285_vm1, %v3292_v24, %v3293_v52  ;;  %v3368_v5 = vsel %vm3285_vm1, %v3293_v52, 0.0  ;;  %v3159_v47 = vadd.f32 %v4240_v40, %v3158_v50  ;;  %v3301_v36 = vrot.slane %v3167_v8, 1  ;;  %v6204_v24 = vld [vmem:[#allocation5_spill] sm:$0xff] }
 0x36c   : > { %3420 = vst [vmem:[%s4889_s15 + $0x30] sm:$0xff] %v3388_v28  ;;  %3421 = vst [vmem:[%s4889_s15 + $0x38] sm:$0xff] %v3389_v4  ;;  %v3386_v46 = vadd.f32 %v3294_v13, %v5734_v30  ;;  %v3387_v18 = vadd.f32 %v3368_v5, %v5745_v33  ;;  %v6055_v41 = vpop.f32.mrf.mxu0  ;;  %v4505_v27 = vpop.f32.mrf.mxu1  ;;  %v4258_v30 = vadd.f32 %v5970_v29, %v5963_v59 }
 0x36d   : > { %v3170_v39 = vadd.f32 %v4505_v27, %v4249_v57  ;;  %v3298_v63 = vrot.slane %v3159_v47, 1  ;;  %v4255_v52 = vadd.f32 %v5958_v56, %v5953_v42  ;;  %v4270_v13 = vadd.f32 %v6017_v3, %v6009_v9 }
 0x36e   : > { %3418 = vst [vmem:[%s4889_s15 + $0x20] sm:$0xff] %v3386_v46  ;;  %3419 = vst [vmem:[%s4889_s15 + $0x28] sm:$0xff] %v3387_v18  ;;  %v6061_v51 = vpop.f32.mrf.mxu0  ;;  %v3161_v32 = vpop.f32.mrf.mxu1  ;;  %v4264_v27 = vadd.f32 %v5992_v60, %v5983_v49  ;;  %v6207_v60 = vld [vmem:[#allocation9_spill] sm:$0xff] }
 0x36f   : > { %v3302_v20 = vrot.slane %v3170_v39, 1  ;;  %v3162_v15 = vadd.f32 %v4243_v1, %v3161_v32  ;;  %v4273_v39 = vadd.f32 %v6033_v21, %v6027_v17 }
 0x370   : > { %v6065_v33 = vpop.f32.mrf.mxu0  ;;  %v4508_v53 = vpop.f32.mrf.mxu1 }
 0x371   : > { %v3303_v19 = vsel %vm3285_vm1, %v3301_v36, %v3302_v20  ;;  %v3371_v16 = vsel %vm3285_vm1, %v3302_v20, 0.0  ;;  %v3299_v2 = vrot.slane %v3162_v15, 1  ;;  %v3183_v23 = vadd.f32 %v4508_v53, %v4258_v30  ;;  %v6206_v15 = vld [vmem:[#allocation8_spill] sm:$0xff] }
 0x372   : > { %v3392_v11 = vadd.f32 %v3303_v19, %v5790_v31  ;;  %v3393_v34 = vadd.f32 %v3371_v16, %v6203_v58  ;;  %v4281_v59 = vpop.f32.mrf.mxu0  ;;  %v3174_v29 = vpop.f32.mrf.mxu1  ;;  %v4267_v53 = vadd.f32 %v6003_v22, %v5997_v54 }
 0x373   : > { %v3300_v45 = vsel %vm3285_vm1, %v3298_v63, %v3299_v2  ;;  %v3370_v62 = vsel %vm3285_vm1, %v3299_v2, 0.0  ;;  %v3175_v40 = vadd.f32 %v4252_v55, %v3174_v29  ;;  %v3307_v4 = vrot.slane %v3183_v23, 1 }
 0x374   : > { %3424 = vst [vmem:[%s4889_s15 + $0x50] sm:$0xff] %v3392_v11  ;;  %3425 = vst [vmem:[%s4889_s15 + $0x58] sm:$0xff] %v3393_v34  ;;  %v3390_v7 = vadd.f32 %v3300_v45, %v6204_v24  ;;  %v3391_v31 = vadd.f32 %v3370_v62, %v6205_v48  ;;  %v4283_v35 = vpop.f32.mrf.mxu0  ;;  %v4509_v10 = vpop.f32.mrf.mxu1  ;;  %v4282_v11 = vadd.f32 %v4281_v59, %v6065_v33  ;;  %v6208_v62 = vld [vmem:[#allocation12_spill] sm:$0xff]  ;;  %v6209_v24 = vld [vmem:[#allocation13_spill] sm:$0xff] }
 0x375   : > { %v3186_v28 = vadd.f32 %v4509_v10, %v4261_v14  ;;  %v3304_v46 = vrot.slane %v3175_v40, 1  ;;  %v4276_v45 = vadd.f32 %v6045_v38, %v6037_v25  ;;  %v6210_v40 = vld [vmem:[#allocation10_spill] sm:$0xff] }
 0x376   : > { %3422 = vst [vmem:[%s4889_s15 + $0x40] sm:$0xff] %v3390_v7  ;;  %3423 = vst [vmem:[%s4889_s15 + $0x48] sm:$0xff] %v3391_v31  ;;  %v4284_v44 = vpop.f32.mrf.mxu0  ;;  %v3177_v37 = vpop.f32.mrf.mxu1 }
 0x377   : > { %v3308_v50 = vrot.slane %v3186_v28, 1  ;;  %v3178_v57 = vadd.f32 %v4255_v52, %v3177_v37  ;;  %v4285_v59 = vadd.f32 %v4284_v44, %v4283_v35  ;;  %v6211_v37 = vld [vmem:[#allocation11_spill] sm:$0xff] }
 0x378   : > { %v6087_v5 = vpop.f32.mrf.mxu0  ;;  %v4512_v8 = vpop.f32.mrf.mxu1 }
 0x379   : > { %v3309_v42 = vsel %vm3285_vm1, %v3307_v4, %v3308_v50  ;;  %v3373_v56 = vsel %vm3285_vm1, %v3308_v50, 0.0  ;;  %v3305_v18 = vrot.slane %v3178_v57, 1  ;;  %v3199_v20 = vadd.f32 %v4512_v8, %v4270_v13 }
 0x37a   : > { %v3396_v1 = vadd.f32 %v3309_v42, %v5828_v61  ;;  %v3397_v47 = vadd.f32 %v3373_v56, %v5840_v43  ;;  %v4287_v9 = vpop.f32.mrf.mxu0  ;;  %v3190_v3 = vpop.f32.mrf.mxu1  ;;  %v4279_v50 = vadd.f32 %v6061_v51, %v6055_v41 }
 0x37b   : > { %v3306_v32 = vsel %vm3285_vm1, %v3304_v46, %v3305_v18  ;;  %v3372_v36 = vsel %vm3285_vm1, %v3305_v18, 0.0  ;;  %v3191_v63 = vadd.f32 %v4264_v27, %v3190_v3  ;;  %v3313_v16 = vrot.slane %v3199_v20, 1 }
 0x37c   : > { %3428 = vst [vmem:[%s4889_s15 + $0x70] sm:$0xff] %v3396_v1  ;;  %3429 = vst [vmem:[%s4889_s15 + $0x78] sm:$0xff] %v3397_v47  ;;  %v3394_v49 = vadd.f32 %v3306_v32, %v6206_v15  ;;  %v3395_v61 = vadd.f32 %v3372_v36, %v6207_v60  ;;  %v6103_v30 = vpop.f32.mrf.mxu0  ;;  %v4513_v43 = vpop.f32.mrf.mxu1  ;;  %v4288_v51 = vadd.f32 %v4287_v9, %v6087_v5  ;;  %v6213_v36 = vld [vmem:[#allocation17_spill] sm:$0xff] }
 0x37d   : > { %v3202_v19 = vadd.f32 %v4513_v43, %v4273_v39  ;;  %v3310_v29 = vrot.slane %v3191_v63, 1  ;;  %v6212_v39 = vld [vmem:[#allocation16_spill] sm:$0xff]  ;;  %v6214_v63 = vld [vmem:[#allocation14_spill] sm:$0xff] }
 0x37e   : > { %3426 = vst [vmem:[%s4889_s15 + $0x60] sm:$0xff] %v3394_v49  ;;  %3427 = vst [vmem:[%s4889_s15 + $0x68] sm:$0xff] %v3395_v61  ;;  %v4290_v17 = vpop.f32.mrf.mxu0  ;;  %v3193_v21 = vpop.f32.mrf.mxu1 }
 0x37f   : > { %v3314_v2 = vrot.slane %v3202_v19, 1  ;;  %v3194_v55 = vadd.f32 %v4267_v53, %v3193_v21  ;;  %v6215_v21 = vld [vmem:[#allocation15_spill] sm:$0xff] }
 0x380   : > { %v4292_v58 = vpop.f32.mrf.mxu0  ;;  %v4516_v34 = vpop.f32.mrf.mxu1 }
 0x381   : > { %v3315_v14 = vsel %vm3285_vm1, %v3313_v16, %v3314_v2  ;;  %v3375_v54 = vsel %vm3285_vm1, %v3314_v2, 0.0  ;;  %v3311_v22 = vrot.slane %v3194_v55, 1  ;;  %v3215_v52 = vadd.f32 %v4516_v34, %v4282_v11 }
 0x382   : > { %v3400_v23 = vadd.f32 %v3315_v14, %v6208_v62  ;;  %v3401_v7 = vadd.f32 %v3375_v54, %v6209_v24  ;;  %v4293_v48 = vpop.f32.mrf.mxu0  ;;  %v3206_v33 = vpop.f32.mrf.mxu1  ;;  %v4291_v2 = vadd.f32 %v4290_v17, %v6103_v30  ;;  %v6216_v30 = vld [vmem:[#allocation20_spill] sm:$0xff] }
 0x383   : > { %v3312_v31 = vsel %vm3285_vm1, %v3310_v29, %v3311_v22  ;;  %v3374_v10 = vsel %vm3285_vm1, %v3311_v22, 0.0  ;;  %v3207_v57 = vadd.f32 %v4276_v45, %v3206_v33  ;;  %v3319_v8 = vrot.slane %v3215_v52, 1 }
 0x384   : > { %3432 = vst [vmem:[%s4889_s15 + $0x90] sm:$0xff] %v3400_v23  ;;  %3433 = vst [vmem:[%s4889_s15 + $0x98] sm:$0xff] %v3401_v7  ;;  %v3398_v28 = vadd.f32 %v3312_v31, %v6210_v40  ;;  %v3399_v25 = vadd.f32 %v3374_v10, %v6211_v37  ;;  %v4295_v38 = vpop.f32.mrf.mxu0  ;;  %v4517_v4 = vpop.f32.mrf.mxu1  ;;  %v4294_v56 = vadd.f32 %v4293_v48, %v4292_v58  ;;  %v6217_v48 = vld [vmem:[#allocation21_spill] sm:$0xff]  ;;  %v6218_v37 = vld [vmem:[#allocation18_spill] sm:$0xff] }
 0x385   : > { %v3218_v13 = vadd.f32 %v4517_v4, %v4285_v59  ;;  %v3316_v1 = vrot.slane %v3207_v57, 1 }
 0x386   : > { %3430 = vst [vmem:[%s4889_s15 + $0x80] sm:$0xff] %v3398_v28  ;;  %3431 = vst [vmem:[%s4889_s15 + $0x88] sm:$0xff] %v3399_v25  ;;  %v4296_v35 = vpop.f32.mrf.mxu0  ;;  %v3209_v44 = vpop.f32.mrf.mxu1 }
 0x387   : > { %v3320_v46 = vrot.slane %v3218_v13, 1  ;;  %v3210_v42 = vadd.f32 %v4279_v50, %v3209_v44  ;;  %v4297_v60 = vadd.f32 %v4296_v35, %v4295_v38  ;;  %v6219_v38 = vld [vmem:[#allocation19_spill] sm:$0xff] }
 0x388   : > { %v4298_v18 = vpop.f32.mrf.mxu0  ;;  %v4520_v27 = vpop.f32.mrf.mxu1 }
 0x389   : > { %v3321_v47 = vsel %vm3285_vm1, %v3319_v8, %v3320_v46  ;;  %v3377_v3 = vsel %vm3285_vm1, %v3320_v46, 0.0  ;;  %v3317_v41 = vrot.slane %v3210_v42, 1  ;;  %v3231_v53 = vadd.f32 %v4520_v27, %v4294_v56 }
 0x38a   : > { %v3404_v32 = vadd.f32 %v3321_v47, %v6212_v39  ;;  %v3405_v20 = vadd.f32 %v3377_v3, %v6213_v36  ;;  %v4299_v15 = vpop.f32.mrf.mxu0  ;;  %v3222_v49 = vpop.f32.mrf.mxu1 }
 0x38b   : > { %v3318_v61 = vsel %vm3285_vm1, %v3316_v1, %v3317_v41  ;;  %v3376_v43 = vsel %vm3285_vm1, %v3317_v41, 0.0  ;;  %v3223_v55 = vadd.f32 %v4288_v51, %v3222_v49  ;;  %v3325_v29 = vrot.slane %v3231_v53, 1 }
 0x38c   : > { %3436 = vst [vmem:[%s4889_s15 + $0xb0] sm:$0xff] %v3404_v32  ;;  %3437 = vst [vmem:[%s4889_s15 + $0xb8] sm:$0xff] %v3405_v20  ;;  %v3402_v19 = vadd.f32 %v3318_v61, %v6214_v63  ;;  %v3403_v5 = vadd.f32 %v3376_v43, %v6215_v21  ;;  %v4301_v9 = vpop.f32.mrf.mxu0  ;;  %v4521_v16 = vpop.f32.mrf.mxu1  ;;  %v4300_v10 = vadd.f32 %v4299_v15, %v4298_v18 }
 0x38d   : > { %v3234_v11 = vadd.f32 %v4521_v16, %v4297_v60  ;;  %v3322_v62 = vrot.slane %v3223_v55, 1 }
 0x38e   : > { %3434 = vst [vmem:[%s4889_s15 + $0xa0] sm:$0xff] %v3402_v19  ;;  %3435 = vst [vmem:[%s4889_s15 + $0xa8] sm:$0xff] %v3403_v5  ;;  %v4302_v58 = vpop.f32.mrf.mxu0  ;;  %v3225_v34 = vpop.f32.mrf.mxu1 }
 0x38f   : > { %v3326_v14 = vrot.slane %v3234_v11, 1  ;;  %v3226_v54 = vadd.f32 %v4291_v2, %v3225_v34  ;;  %v4303_v13 = vadd.f32 %v4302_v58, %v4301_v9 }
 0x390   : > { %v4304_v22 = vpop.f32.mrf.mxu0  ;;  %v4524_v45 = vpop.f32.mrf.mxu1 }
 0x391   : > { %v3327_v23 = vsel %vm3285_vm1, %v3325_v29, %v3326_v14  ;;  %v3379_v24 = vsel %vm3285_vm1, %v3326_v14, 0.0  ;;  %v3323_v7 = vrot.slane %v3226_v54, 1 }
 0x392   : > { %v3408_v17 = vadd.f32 %v3327_v23, %v6216_v30  ;;  %v3409_v33 = vadd.f32 %v3379_v24, %v6217_v48  ;;  %v4305_v59 = vpop.f32.mrf.mxu0  ;;  %v3238_v31 = vpop.f32.mrf.mxu1 }
 0x393   : > { %v3324_v52 = vsel %vm3285_vm1, %v3322_v62, %v3323_v7  ;;  %v3378_v40 = vsel %vm3285_vm1, %v3323_v7, 0.0  ;;  %v4306_v28 = vadd.f32 %v4305_v59, %v4304_v22  ;;  %v3239_v35 = vadd.f32 %v4300_v10, %v3238_v31 }
 0x394   : > { %3440 = vst [vmem:[%s4889_s15 + $0xd0] sm:$0xff] %v3408_v17  ;;  %3441 = vst [vmem:[%s4889_s15 + $0xd8] sm:$0xff] %v3409_v33  ;;  %v3406_v25 = vadd.f32 %v3324_v52, %v6218_v37  ;;  %v3407_v4 = vadd.f32 %v3378_v40, %v6219_v38  ;;  %v4307_v50 = vpop.f32.mrf.mxu0  ;;  %v4525_v57 = vpop.f32.mrf.mxu1 }
 0x395   : > { %v3247_v46 = vadd.f32 %v4524_v45, %v4306_v28  ;;  %v3328_v18 = vrot.slane %v3239_v35, 1 }
 0x396   : > { %3438 = vst [vmem:[%s4889_s15 + $0xc0] sm:$0xff] %v3406_v25  ;;  %3439 = vst [vmem:[%s4889_s15 + $0xc8] sm:$0xff] %v3407_v4  ;;  %v4308_v44 = vpop.f32.mrf.mxu0  ;;  %v3241_v8 = vpop.f32.mrf.mxu1 }
 0x397   : > { %v4309_v42 = vadd.f32 %v4308_v44, %v4307_v50  ;;  %v3242_v56 = vadd.f32 %v4303_v13, %v3241_v8  ;;  %v3331_v47 = vrot.slane %v3247_v46, 1 }
 0x399   : > { %v3250_v27 = vadd.f32 %v4525_v57, %v4309_v42  ;;  %v3329_v1 = vrot.slane %v3242_v56, 1 }
 0x39b   : > { %v3332_v3 = vrot.slane %v3250_v27, 1  ;;  %v3330_v41 = vsel %vm3285_vm1, %v3328_v18, %v3329_v1  ;;  %v3380_v51 = vsel %vm3285_vm1, %v3329_v1, 0.0 }
 0x39c   : > { %v3410_v39 = vadd.f32 %v3330_v41, %v5968_v6  ;;  %v3411_v32 = vadd.f32 %v3380_v51, %v5980_v12 }
 0x39d   : > { %v3333_v36 = vsel %vm3285_vm1, %v3331_v47, %v3332_v3  ;;  %v3381_v20 = vsel %vm3285_vm1, %v3332_v3, 0.0 }
 0x39e   : > { %v3412_v15 = vadd.f32 %v3333_v36, %v5990_v26  ;;  %v3413_v49 = vadd.f32 %v3381_v20, %v6005_v0  ;;  %3442 = vst [vmem:[%s4889_s15 + $0xe0] sm:$0xff] %v3410_v39  ;;  %3443 = vst [vmem:[%s4889_s15 + $0xe8] sm:$0xff] %v3411_v32 }
 0x3a0   : > { %3444 = vst [vmem:[%s4889_s15 + $0xf0] sm:$0xff] %v3412_v15  ;;  %3445 = vst [vmem:[%s4889_s15 + $0xf8] sm:$0xff] %v3413_v49 }
 0x3a1 PF: > { %s16_s25 = sadd.s32 1, %s4801_s25   ;;  %s6220_s21 = smov %s4793_s23 }
 0x3a2   : > { %p13_p12 = scmp.ge.s32.totalorder %s16_s25, 6   ;;  %s6221_s22 = smov %s4797_s24 }
 0x3a3   : > { %s6222_s23 = smov %s6225_s26  ;;  %s6223_s24 = smov %s6229_s27 }
 0x3a4   :  { %15 = sbr.rel (!%p13_p12) target bundleno = 3 (0x3), region = 93 }

</bundles_post_ra>
